<compile_context>
chip_gen: v7x
topology: tpu7x:2x2x1
jax: 0.10.0
libtpu: 0.0.40
codegen_flags: <defaults>
</compile_context>

<pallas_src>
import functools

import jax
import jax.numpy as jnp
import numpy as np
from jax.experimental import pallas as pl
from jax.experimental.pallas import tpu as pltpu

P_SIZE = 2      # particle_size
N_HIDDEN = 3    # n_hidden
N_FEAT = 32     # n_features
MINN = 0.005
CHUNK = 512     # lanes per register-resident inner chunk (multiple of 128)


def _pairwise_density_kernel(x_ref, w1_ref, b1_ref, wh_ref, bh_ref,
                             wo_ref, bo_ref, o_ref, *, minn, n_chunks, chunk):
    f32 = jnp.float32
    mm_dtype = wh_ref.dtype          # bf16 (default) or f32 (strict path)

    # Parameters: loaded once, reused across all chunks (VMEM/register resident).
    w1 = w1_ref[...]                 # (F, P) f32, x*20 folded in
    b1 = b1_ref[...]                 # (F, 1) f32
    wo = wo_ref[...]                 # (F, 1) f32
    bo = bo_ref[0]                   # scalar f32 (SMEM)
    wh = [wh_ref[i] for i in range(N_HIDDEN)]   # (F, F) each, mm_dtype
    bh = [bh_ref[i] for i in range(N_HIDDEN)]   # (F, 1) each, f32

    # Register-resident lane-chunk loop: all 4 layers + output reduce run on a
    # (F, chunk) activation that never round-trips VMEM between layers.
    for c in range(n_chunks):
        x = x_ref[:, c * chunk:(c + 1) * chunk]             # (P, chunk) f32

        # Input layer (K=2): VPU broadcast FMAs, not an MXU matmul.
        h = b1 + w1[:, 0:1] * x[0:1, :] + w1[:, 1:2] * x[1:2, :]
        h = jnp.maximum(h, 0.0)                             # (F, chunk) f32

        # Hidden layers on the MXU.  Moving operand (h) cast to the weights'
        # dtype only at the dot; accumulate in f32; bias/ReLU in f32.
        for i in range(N_HIDDEN):
            y = jnp.dot(wh[i], h.astype(mm_dtype),
                        preferred_element_type=f32)         # (F, chunk) f32
            h = jnp.maximum(y + bh[i], 0.0)

        # Output layer (F -> 1): VPU multiply + XLU sublane reduce, sigmoid on
        # the EUP, then the minn affine.  Store into this chunk's sublane row.
        o = jnp.sum(wo * h, axis=0, keepdims=True) + bo     # (1, chunk)
        o = jax.nn.sigmoid(o)
        o = o * (1.0 - minn) + minn
        o_ref[:, c:c + 1, :] = o.reshape(1, 1, chunk).astype(o_ref.dtype)


def _choose_tiling(n, max_tile=8192, chunk=CHUNK):
    """Pick (tile_n, grid, n_pad, chunks_per_tile): big tiles, even grid."""
    max_cpt = max(1, max_tile // chunk)
    c = -(-n // chunk)                    # total lane-chunks needed (ceil)
    g = -(-c // max_cpt)                  # minimal number of grid steps
    if c > 1 and g % 2 == 1:
        g += 1                            # even grid -> balanced on v7x's 2 TCs
    cpt = -(-c // g)                      # chunks per tile
    tile_n = cpt * chunk
    n_pad = tile_n * g
    return tile_n, g, n_pad, cpt


def prepare_params(params, *, matmul_dtype=jnp.bfloat16):
    """One-time layout/precision prep (hoist out of the per-call path)."""
    w1, b1, wh, bh, wo, bo = params
    w1t = (w1 * 20.0).T.astype(jnp.float32)                  # (F, P), *20 folded
    b1t = b1.reshape(N_FEAT, 1).astype(jnp.float32)          # (F, 1)
    wht = jnp.transpose(wh, (0, 2, 1)).astype(matmul_dtype)  # (H, F, F)
    bht = jnp.transpose(bh, (0, 2, 1)).astype(jnp.float32)   # (H, F, 1)
    wot = wo.reshape(N_FEAT, 1).astype(jnp.float32)          # (F, 1)
    bos = bo.reshape(1).astype(jnp.float32)                  # (1,) -> SMEM
    return (w1t, b1t, wht, bht, wot, bos)


def pairwise_density(x, prepared, *, minn=MINN, max_tile=8192):
    """x: (N, P) float32; prepared = prepare_params(raw); returns (N, 1) f32."""
    w1t, b1t, wht, bht, wot, bos = prepared
    n, p = x.shape
    assert p == P_SIZE

    tile_n, grid_n, n_pad, cpt = _choose_tiling(n, max_tile)

    xt = x.T                                   # (P, N)  batch on lanes
    if n_pad != n:
        xt = jnp.pad(xt, ((0, 0), (0, n_pad - n)))   # padded rows sliced off below

    kernel = functools.partial(_pairwise_density_kernel, minn=minn,
                               n_chunks=cpt, chunk=CHUNK)

    out = pl.pallas_call(
        kernel,
        out_shape=jax.ShapeDtypeStruct((grid_n, cpt, CHUNK), jnp.float32),
        grid_spec=pltpu.PrefetchScalarGridSpec(
            num_scalar_prefetch=0,
            grid=(grid_n,),
            in_specs=[
                pl.BlockSpec((P_SIZE, tile_n), lambda i: (0, i)),               # x (P, N)
                pl.BlockSpec((N_FEAT, P_SIZE), lambda i: (0, 0)),               # w1t
                pl.BlockSpec((N_FEAT, 1), lambda i: (0, 0)),                    # b1t
                pl.BlockSpec((N_HIDDEN, N_FEAT, N_FEAT), lambda i: (0, 0, 0)),  # wht
                pl.BlockSpec((N_HIDDEN, N_FEAT, 1), lambda i: (0, 0, 0)),       # bht
                pl.BlockSpec((N_FEAT, 1), lambda i: (0, 0)),                    # wo
                pl.BlockSpec(memory_space=pltpu.MemorySpace.SMEM),              # bo scalar
            ],
            out_specs=pl.BlockSpec((1, cpt, CHUNK), lambda i: (i, 0, 0)),
        ),
        compiler_params=pltpu.CompilerParams(
            dimension_semantics=("parallel",)),
    )(xt, w1t, b1t, wht, bht, wot, bos)

    return out.reshape(n_pad, 1)[:n]


def init_params(key):
    """Deterministic synthetic init (Kaiming-uniform-ish, like nn.Linear)."""
    ks = jax.random.split(key, 10)

    def linear(kw, kb, fan_in, fan_out):
        bound = 1.0 / np.sqrt(fan_in)
        w = jax.random.uniform(kw, (fan_in, fan_out), jnp.float32, -bound, bound)
        b = jax.random.uniform(kb, (1, fan_out), jnp.float32, -bound, bound)
        return w, b

    w1, b1 = linear(ks[0], ks[1], P_SIZE, N_FEAT)
    whs, bhs = [], []
    for i in range(N_HIDDEN):
        w, b = linear(ks[2 + 2 * i], ks[3 + 2 * i], N_FEAT, N_FEAT)
        whs.append(w)
        bhs.append(b)
    wh = jnp.stack(whs, axis=0)                      # (3, 32, 32)
    bh = jnp.stack(bhs, axis=0)                      # (3, 1, 32)
    wo, bo = linear(ks[8], ks[9], N_FEAT, 1)
    return (w1, b1, wh, bh, wo, bo)


def reference(x, params, minn=MINN):
    w1, b1, wh, bh, wo, bo = params
    h = jnp.maximum((x * 20.0) @ w1 + b1, 0.0)
    for i in range(N_HIDDEN):
        h = jnp.maximum(h @ wh[i] + bh[i], 0.0)
    o = jax.nn.sigmoid(h @ wo + bo)
    return o * (1.0 - minn) + minn


if __name__ == "__main__":
    key = jax.random.PRNGKey(0)
    k_param, k_x = jax.random.split(key)

    params = init_params(k_param)
    N = 6000  # deliberately NOT a multiple of 128/512: exercises internal padding
    x = jax.random.normal(k_x, (N, P_SIZE), jnp.float32)

    ref = reference(x, params)

    # Strict f32 path: validates layout / chunking / padding tightly.
    prep_f32 = prepare_params(params, matmul_dtype=jnp.float32)
    out_f32 = jax.block_until_ready(pairwise_density(x, prep_f32))
    assert out_f32.shape == (N, 1)
    np.testing.assert_allclose(np.asarray(out_f32), np.asarray(ref),
                               rtol=1e-5, atol=1e-5)

    # Default fast path: bf16 hidden weights / moving operand, f32 accumulate.
    prep_bf16 = prepare_params(params)               # matmul_dtype=bfloat16
    out_bf16 = jax.block_until_ready(pairwise_density(x, prep_bf16))
    assert out_bf16.shape == (N, 1)
    np.testing.assert_allclose(np.asarray(out_bf16), np.asarray(ref),
                               rtol=0.0, atol=3e-2)

    print("KERNEL_OK")
</pallas_src>

<mosaic_0001>
module attributes {stable_mosaic.version = 11 : i64} {
  func.func @_pairwise_density_kernel(%arg0: i32, %arg1: memref<2x3072xf32, #tpu.memory_space<vmem>>, %arg2: memref<32x2xf32, #tpu.memory_space<vmem>>, %arg3: memref<32x1xf32, #tpu.memory_space<vmem>>, %arg4: memref<3x32x32xf32, #tpu.memory_space<vmem>>, %arg5: memref<3x32x1xf32, #tpu.memory_space<vmem>>, %arg6: memref<32x1xf32, #tpu.memory_space<vmem>>, %arg7: memref<1xf32, #tpu.memory_space<smem>>, %arg8: memref<1x6x512xf32, #tpu.memory_space<vmem>>) attributes {dimension_semantics = [#tpu.dimension_semantics<parallel>], iteration_bounds = array<i64: 2>, scalar_prefetch = 0 : i64, scratch_operands = 0 : i64, tpu.core_type = #tpu.core_type<tc>, window_params = [{transform_indices = @transform_0, window_bounds = array<i64: 2, 3072>}, {pipeline_mode = #tpu.pipeline_mode<synchronous>, transform_indices = @transform_1, window_bounds = array<i64: 32, 2>}, {pipeline_mode = #tpu.pipeline_mode<synchronous>, transform_indices = @transform_2, window_bounds = array<i64: 32, 1>}, {pipeline_mode = #tpu.pipeline_mode<synchronous>, transform_indices = @transform_3, window_bounds = array<i64: 3, 32, 32>}, {pipeline_mode = #tpu.pipeline_mode<synchronous>, transform_indices = @transform_4, window_bounds = array<i64: 3, 32, 1>}, {pipeline_mode = #tpu.pipeline_mode<synchronous>, transform_indices = @transform_5, window_bounds = array<i64: 32, 1>}, {transform_indices = @transform_6, window_bounds = array<i64: 1>}, {transform_indices = @transform_7, window_bounds = array<i64: 1, 6, 512>}]} {
    %c0 = arith.constant 0 : index
    %c0_0 = arith.constant 0 : index
    %0 = vector.load %arg2[%c0, %c0_0] : memref<32x2xf32, #tpu.memory_space<vmem>>, vector<32x2xf32>
    %c0_1 = arith.constant 0 : index
    %c0_2 = arith.constant 0 : index
    %1 = vector.load %arg3[%c0_1, %c0_2] : memref<32x1xf32, #tpu.memory_space<vmem>>, vector<32x1xf32>
    %c0_3 = arith.constant 0 : index
    %c0_4 = arith.constant 0 : index
    %2 = vector.load %arg6[%c0_3, %c0_4] : memref<32x1xf32, #tpu.memory_space<vmem>>, vector<32x1xf32>
    %c0_5 = arith.constant 0 : index
    %3 = memref.load %arg7[%c0_5] : memref<1xf32, #tpu.memory_space<smem>>
    %c0_6 = arith.constant 0 : index
    %c0_7 = arith.constant 0 : index
    %c0_8 = arith.constant 0 : index
    %4 = vector.load %arg4[%c0_6, %c0_7, %c0_8] : memref<3x32x32xf32, #tpu.memory_space<vmem>>, vector<1x32x32xf32>
    %5 = vector.shape_cast %4 : vector<1x32x32xf32> to vector<32x32xf32>
    %c1 = arith.constant 1 : index
    %c0_9 = arith.constant 0 : index
    %c0_10 = arith.constant 0 : index
    %6 = vector.load %arg4[%c1, %c0_9, %c0_10] : memref<3x32x32xf32, #tpu.memory_space<vmem>>, vector<1x32x32xf32>
    %7 = vector.shape_cast %6 : vector<1x32x32xf32> to vector<32x32xf32>
    %c2 = arith.constant 2 : index
    %c0_11 = arith.constant 0 : index
    %c0_12 = arith.constant 0 : index
    %8 = vector.load %arg4[%c2, %c0_11, %c0_12] : memref<3x32x32xf32, #tpu.memory_space<vmem>>, vector<1x32x32xf32>
    %9 = vector.shape_cast %8 : vector<1x32x32xf32> to vector<32x32xf32>
    %c0_13 = arith.constant 0 : index
    %c0_14 = arith.constant 0 : index
    %c0_15 = arith.constant 0 : index
    %10 = vector.load %arg5[%c0_13, %c0_14, %c0_15] : memref<3x32x1xf32, #tpu.memory_space<vmem>>, vector<1x32x1xf32>
    %11 = vector.shape_cast %10 : vector<1x32x1xf32> to vector<32x1xf32>
    %c1_16 = arith.constant 1 : index
    %c0_17 = arith.constant 0 : index
    %c0_18 = arith.constant 0 : index
    %12 = vector.load %arg5[%c1_16, %c0_17, %c0_18] : memref<3x32x1xf32, #tpu.memory_space<vmem>>, vector<1x32x1xf32>
    %13 = vector.shape_cast %12 : vector<1x32x1xf32> to vector<32x1xf32>
    %c2_19 = arith.constant 2 : index
    %c0_20 = arith.constant 0 : index
    %c0_21 = arith.constant 0 : index
    %14 = vector.load %arg5[%c2_19, %c0_20, %c0_21] : memref<3x32x1xf32, #tpu.memory_space<vmem>>, vector<1x32x1xf32>
    %15 = vector.shape_cast %14 : vector<1x32x1xf32> to vector<32x1xf32>
    %c0_22 = arith.constant 0 : index
    %c0_23 = arith.constant 0 : index
    %16 = vector.load %arg1[%c0_22, %c0_23] : memref<2x3072xf32, #tpu.memory_space<vmem>>, vector<2x512xf32>
    %17 = vector.extract_strided_slice %0 {offsets = [0, 0], sizes = [32, 1], strides = [1, 1]} : vector<32x2xf32> to vector<32x1xf32>
    %18 = vector.extract_strided_slice %16 {offsets = [0, 0], sizes = [1, 512], strides = [1, 1]} : vector<2x512xf32> to vector<1x512xf32>
    %19 = vector.broadcast %17 : vector<32x1xf32> to vector<32x512xf32>
    %20 = vector.broadcast %18 : vector<1x512xf32> to vector<32x512xf32>
    %21 = arith.mulf %19, %20 : vector<32x512xf32>
    %22 = vector.broadcast %1 : vector<32x1xf32> to vector<32x512xf32>
    %23 = arith.addf %22, %21 : vector<32x512xf32>
    %24 = vector.extract_strided_slice %0 {offsets = [0, 1], sizes = [32, 1], strides = [1, 1]} : vector<32x2xf32> to vector<32x1xf32>
    %25 = vector.extract_strided_slice %16 {offsets = [1, 0], sizes = [1, 512], strides = [1, 1]} : vector<2x512xf32> to vector<1x512xf32>
    %26 = vector.broadcast %24 : vector<32x1xf32> to vector<32x512xf32>
    %27 = vector.broadcast %25 : vector<1x512xf32> to vector<32x512xf32>
    %28 = arith.mulf %26, %27 : vector<32x512xf32>
    %29 = arith.addf %23, %28 : vector<32x512xf32>
    %cst = arith.constant 0.000000e+00 : f32
    %30 = vector.broadcast %cst : f32 to vector<32x512xf32>
    %31 = arith.maximumf %29, %30 : vector<32x512xf32>
    %cst_24 = arith.constant dense<0.000000e+00> : vector<32x512xf32>
    %32 = tpu.matmul %5, %31, %cst_24 {dimension_numbers = #tpu.dot_dimension_numbers<[1], [0], [0], [1], [0, 0, 1, 1], [], []>} : vector<32x32xf32>, vector<32x512xf32>, vector<32x512xf32> -> vector<32x512xf32>
    %33 = vector.broadcast %11 : vector<32x1xf32> to vector<32x512xf32>
    %34 = arith.addf %32, %33 : vector<32x512xf32>
    %cst_25 = arith.constant 0.000000e+00 : f32
    %35 = vector.broadcast %cst_25 : f32 to vector<32x512xf32>
    %36 = arith.maximumf %34, %35 : vector<32x512xf32>
    %cst_26 = arith.constant dense<0.000000e+00> : vector<32x512xf32>
    %37 = tpu.matmul %7, %36, %cst_26 {dimension_numbers = #tpu.dot_dimension_numbers<[1], [0], [0], [1], [0, 0, 1, 1], [], []>} : vector<32x32xf32>, vector<32x512xf32>, vector<32x512xf32> -> vector<32x512xf32>
    %38 = vector.broadcast %13 : vector<32x1xf32> to vector<32x512xf32>
    %39 = arith.addf %37, %38 : vector<32x512xf32>
    %cst_27 = arith.constant 0.000000e+00 : f32
    %40 = vector.broadcast %cst_27 : f32 to vector<32x512xf32>
    %41 = arith.maximumf %39, %40 : vector<32x512xf32>
    %cst_28 = arith.constant dense<0.000000e+00> : vector<32x512xf32>
    %42 = tpu.matmul %9, %41, %cst_28 {dimension_numbers = #tpu.dot_dimension_numbers<[1], [0], [0], [1], [0, 0, 1, 1], [], []>} : vector<32x32xf32>, vector<32x512xf32>, vector<32x512xf32> -> vector<32x512xf32>
    %43 = vector.broadcast %15 : vector<32x1xf32> to vector<32x512xf32>
    %44 = arith.addf %42, %43 : vector<32x512xf32>
    %cst_29 = arith.constant 0.000000e+00 : f32
    %45 = vector.broadcast %cst_29 : f32 to vector<32x512xf32>
    %46 = arith.maximumf %44, %45 : vector<32x512xf32>
    %47 = vector.broadcast %2 : vector<32x1xf32> to vector<32x512xf32>
    %48 = arith.mulf %47, %46 : vector<32x512xf32>
    %cst_30 = arith.constant dense<0.000000e+00> : vector<512xf32>
    %49 = vector.multi_reduction <add>, %48, %cst_30 [0] : vector<32x512xf32> to vector<512xf32>
    %50 = vector.shape_cast %49 : vector<512xf32> to vector<1x512xf32>
    %51 = vector.broadcast %3 : f32 to vector<1x512xf32>
    %52 = arith.addf %50, %51 : vector<1x512xf32>
    %53 = arith.negf %52 : vector<1x512xf32>
    %54 = math.exp %53 : vector<1x512xf32>
    %cst_31 = arith.constant 1.000000e+00 : f32
    %55 = vector.broadcast %cst_31 : f32 to vector<1x512xf32>
    %56 = arith.addf %55, %54 : vector<1x512xf32>
    %57 = arith.divf %55, %56 : vector<1x512xf32>
    %cst_32 = arith.constant 9.950000e-01 : f32
    %58 = vector.broadcast %cst_32 : f32 to vector<1x512xf32>
    %59 = arith.mulf %57, %58 : vector<1x512xf32>
    %cst_33 = arith.constant 5.000000e-03 : f32
    %60 = vector.broadcast %cst_33 : f32 to vector<1x512xf32>
    %61 = arith.addf %59, %60 : vector<1x512xf32>
    %62 = vector.shape_cast %61 : vector<1x512xf32> to vector<1x1x512xf32>
    %c0_34 = arith.constant 0 : index
    %c0_35 = arith.constant 0 : index
    %c0_36 = arith.constant 0 : index
    %63 = vector.load %arg8[%c0_34, %c0_35, %c0_36] : memref<1x6x512xf32, #tpu.memory_space<vmem>>, vector<1x1x512xf32>
    tpu.vector_store %arg8[%c0_34, %c0_35, %c0_36], %62 {strides = array<i32>} : memref<1x6x512xf32, #tpu.memory_space<vmem>>, vector<1x1x512xf32>,
    %c0_37 = arith.constant 0 : index
    %c512 = arith.constant 512 : index
    %64 = vector.load %arg1[%c0_37, %c512] : memref<2x3072xf32, #tpu.memory_space<vmem>>, vector<2x512xf32>
    %65 = vector.extract_strided_slice %0 {offsets = [0, 0], sizes = [32, 1], strides = [1, 1]} : vector<32x2xf32> to vector<32x1xf32>
    %66 = vector.extract_strided_slice %64 {offsets = [0, 0], sizes = [1, 512], strides = [1, 1]} : vector<2x512xf32> to vector<1x512xf32>
    %67 = vector.broadcast %65 : vector<32x1xf32> to vector<32x512xf32>
    %68 = vector.broadcast %66 : vector<1x512xf32> to vector<32x512xf32>
    %69 = arith.mulf %67, %68 : vector<32x512xf32>
    %70 = vector.broadcast %1 : vector<32x1xf32> to vector<32x512xf32>
    %71 = arith.addf %70, %69 : vector<32x512xf32>
    %72 = vector.extract_strided_slice %0 {offsets = [0, 1], sizes = [32, 1], strides = [1, 1]} : vector<32x2xf32> to vector<32x1xf32>
    %73 = vector.extract_strided_slice %64 {offsets = [1, 0], sizes = [1, 512], strides = [1, 1]} : vector<2x512xf32> to vector<1x512xf32>
    %74 = vector.broadcast %72 : vector<32x1xf32> to vector<32x512xf32>
    %75 = vector.broadcast %73 : vector<1x512xf32> to vector<32x512xf32>
    %76 = arith.mulf %74, %75 : vector<32x512xf32>
    %77 = arith.addf %71, %76 : vector<32x512xf32>
    %cst_38 = arith.constant 0.000000e+00 : f32
    %78 = vector.broadcast %cst_38 : f32 to vector<32x512xf32>
    %79 = arith.maximumf %77, %78 : vector<32x512xf32>
    %cst_39 = arith.constant dense<0.000000e+00> : vector<32x512xf32>
    %80 = tpu.matmul %5, %79, %cst_39 {dimension_numbers = #tpu.dot_dimension_numbers<[1], [0], [0], [1], [0, 0, 1, 1], [], []>} : vector<32x32xf32>, vector<32x512xf32>, vector<32x512xf32> -> vector<32x512xf32>
    %81 = vector.broadcast %11 : vector<32x1xf32> to vector<32x512xf32>
    %82 = arith.addf %80, %81 : vector<32x512xf32>
    %cst_40 = arith.constant 0.000000e+00 : f32
    %83 = vector.broadcast %cst_40 : f32 to vector<32x512xf32>
    %84 = arith.maximumf %82, %83 : vector<32x512xf32>
    %cst_41 = arith.constant dense<0.000000e+00> : vector<32x512xf32>
    %85 = tpu.matmul %7, %84, %cst_41 {dimension_numbers = #tpu.dot_dimension_numbers<[1], [0], [0], [1], [0, 0, 1, 1], [], []>} : vector<32x32xf32>, vector<32x512xf32>, vector<32x512xf32> -> vector<32x512xf32>
    %86 = vector.broadcast %13 : vector<32x1xf32> to vector<32x512xf32>
    %87 = arith.addf %85, %86 : vector<32x512xf32>
    %cst_42 = arith.constant 0.000000e+00 : f32
    %88 = vector.broadcast %cst_42 : f32 to vector<32x512xf32>
    %89 = arith.maximumf %87, %88 : vector<32x512xf32>
    %cst_43 = arith.constant dense<0.000000e+00> : vector<32x512xf32>
    %90 = tpu.matmul %9, %89, %cst_43 {dimension_numbers = #tpu.dot_dimension_numbers<[1], [0], [0], [1], [0, 0, 1, 1], [], []>} : vector<32x32xf32>, vector<32x512xf32>, vector<32x512xf32> -> vector<32x512xf32>
    %91 = vector.broadcast %15 : vector<32x1xf32> to vector<32x512xf32>
    %92 = arith.addf %90, %91 : vector<32x512xf32>
    %cst_44 = arith.constant 0.000000e+00 : f32
    %93 = vector.broadcast %cst_44 : f32 to vector<32x512xf32>
    %94 = arith.maximumf %92, %93 : vector<32x512xf32>
    %95 = vector.broadcast %2 : vector<32x1xf32> to vector<32x512xf32>
    %96 = arith.mulf %95, %94 : vector<32x512xf32>
    %cst_45 = arith.constant dense<0.000000e+00> : vector<512xf32>
    %97 = vector.multi_reduction <add>, %96, %cst_45 [0] : vector<32x512xf32> to vector<512xf32>
    %98 = vector.shape_cast %97 : vector<512xf32> to vector<1x512xf32>
    %99 = vector.broadcast %3 : f32 to vector<1x512xf32>
    %100 = arith.addf %98, %99 : vector<1x512xf32>
    %101 = arith.negf %100 : vector<1x512xf32>
    %102 = math.exp %101 : vector<1x512xf32>
    %cst_46 = arith.constant 1.000000e+00 : f32
    %103 = vector.broadcast %cst_46 : f32 to vector<1x512xf32>
    %104 = arith.addf %103, %102 : vector<1x512xf32>
    %105 = arith.divf %103, %104 : vector<1x512xf32>
    %cst_47 = arith.constant 9.950000e-01 : f32
    %106 = vector.broadcast %cst_47 : f32 to vector<1x512xf32>
    %107 = arith.mulf %105, %106 : vector<1x512xf32>
    %cst_48 = arith.constant 5.000000e-03 : f32
    %108 = vector.broadcast %cst_48 : f32 to vector<1x512xf32>
    %109 = arith.addf %107, %108 : vector<1x512xf32>
    %110 = vector.shape_cast %109 : vector<1x512xf32> to vector<1x1x512xf32>
    %c0_49 = arith.constant 0 : index
    %c1_50 = arith.constant 1 : index
    %c0_51 = arith.constant 0 : index
    %111 = vector.load %arg8[%c0_49, %c1_50, %c0_51] : memref<1x6x512xf32, #tpu.memory_space<vmem>>, vector<1x1x512xf32>
    tpu.vector_store %arg8[%c0_49, %c1_50, %c0_51], %110 {strides = array<i32>} : memref<1x6x512xf32, #tpu.memory_space<vmem>>, vector<1x1x512xf32>,
    %c0_52 = arith.constant 0 : index
    %c1024 = arith.constant 1024 : index
    %112 = vector.load %arg1[%c0_52, %c1024] : memref<2x3072xf32, #tpu.memory_space<vmem>>, vector<2x512xf32>
    %113 = vector.extract_strided_slice %0 {offsets = [0, 0], sizes = [32, 1], strides = [1, 1]} : vector<32x2xf32> to vector<32x1xf32>
    %114 = vector.extract_strided_slice %112 {offsets = [0, 0], sizes = [1, 512], strides = [1, 1]} : vector<2x512xf32> to vector<1x512xf32>
    %115 = vector.broadcast %113 : vector<32x1xf32> to vector<32x512xf32>
    %116 = vector.broadcast %114 : vector<1x512xf32> to vector<32x512xf32>
    %117 = arith.mulf %115, %116 : vector<32x512xf32>
    %118 = vector.broadcast %1 : vector<32x1xf32> to vector<32x512xf32>
    %119 = arith.addf %118, %117 : vector<32x512xf32>
    %120 = vector.extract_strided_slice %0 {offsets = [0, 1], sizes = [32, 1], strides = [1, 1]} : vector<32x2xf32> to vector<32x1xf32>
    %121 = vector.extract_strided_slice %112 {offsets = [1, 0], sizes = [1, 512], strides = [1, 1]} : vector<2x512xf32> to vector<1x512xf32>
    %122 = vector.broadcast %120 : vector<32x1xf32> to vector<32x512xf32>
    %123 = vector.broadcast %121 : vector<1x512xf32> to vector<32x512xf32>
    %124 = arith.mulf %122, %123 : vector<32x512xf32>
    %125 = arith.addf %119, %124 : vector<32x512xf32>
    %cst_53 = arith.constant 0.000000e+00 : f32
    %126 = vector.broadcast %cst_53 : f32 to vector<32x512xf32>
    %127 = arith.maximumf %125, %126 : vector<32x512xf32>
    %cst_54 = arith.constant dense<0.000000e+00> : vector<32x512xf32>
    %128 = tpu.matmul %5, %127, %cst_54 {dimension_numbers = #tpu.dot_dimension_numbers<[1], [0], [0], [1], [0, 0, 1, 1], [], []>} : vector<32x32xf32>, vector<32x512xf32>, vector<32x512xf32> -> vector<32x512xf32>
    %129 = vector.broadcast %11 : vector<32x1xf32> to vector<32x512xf32>
    %130 = arith.addf %128, %129 : vector<32x512xf32>
    %cst_55 = arith.constant 0.000000e+00 : f32
    %131 = vector.broadcast %cst_55 : f32 to vector<32x512xf32>
    %132 = arith.maximumf %130, %131 : vector<32x512xf32>
    %cst_56 = arith.constant dense<0.000000e+00> : vector<32x512xf32>
    %133 = tpu.matmul %7, %132, %cst_56 {dimension_numbers = #tpu.dot_dimension_numbers<[1], [0], [0], [1], [0, 0, 1, 1], [], []>} : vector<32x32xf32>, vector<32x512xf32>, vector<32x512xf32> -> vector<32x512xf32>
    %134 = vector.broadcast %13 : vector<32x1xf32> to vector<32x512xf32>
    %135 = arith.addf %133, %134 : vector<32x512xf32>
    %cst_57 = arith.constant 0.000000e+00 : f32
    %136 = vector.broadcast %cst_57 : f32 to vector<32x512xf32>
    %137 = arith.maximumf %135, %136 : vector<32x512xf32>
    %cst_58 = arith.constant dense<0.000000e+00> : vector<32x512xf32>
    %138 = tpu.matmul %9, %137, %cst_58 {dimension_numbers = #tpu.dot_dimension_numbers<[1], [0], [0], [1], [0, 0, 1, 1], [], []>} : vector<32x32xf32>, vector<32x512xf32>, vector<32x512xf32> -> vector<32x512xf32>
    %139 = vector.broadcast %15 : vector<32x1xf32> to vector<32x512xf32>
    %140 = arith.addf %138, %139 : vector<32x512xf32>
    %cst_59 = arith.constant 0.000000e+00 : f32
    %141 = vector.broadcast %cst_59 : f32 to vector<32x512xf32>
    %142 = arith.maximumf %140, %141 : vector<32x512xf32>
    %143 = vector.broadcast %2 : vector<32x1xf32> to vector<32x512xf32>
    %144 = arith.mulf %143, %142 : vector<32x512xf32>
    %cst_60 = arith.constant dense<0.000000e+00> : vector<512xf32>
    %145 = vector.multi_reduction <add>, %144, %cst_60 [0] : vector<32x512xf32> to vector<512xf32>
    %146 = vector.shape_cast %145 : vector<512xf32> to vector<1x512xf32>
    %147 = vector.broadcast %3 : f32 to vector<1x512xf32>
    %148 = arith.addf %146, %147 : vector<1x512xf32>
    %149 = arith.negf %148 : vector<1x512xf32>
    %150 = math.exp %149 : vector<1x512xf32>
    %cst_61 = arith.constant 1.000000e+00 : f32
    %151 = vector.broadcast %cst_61 : f32 to vector<1x512xf32>
    %152 = arith.addf %151, %150 : vector<1x512xf32>
    %153 = arith.divf %151, %152 : vector<1x512xf32>
    %cst_62 = arith.constant 9.950000e-01 : f32
    %154 = vector.broadcast %cst_62 : f32 to vector<1x512xf32>
    %155 = arith.mulf %153, %154 : vector<1x512xf32>
    %cst_63 = arith.constant 5.000000e-03 : f32
    %156 = vector.broadcast %cst_63 : f32 to vector<1x512xf32>
    %157 = arith.addf %155, %156 : vector<1x512xf32>
    %158 = vector.shape_cast %157 : vector<1x512xf32> to vector<1x1x512xf32>
    %c0_64 = arith.constant 0 : index
    %c2_65 = arith.constant 2 : index
    %c0_66 = arith.constant 0 : index
    %159 = vector.load %arg8[%c0_64, %c2_65, %c0_66] : memref<1x6x512xf32, #tpu.memory_space<vmem>>, vector<1x1x512xf32>
    tpu.vector_store %arg8[%c0_64, %c2_65, %c0_66], %158 {strides = array<i32>} : memref<1x6x512xf32, #tpu.memory_space<vmem>>, vector<1x1x512xf32>,
    %c0_67 = arith.constant 0 : index
    %c1536 = arith.constant 1536 : index
    %160 = vector.load %arg1[%c0_67, %c1536] : memref<2x3072xf32, #tpu.memory_space<vmem>>, vector<2x512xf32>
    %161 = vector.extract_strided_slice %0 {offsets = [0, 0], sizes = [32, 1], strides = [1, 1]} : vector<32x2xf32> to vector<32x1xf32>
    %162 = vector.extract_strided_slice %160 {offsets = [0, 0], sizes = [1, 512], strides = [1, 1]} : vector<2x512xf32> to vector<1x512xf32>
    %163 = vector.broadcast %161 : vector<32x1xf32> to vector<32x512xf32>
    %164 = vector.broadcast %162 : vector<1x512xf32> to vector<32x512xf32>
    %165 = arith.mulf %163, %164 : vector<32x512xf32>
    %166 = vector.broadcast %1 : vector<32x1xf32> to vector<32x512xf32>
    %167 = arith.addf %166, %165 : vector<32x512xf32>
    %168 = vector.extract_strided_slice %0 {offsets = [0, 1], sizes = [32, 1], strides = [1, 1]} : vector<32x2xf32> to vector<32x1xf32>
    %169 = vector.extract_strided_slice %160 {offsets = [1, 0], sizes = [1, 512], strides = [1, 1]} : vector<2x512xf32> to vector<1x512xf32>
    %170 = vector.broadcast %168 : vector<32x1xf32> to vector<32x512xf32>
    %171 = vector.broadcast %169 : vector<1x512xf32> to vector<32x512xf32>
    %172 = arith.mulf %170, %171 : vector<32x512xf32>
    %173 = arith.addf %167, %172 : vector<32x512xf32>
    %cst_68 = arith.constant 0.000000e+00 : f32
    %174 = vector.broadcast %cst_68 : f32 to vector<32x512xf32>
    %175 = arith.maximumf %173, %174 : vector<32x512xf32>
    %cst_69 = arith.constant dense<0.000000e+00> : vector<32x512xf32>
    %176 = tpu.matmul %5, %175, %cst_69 {dimension_numbers = #tpu.dot_dimension_numbers<[1], [0], [0], [1], [0, 0, 1, 1], [], []>} : vector<32x32xf32>, vector<32x512xf32>, vector<32x512xf32> -> vector<32x512xf32>
    %177 = vector.broadcast %11 : vector<32x1xf32> to vector<32x512xf32>
    %178 = arith.addf %176, %177 : vector<32x512xf32>
    %cst_70 = arith.constant 0.000000e+00 : f32
    %179 = vector.broadcast %cst_70 : f32 to vector<32x512xf32>
    %180 = arith.maximumf %178, %179 : vector<32x512xf32>
    %cst_71 = arith.constant dense<0.000000e+00> : vector<32x512xf32>
    %181 = tpu.matmul %7, %180, %cst_71 {dimension_numbers = #tpu.dot_dimension_numbers<[1], [0], [0], [1], [0, 0, 1, 1], [], []>} : vector<32x32xf32>, vector<32x512xf32>, vector<32x512xf32> -> vector<32x512xf32>
    %182 = vector.broadcast %13 : vector<32x1xf32> to vector<32x512xf32>
    %183 = arith.addf %181, %182 : vector<32x512xf32>
    %cst_72 = arith.constant 0.000000e+00 : f32
    %184 = vector.broadcast %cst_72 : f32 to vector<32x512xf32>
    %185 = arith.maximumf %183, %184 : vector<32x512xf32>
    %cst_73 = arith.constant dense<0.000000e+00> : vector<32x512xf32>
    %186 = tpu.matmul %9, %185, %cst_73 {dimension_numbers = #tpu.dot_dimension_numbers<[1], [0], [0], [1], [0, 0, 1, 1], [], []>} : vector<32x32xf32>, vector<32x512xf32>, vector<32x512xf32> -> vector<32x512xf32>
    %187 = vector.broadcast %15 : vector<32x1xf32> to vector<32x512xf32>
    %188 = arith.addf %186, %187 : vector<32x512xf32>
    %cst_74 = arith.constant 0.000000e+00 : f32
    %189 = vector.broadcast %cst_74 : f32 to vector<32x512xf32>
    %190 = arith.maximumf %188, %189 : vector<32x512xf32>
    %191 = vector.broadcast %2 : vector<32x1xf32> to vector<32x512xf32>
    %192 = arith.mulf %191, %190 : vector<32x512xf32>
    %cst_75 = arith.constant dense<0.000000e+00> : vector<512xf32>
    %193 = vector.multi_reduction <add>, %192, %cst_75 [0] : vector<32x512xf32> to vector<512xf32>
    %194 = vector.shape_cast %193 : vector<512xf32> to vector<1x512xf32>
    %195 = vector.broadcast %3 : f32 to vector<1x512xf32>
    %196 = arith.addf %194, %195 : vector<1x512xf32>
    %197 = arith.negf %196 : vector<1x512xf32>
    %198 = math.exp %197 : vector<1x512xf32>
    %cst_76 = arith.constant 1.000000e+00 : f32
    %199 = vector.broadcast %cst_76 : f32 to vector<1x512xf32>
    %200 = arith.addf %199, %198 : vector<1x512xf32>
    %201 = arith.divf %199, %200 : vector<1x512xf32>
    %cst_77 = arith.constant 9.950000e-01 : f32
    %202 = vector.broadcast %cst_77 : f32 to vector<1x512xf32>
    %203 = arith.mulf %201, %202 : vector<1x512xf32>
    %cst_78 = arith.constant 5.000000e-03 : f32
    %204 = vector.broadcast %cst_78 : f32 to vector<1x512xf32>
    %205 = arith.addf %203, %204 : vector<1x512xf32>
    %206 = vector.shape_cast %205 : vector<1x512xf32> to vector<1x1x512xf32>
    %c0_79 = arith.constant 0 : index
    %c3 = arith.constant 3 : index
    %c0_80 = arith.constant 0 : index
    %207 = vector.load %arg8[%c0_79, %c3, %c0_80] : memref<1x6x512xf32, #tpu.memory_space<vmem>>, vector<1x1x512xf32>
    tpu.vector_store %arg8[%c0_79, %c3, %c0_80], %206 {strides = array<i32>} : memref<1x6x512xf32, #tpu.memory_space<vmem>>, vector<1x1x512xf32>,
    %c0_81 = arith.constant 0 : index
    %c2048 = arith.constant 2048 : index
    %208 = vector.load %arg1[%c0_81, %c2048] : memref<2x3072xf32, #tpu.memory_space<vmem>>, vector<2x512xf32>
    %209 = vector.extract_strided_slice %0 {offsets = [0, 0], sizes = [32, 1], strides = [1, 1]} : vector<32x2xf32> to vector<32x1xf32>
    %210 = vector.extract_strided_slice %208 {offsets = [0, 0], sizes = [1, 512], strides = [1, 1]} : vector<2x512xf32> to vector<1x512xf32>
    %211 = vector.broadcast %209 : vector<32x1xf32> to vector<32x512xf32>
    %212 = vector.broadcast %210 : vector<1x512xf32> to vector<32x512xf32>
    %213 = arith.mulf %211, %212 : vector<32x512xf32>
    %214 = vector.broadcast %1 : vector<32x1xf32> to vector<32x512xf32>
    %215 = arith.addf %214, %213 : vector<32x512xf32>
    %216 = vector.extract_strided_slice %0 {offsets = [0, 1], sizes = [32, 1], strides = [1, 1]} : vector<32x2xf32> to vector<32x1xf32>
    %217 = vector.extract_strided_slice %208 {offsets = [1, 0], sizes = [1, 512], strides = [1, 1]} : vector<2x512xf32> to vector<1x512xf32>
    %218 = vector.broadcast %216 : vector<32x1xf32> to vector<32x512xf32>
    %219 = vector.broadcast %217 : vector<1x512xf32> to vector<32x512xf32>
    %220 = arith.mulf %218, %219 : vector<32x512xf32>
    %221 = arith.addf %215, %220 : vector<32x512xf32>
    %cst_82 = arith.constant 0.000000e+00 : f32
    %222 = vector.broadcast %cst_82 : f32 to vector<32x512xf32>
    %223 = arith.maximumf %221, %222 : vector<32x512xf32>
    %cst_83 = arith.constant dense<0.000000e+00> : vector<32x512xf32>
    %224 = tpu.matmul %5, %223, %cst_83 {dimension_numbers = #tpu.dot_dimension_numbers<[1], [0], [0], [1], [0, 0, 1, 1], [], []>} : vector<32x32xf32>, vector<32x512xf32>, vector<32x512xf32> -> vector<32x512xf32>
    %225 = vector.broadcast %11 : vector<32x1xf32> to vector<32x512xf32>
    %226 = arith.addf %224, %225 : vector<32x512xf32>
    %cst_84 = arith.constant 0.000000e+00 : f32
    %227 = vector.broadcast %cst_84 : f32 to vector<32x512xf32>
    %228 = arith.maximumf %226, %227 : vector<32x512xf32>
    %cst_85 = arith.constant dense<0.000000e+00> : vector<32x512xf32>
    %229 = tpu.matmul %7, %228, %cst_85 {dimension_numbers = #tpu.dot_dimension_numbers<[1], [0], [0], [1], [0, 0, 1, 1], [], []>} : vector<32x32xf32>, vector<32x512xf32>, vector<32x512xf32> -> vector<32x512xf32>
    %230 = vector.broadcast %13 : vector<32x1xf32> to vector<32x512xf32>
    %231 = arith.addf %229, %230 : vector<32x512xf32>
    %cst_86 = arith.constant 0.000000e+00 : f32
    %232 = vector.broadcast %cst_86 : f32 to vector<32x512xf32>
    %233 = arith.maximumf %231, %232 : vector<32x512xf32>
    %cst_87 = arith.constant dense<0.000000e+00> : vector<32x512xf32>
    %234 = tpu.matmul %9, %233, %cst_87 {dimension_numbers = #tpu.dot_dimension_numbers<[1], [0], [0], [1], [0, 0, 1, 1], [], []>} : vector<32x32xf32>, vector<32x512xf32>, vector<32x512xf32> -> vector<32x512xf32>
    %235 = vector.broadcast %15 : vector<32x1xf32> to vector<32x512xf32>
    %236 = arith.addf %234, %235 : vector<32x512xf32>
    %cst_88 = arith.constant 0.000000e+00 : f32
    %237 = vector.broadcast %cst_88 : f32 to vector<32x512xf32>
    %238 = arith.maximumf %236, %237 : vector<32x512xf32>
    %239 = vector.broadcast %2 : vector<32x1xf32> to vector<32x512xf32>
    %240 = arith.mulf %239, %238 : vector<32x512xf32>
    %cst_89 = arith.constant dense<0.000000e+00> : vector<512xf32>
    %241 = vector.multi_reduction <add>, %240, %cst_89 [0] : vector<32x512xf32> to vector<512xf32>
    %242 = vector.shape_cast %241 : vector<512xf32> to vector<1x512xf32>
    %243 = vector.broadcast %3 : f32 to vector<1x512xf32>
    %244 = arith.addf %242, %243 : vector<1x512xf32>
    %245 = arith.negf %244 : vector<1x512xf32>
    %246 = math.exp %245 : vector<1x512xf32>
    %cst_90 = arith.constant 1.000000e+00 : f32
    %247 = vector.broadcast %cst_90 : f32 to vector<1x512xf32>
    %248 = arith.addf %247, %246 : vector<1x512xf32>
    %249 = arith.divf %247, %248 : vector<1x512xf32>
    %cst_91 = arith.constant 9.950000e-01 : f32
    %250 = vector.broadcast %cst_91 : f32 to vector<1x512xf32>
    %251 = arith.mulf %249, %250 : vector<1x512xf32>
    %cst_92 = arith.constant 5.000000e-03 : f32
    %252 = vector.broadcast %cst_92 : f32 to vector<1x512xf32>
    %253 = arith.addf %251, %252 : vector<1x512xf32>
    %254 = vector.shape_cast %253 : vector<1x512xf32> to vector<1x1x512xf32>
    %c0_93 = arith.constant 0 : index
    %c4 = arith.constant 4 : index
    %c0_94 = arith.constant 0 : index
    %255 = vector.load %arg8[%c0_93, %c4, %c0_94] : memref<1x6x512xf32, #tpu.memory_space<vmem>>, vector<1x1x512xf32>
    tpu.vector_store %arg8[%c0_93, %c4, %c0_94], %254 {strides = array<i32>} : memref<1x6x512xf32, #tpu.memory_space<vmem>>, vector<1x1x512xf32>,
    %c0_95 = arith.constant 0 : index
    %c2560 = arith.constant 2560 : index
    %256 = vector.load %arg1[%c0_95, %c2560] : memref<2x3072xf32, #tpu.memory_space<vmem>>, vector<2x512xf32>
    %257 = vector.extract_strided_slice %0 {offsets = [0, 0], sizes = [32, 1], strides = [1, 1]} : vector<32x2xf32> to vector<32x1xf32>
    %258 = vector.extract_strided_slice %256 {offsets = [0, 0], sizes = [1, 512], strides = [1, 1]} : vector<2x512xf32> to vector<1x512xf32>
    %259 = vector.broadcast %257 : vector<32x1xf32> to vector<32x512xf32>
    %260 = vector.broadcast %258 : vector<1x512xf32> to vector<32x512xf32>
    %261 = arith.mulf %259, %260 : vector<32x512xf32>
    %262 = vector.broadcast %1 : vector<32x1xf32> to vector<32x512xf32>
    %263 = arith.addf %262, %261 : vector<32x512xf32>
    %264 = vector.extract_strided_slice %0 {offsets = [0, 1], sizes = [32, 1], strides = [1, 1]} : vector<32x2xf32> to vector<32x1xf32>
    %265 = vector.extract_strided_slice %256 {offsets = [1, 0], sizes = [1, 512], strides = [1, 1]} : vector<2x512xf32> to vector<1x512xf32>
    %266 = vector.broadcast %264 : vector<32x1xf32> to vector<32x512xf32>
    %267 = vector.broadcast %265 : vector<1x512xf32> to vector<32x512xf32>
    %268 = arith.mulf %266, %267 : vector<32x512xf32>
    %269 = arith.addf %263, %268 : vector<32x512xf32>
    %cst_96 = arith.constant 0.000000e+00 : f32
    %270 = vector.broadcast %cst_96 : f32 to vector<32x512xf32>
    %271 = arith.maximumf %269, %270 : vector<32x512xf32>
    %cst_97 = arith.constant dense<0.000000e+00> : vector<32x512xf32>
    %272 = tpu.matmul %5, %271, %cst_97 {dimension_numbers = #tpu.dot_dimension_numbers<[1], [0], [0], [1], [0, 0, 1, 1], [], []>} : vector<32x32xf32>, vector<32x512xf32>, vector<32x512xf32> -> vector<32x512xf32>
    %273 = vector.broadcast %11 : vector<32x1xf32> to vector<32x512xf32>
    %274 = arith.addf %272, %273 : vector<32x512xf32>
    %cst_98 = arith.constant 0.000000e+00 : f32
    %275 = vector.broadcast %cst_98 : f32 to vector<32x512xf32>
    %276 = arith.maximumf %274, %275 : vector<32x512xf32>
    %cst_99 = arith.constant dense<0.000000e+00> : vector<32x512xf32>
    %277 = tpu.matmul %7, %276, %cst_99 {dimension_numbers = #tpu.dot_dimension_numbers<[1], [0], [0], [1], [0, 0, 1, 1], [], []>} : vector<32x32xf32>, vector<32x512xf32>, vector<32x512xf32> -> vector<32x512xf32>
    %278 = vector.broadcast %13 : vector<32x1xf32> to vector<32x512xf32>
    %279 = arith.addf %277, %278 : vector<32x512xf32>
    %cst_100 = arith.constant 0.000000e+00 : f32
    %280 = vector.broadcast %cst_100 : f32 to vector<32x512xf32>
    %281 = arith.maximumf %279, %280 : vector<32x512xf32>
    %cst_101 = arith.constant dense<0.000000e+00> : vector<32x512xf32>
    %282 = tpu.matmul %9, %281, %cst_101 {dimension_numbers = #tpu.dot_dimension_numbers<[1], [0], [0], [1], [0, 0, 1, 1], [], []>} : vector<32x32xf32>, vector<32x512xf32>, vector<32x512xf32> -> vector<32x512xf32>
    %283 = vector.broadcast %15 : vector<32x1xf32> to vector<32x512xf32>
    %284 = arith.addf %282, %283 : vector<32x512xf32>
    %cst_102 = arith.constant 0.000000e+00 : f32
    %285 = vector.broadcast %cst_102 : f32 to vector<32x512xf32>
    %286 = arith.maximumf %284, %285 : vector<32x512xf32>
    %287 = vector.broadcast %2 : vector<32x1xf32> to vector<32x512xf32>
    %288 = arith.mulf %287, %286 : vector<32x512xf32>
    %cst_103 = arith.constant dense<0.000000e+00> : vector<512xf32>
    %289 = vector.multi_reduction <add>, %288, %cst_103 [0] : vector<32x512xf32> to vector<512xf32>
    %290 = vector.shape_cast %289 : vector<512xf32> to vector<1x512xf32>
    %291 = vector.broadcast %3 : f32 to vector<1x512xf32>
    %292 = arith.addf %290, %291 : vector<1x512xf32>
    %293 = arith.negf %292 : vector<1x512xf32>
    %294 = math.exp %293 : vector<1x512xf32>
    %cst_104 = arith.constant 1.000000e+00 : f32
    %295 = vector.broadcast %cst_104 : f32 to vector<1x512xf32>
    %296 = arith.addf %295, %294 : vector<1x512xf32>
    %297 = arith.divf %295, %296 : vector<1x512xf32>
    %cst_105 = arith.constant 9.950000e-01 : f32
    %298 = vector.broadcast %cst_105 : f32 to vector<1x512xf32>
    %299 = arith.mulf %297, %298 : vector<1x512xf32>
    %cst_106 = arith.constant 5.000000e-03 : f32
    %300 = vector.broadcast %cst_106 : f32 to vector<1x512xf32>
    %301 = arith.addf %299, %300 : vector<1x512xf32>
    %302 = vector.shape_cast %301 : vector<1x512xf32> to vector<1x1x512xf32>
    %c0_107 = arith.constant 0 : index
    %c5 = arith.constant 5 : index
    %c0_108 = arith.constant 0 : index
    %303 = vector.load %arg8[%c0_107, %c5, %c0_108] : memref<1x6x512xf32, #tpu.memory_space<vmem>>, vector<1x1x512xf32>
    tpu.vector_store %arg8[%c0_107, %c5, %c0_108], %302 {strides = array<i32>} : memref<1x6x512xf32, #tpu.memory_space<vmem>>, vector<1x1x512xf32>,
    return
  }
  func.func @transform_0(%arg0: i32) -> (i32, i32) {
    %c0_i32 = arith.constant 0 : i32
    %c0_i32_0 = arith.constant 0 : i32
    return %c0_i32, %arg0 : i32, i32
  }
  func.func @transform_1(%arg0: i32) -> (i32, i32) {
    %c0_i32 = arith.constant 0 : i32
    %c0_i32_0 = arith.constant 0 : i32
    %c0_i32_1 = arith.constant 0 : i32
    return %c0_i32, %c0_i32_0 : i32, i32
  }
  func.func @transform_2(%arg0: i32) -> (i32, i32) {
    %c0_i32 = arith.constant 0 : i32
    %c0_i32_0 = arith.constant 0 : i32
    %c0_i32_1 = arith.constant 0 : i32
    return %c0_i32, %c0_i32_0 : i32, i32
  }
  func.func @transform_3(%arg0: i32) -> (i32, i32, i32) {
    %c0_i32 = arith.constant 0 : i32
    %c0_i32_0 = arith.constant 0 : i32
    %c0_i32_1 = arith.constant 0 : i32
    %c0_i32_2 = arith.constant 0 : i32
    return %c0_i32, %c0_i32_0, %c0_i32_1 : i32, i32, i32
  }
  func.func @transform_4(%arg0: i32) -> (i32, i32, i32) {
    %c0_i32 = arith.constant 0 : i32
    %c0_i32_0 = arith.constant 0 : i32
    %c0_i32_1 = arith.constant 0 : i32
    %c0_i32_2 = arith.constant 0 : i32
    return %c0_i32, %c0_i32_0, %c0_i32_1 : i32, i32, i32
  }
  func.func @transform_5(%arg0: i32) -> (i32, i32) {
    %c0_i32 = arith.constant 0 : i32
    %c0_i32_0 = arith.constant 0 : i32
    %c0_i32_1 = arith.constant 0 : i32
    return %c0_i32, %c0_i32_0 : i32, i32
  }
  func.func @transform_6(%arg0: i32) -> i32 {
    %c0_i32 = arith.constant 0 : i32
    %c0_i32_0 = arith.constant 0 : i32
    return %c0_i32 : i32
  }
  func.func @transform_7(%arg0: i32) -> (i32, i32, i32) {
    %c0_i32 = arith.constant 0 : i32
    %c0_i32_0 = arith.constant 0 : i32
    %c0_i32_1 = arith.constant 0 : i32
    return %arg0, %c0_i32, %c0_i32_0 : i32, i32, i32
  }
}

</mosaic_0001>

<bundles_post_ra>
// kernel: tpu_custom_call.1
= control target key start
LH: loop header
LB: loop body
LE: loop exit
PB: predicated region body
PF: predicated region fallthrough
CT: control target
= control target key end

     0   :  { %s6374_s26 = smov 0   ;;  %s8409_s0 = inlined_call_operand.vmem [shape: f32[2,6144], index: 0, kind: input, shape index: {}]   ;;  %s8410_s1 = inlined_call_operand.vmem [shape: f32[32,2], index: 1, kind: input, shape index: {}]   ;;  %s8411_s2 = inlined_call_operand.vmem [shape: f32[32,1], index: 2, kind: input, shape index: {}]   ;;  %s8412_s3 = inlined_call_operand.vmem [shape: f32[3,32,32], index: 3, kind: input, shape index: {}]   ;;  %s8413_s4 = inlined_call_operand.vmem [shape: f32[3,32,1], index: 4, kind: input, shape index: {}]   ;;  %s8414_s5 = inlined_call_operand.vmem [shape: f32[32,1], index: 5, kind: input, shape index: {}]   ;;  %s8415_s6 = inlined_call_operand.<no memory space> [shape: f32[1], index: 6, kind: input, shape index: {}]   ;;  %s8416_s7 = inlined_call_operand.vmem [shape: f32[2,6,512], index: 7, kind: output, shape index: {}]  }
   0x1   :  { %12 = sst [smem:[#allocation2]] %s8415_s6 }
   0x2 LB: > { %s6380_s27 = sadd.s32 4294967295, %s6325_s26   ;;  %p5695_p0 = scmp.ge.s32.totalorder %s6325_s26, 1  ;;  %s6325_s26 = sphi %s6374_s26, %s18_s26  }
   0x3   : > { %p239_p1 = scmp.lt.s32.totalorder %s6325_s26, 3 }
   0x5   : > { %p240_p2 = pnand %p5695_p0, %p239_p1 }
   0x7   : > { %243 = sbr.rel (%p240_p2) target bundleno = 3381 (0xd35), region = 48 }
   0xe   : > { %v286_v0 = vld [vmem:[%s8411_s2] sm:$0xff]  ;;  %v6327_v2 = vmov 0   ;;  %v287_v3 = vld [vmem:[%s8411_s2 + $0x8] sm:$0xff]  ;;  %v285_v5 = vld [vmem:[%s8410_s1 + $0x18] sm:$0xff]  ;;  %v6328_v6 = vmov 1   ;;  %v8418_v10 = vmov 0.0   ;;  %v8417_v27 = vlaneseq }
   0xf   : > { %v282_v1 = vld [vmem:[%s8410_s1] sm:$0xff]  ;;  %6192 = vset.pattern.permute.xlu1 %v6327_v2  ;;  %6191 = vset.pattern.permute.xlu0 %v6327_v2  ;;  %v283_v4 = vld [vmem:[%s8410_s1 + $0x8] sm:$0xff]  ;;  %v284_v7 = vld [vmem:[%s8410_s1 + $0x10] sm:$0xff]  ;;  %s271_s8 = smul.u32 24, %s6380_s27  ;;  %vm553_vm0 = vcmask 261120   ;;  %s294_s16 = sld [smem:[#allocation2]] }
  0x10   : > { %399 = vperm.xlu1 %6192, %v286_v0   ;;  %326 = vperm.xlu0 %6191, %v282_v1   ;;  %v288_v8 = vld [vmem:[%s8411_s2 + $0x10] sm:$0xff]  ;;  %v289_v9 = vld [vmem:[%s8411_s2 + $0x18] sm:$0xff]  ;;  %v309_v11 = vld [vmem:[%s8413_s4] sm:$0xff]  ;;  %v6460_v28 = vshrl.u32 %v8417_v27, 7  ;;  %p277_p4 = scmp.lt.s32.totalorder %s6380_s27, 1 }
  0x11   : > { %630 = vmatprep.mubr.f32.mxu0 %v8418_v10  ;;  %719 = vmatprep.mubr.f32.mxu1 %v8418_v10  ;;  %v310_v12 = vld [vmem:[%s8413_s4 + $0x8] sm:$0xff]  ;;  %v311_v13 = vld [vmem:[%s8413_s4 + $0x10] sm:$0xff]  ;;  %v5707_v14 = vld [vmem:[%s8413_s4 + $0x20] sm:$0xff]  ;;  %p272_p3 = scmp.lt.s32.totalorder %s271_s8, 47 }
  0x12   : > { %v312_v15 = vld [vmem:[%s8413_s4 + $0x18] sm:$0xff]  ;;  %v5709_v16 = vld [vmem:[%s8413_s4 + $0x30] sm:$0xff]  ;;  %v5708_v17 = vld [vmem:[%s8413_s4 + $0x28] sm:$0xff]  ;;  %v6468_v29 = vsub.s32 2, %v6460_v28  ;;  %v6472_v31 = vsub.s32 0, %v6460_v28  ;;  %v6475_v32 = vsub.s32 3, %v6460_v28 }
  0x13   : > { %v5711_v18 = vld [vmem:[%s8413_s4 + $0x40] sm:$0xff]  ;;  %v5710_v19 = vld [vmem:[%s8413_s4 + $0x38] sm:$0xff]  ;;  %v5713_v20 = vld [vmem:[%s8413_s4 + $0x50] sm:$0xff]  ;;  %s8700_s8 = smov (!%p272_p3, %s271_s8), 47  ;;  %v6478_v33 = vsub.s32 6, %v6460_v28  ;;  %v6481_v34 = vsub.s32 1, %v6460_v28 }
  0x14   : > { %404 = vperm.xlu1 %6192, %v287_v3   ;;  %331 = vperm.xlu0 %6191, %v283_v4   ;;  %v5712_v21 = vld [vmem:[%s8413_s4 + $0x48] sm:$0xff]  ;;  %v290_v22 = vld [vmem:[%s8414_s5] sm:$0xff]  ;;  %v5714_v23 = vld [vmem:[%s8413_s4 + $0x58] sm:$0xff]  ;;  %s5696_s9 = sshll.u32 %s8700_s8, 1  ;;  %8542 = vst [vmem:[#allocation3_spill] sm:$0xff] %v6468_v29  ;;  %v6484_v35 = vsub.s32 7, %v6460_v28 }
  0x15   : > { %v292_v24 = vld [vmem:[%s8414_s5 + $0x10] sm:$0xff]  ;;  %v291_v25 = vld [vmem:[%s8414_s5 + $0x8] sm:$0xff]  ;;  %v293_v26 = vld [vmem:[%s8414_s5 + $0x18] sm:$0xff]  ;;  %s6465_s12 = scalar_lea.vmem %s8409_s0, %s5696_s9  ;;  %8543 = vst [vmem:[#allocation4_spill] sm:$0xff] %v6472_v31  ;;  %v6487_v36 = vsub.s32 4, %v6460_v28  ;;  %v6490_v37 = vsub.s32 5, %v6460_v28 }
  0x16   : > { %v323_v30 = vld [vmem:[%s6465_s12] sm:$0xff]  ;;  %8544 = vst [vmem:[#allocation5_spill] sm:$0xff] %v6475_v32  ;;  %8545 = vst [vmem:[#allocation6_spill] sm:$0xff] %v6478_v33  ;;  %s8702_s27 = smov (!%p277_p4, %s6380_s27), 1 }
  0x17   : > { %8546 = vst [vmem:[#allocation7_spill] sm:$0xff] %v6481_v34  ;;  %8547 = vst [vmem:[#allocation8_spill] sm:$0xff] %v6484_v35  ;;  %v352_v38 = vrot.slane %v323_v30, %v6468_v29  ;;  %v456_v41 = vrot.slane %v323_v30, %v6475_v32  ;;  %v360_v42 = vrot.slane %v323_v30, %v6478_v33  ;;  %s5890_s17 = sshll.u32 %s8702_s27, 5 }
  0x18   : > { %6193 = vset.pattern.permute.xlu1 %v6328_v6  ;;  %341 = vperm.xlu0 %6191, %v285_v5   ;;  %8548 = vst [vmem:[#allocation9_spill] sm:$0xff] %v6487_v36  ;;  %8549 = vst [vmem:[#allocation10_spill] sm:$0xff] %v6490_v37  ;;  %v348_v43 = vrot.slane %v323_v30, %v6472_v31  ;;  %v464_v44 = vrot.slane %v323_v30, %v6484_v35  ;;  %s7071_s20 = scalar_lea.vmem %s8416_s7, %s5890_s17 }
  0x19   : > { %438 = vperm.xlu1 %6193, %v283_v4   ;;  %v452_v45 = vrot.slane %v323_v30, %v6481_v34  ;;  %v356_v46 = vrot.slane %v323_v30, %v6487_v36  ;;  %v460_v47 = vrot.slane %v323_v30, %v6490_v37  ;;  %v6505_v48 = vrot.slane %v352_v38, %v6472_v31 }
  0x1a   : > { %v6514_v52 = vrot.slane %v456_v41, %v6481_v34  ;;  %v6517_v53 = vrot.slane %v360_v42, %v6472_v31  ;;  %v6520_v54 = vrot.slane %v348_v43, %v6472_v31  ;;  %v6523_v55 = vrot.slane %v464_v44, %v6481_v34 }
  0x1b   : > { %v6526_v56 = vrot.slane %v452_v45, %v6481_v34  ;;  %v6529_v57 = vrot.slane %v356_v46, %v6472_v31  ;;  %v6532_v58 = vrot.slane %v460_v47, %v6481_v34 }
  0x1c   : > { %6195 = vset.pattern.permute.xlu0 %v6328_v6 }
  0x1d   : > { %6194 = vset.pattern.permute.xlu1 %v6327_v2  ;;  %434 = vperm.xlu0 %6195, %v282_v1  }
  0x1e   : > { %336 = vperm.xlu1 %6194, %v284_v7  }
  0x21   : > { %442 = vperm.xlu0 %6195, %v284_v7  }
  0x22   : > { %409 = vperm.xlu1 %6194, %v288_v8  }
  0x25   : > { %6198 = vset.pattern.permute.xlu0 %v6327_v2 }
  0x26   : > { %414 = vperm.xlu1 %6194, %v289_v9   ;;  %540 = vperm.xlu0 %6198, %v310_v12  }
  0x2a   : > { %6196 = vset.pattern.permute.xlu1 %v6328_v6  ;;  %762 = vperm.xlu0 %6198, %v5707_v14  }
  0x2b   : > { %446 = vperm.xlu1 %6196, %v285_v5  }
  0x2e   : > { %772 = vperm.xlu0 %6198, %v5709_v16  }
  0x2f   : > { %6197 = vset.pattern.permute.xlu1 %v6327_v2 }
  0x30   : > { %535 = vperm.xlu1 %6197, %v309_v11  }
  0x32   : > { %988 = vperm.xlu0 %6198, %v5711_v18  }
  0x34   : > { %545 = vperm.xlu1 %6197, %v311_v13  }
  0x36   : > { %998 = vperm.xlu0 %6198, %v5713_v20  }
  0x38   : > { %550 = vperm.xlu1 %6197, %v312_v15  }
  0x3a   : > { %1214 = vperm.xlu0 %6198, %v290_v22  }
  0x3c   : > { %767 = vperm.xlu1 %6197, %v5708_v17  }
  0x3e   : > { %1224 = vperm.xlu0 %6198, %v292_v24  }
  0x40   : > { %777 = vperm.xlu1 %6197, %v5710_v19  }
  0x44   : > { %993 = vperm.xlu1 %6197, %v5712_v21  }
  0x48   : > { %1003 = vperm.xlu1 %6197, %v5714_v23  }
  0x4c   : > { %1219 = vperm.xlu1 %6197, %v291_v25  }
  0x50   : > { %1229 = vperm.xlu1 %6197, %v293_v26  }
  0x8f   : > { %v6493_v39 = vpop.permute.xlu1 %399  ;;  %v6495_v40 = vpop.permute.xlu0 %326 }
  0x90   : > { %8550 = vst [vmem:[#allocation11_spill] sm:$0xff] %v6493_v39  ;;  %8551 = vst [vmem:[#allocation12_spill] sm:$0xff] %v6495_v40  ;;  %v382_v0 = vmul.f32 %v6505_v48, %v6495_v40  ;;  %v384_v2 = vmul.f32 %v6517_v53, %v6495_v40  ;;  %v381_v8 = vmul.f32 %v6520_v54, %v6495_v40 }
  0x91   : > { %v383_v11 = vmul.f32 %v6529_v57, %v6495_v40 }
  0x92   : > { %v418_v15 = vadd.f32 %v6493_v39, %v382_v0  ;;  %v420_v20 = vadd.f32 %v6493_v39, %v384_v2  ;;  %v417_v23 = vadd.f32 %v6493_v39, %v381_v8 }
  0x93   : > { %v6507_v49 = vpop.permute.xlu1 %404  ;;  %v6509_v50 = vpop.permute.xlu0 %331  ;;  %v419_v25 = vadd.f32 %v6493_v39, %v383_v11 }
  0x94   : > { %8552 = vst [vmem:[#allocation13_spill] sm:$0xff] %v6507_v49  ;;  %8553 = vst [vmem:[#allocation14_spill] sm:$0xff] %v6509_v50  ;;  %v386_v51 = vmul.f32 %v6505_v48, %v6509_v50  ;;  %v388_v59 = vmul.f32 %v6517_v53, %v6509_v50  ;;  %v385_v60 = vmul.f32 %v6520_v54, %v6509_v50 }
  0x95   : > { %v387_v62 = vmul.f32 %v6529_v57, %v6509_v50 }
  0x96   : > { %v422_v1 = vadd.f32 %v6507_v49, %v386_v51  ;;  %v424_v7 = vadd.f32 %v6507_v49, %v388_v59  ;;  %v421_v9 = vadd.f32 %v6507_v49, %v385_v60 }
  0x97   : > { %v6538_v61 = vpop.permute.xlu0 %341  ;;  %v423_v13 = vadd.f32 %v6507_v49, %v387_v62 }
  0x98   : > { %v6542_v63 = vpop.permute.xlu1 %438 }
  0x99   : > { %8554 = vst [vmem:[#allocation15_spill] sm:$0xff] %v6542_v63  ;;  %v490_v3 = vmul.f32 %v6514_v52, %v6542_v63  ;;  %v492_v4 = vmul.f32 %v6523_v55, %v6542_v63  ;;  %v489_v5 = vmul.f32 %v6526_v56, %v6542_v63  ;;  %v491_v6 = vmul.f32 %v6532_v58, %v6542_v63 }
  0x9b   : > { %v506_v12 = vadd.f32 %v490_v3, %v422_v1  ;;  %v508_v16 = vadd.f32 %v492_v4, %v424_v7  ;;  %v505_v17 = vadd.f32 %v489_v5, %v421_v9  ;;  %v507_v22 = vadd.f32 %v491_v6, %v423_v13 }
  0x9c   : > { %v6564_v14 = vpop.permute.xlu0 %434 }
  0x9d   : > { %8555 = vst [vmem:[#allocation16_spill] sm:$0xff] %v6564_v14  ;;  %v6567_v18 = vpop.permute.xlu1 %336  ;;  %v486_v19 = vmul.f32 %v6514_v52, %v6564_v14  ;;  %v488_v21 = vmul.f32 %v6523_v55, %v6564_v14  ;;  %v485_v24 = vmul.f32 %v6526_v56, %v6564_v14  ;;  %v487_v26 = vmul.f32 %v6532_v58, %v6564_v14 }
  0x9e   : > { %v522_v38 = vmax.f32 %v506_v12, 0.0  ;;  %v524_v43 = vmax.f32 %v508_v16, 0.0  ;;  %v521_v45 = vmax.f32 %v505_v17, 0.0  ;;  %v523_v60 = vmax.f32 %v507_v22, 0.0 }
  0x9f   : > { %v502_v30 = vadd.f32 %v486_v19, %v418_v15  ;;  %v504_v41 = vadd.f32 %v488_v21, %v420_v20  ;;  %v501_v44 = vadd.f32 %v485_v24, %v417_v23  ;;  %v503_v46 = vadd.f32 %v487_v26, %v419_v25 }
  0xa0   : > { %v6580_v42 = vpop.permute.xlu0 %442  ;;  %v390_v62 = vmul.f32 %v6505_v48, %v6567_v18  ;;  %v392_v2 = vmul.f32 %v6517_v53, %v6567_v18  ;;  %v389_v3 = vmul.f32 %v6520_v54, %v6567_v18  ;;  %v391_v7 = vmul.f32 %v6529_v57, %v6567_v18 }
  0xa1   : > { %v6582_v47 = vpop.permute.xlu1 %409  ;;  %v518_v51 = vmax.f32 %v502_v30, 0.0  ;;  %v520_v59 = vmax.f32 %v504_v41, 0.0  ;;  %v517_v0 = vmax.f32 %v501_v44, 0.0  ;;  %v519_v1 = vmax.f32 %v503_v46, 0.0 }
  0xa2   : > { %v494_v6 = vmul.f32 %v6514_v52, %v6580_v42  ;;  %v426_v11 = vadd.f32 %v6582_v47, %v390_v62  ;;  %v496_v12 = vmul.f32 %v6523_v55, %v6580_v42  ;;  %v428_v15 = vadd.f32 %v6582_v47, %v392_v2 }
  0xa3   : > { %v5891_v4 = vpack.c.bf16 %v522_v38, %v518_v51  ;;  %v5899_v5 = vpack.c.bf16 %v524_v43, %v520_v59  ;;  %v5893_v8 = vpack.c.bf16 %v521_v45, %v517_v0  ;;  %v5901_v9 = vpack.c.bf16 %v523_v60, %v519_v1 }
  0xa4   : > { %v425_v16 = vadd.f32 %v6582_v47, %v389_v3  ;;  %v493_v17 = vmul.f32 %v6526_v56, %v6580_v42  ;;  %v427_v19 = vadd.f32 %v6582_v47, %v391_v7  ;;  %v495_v20 = vmul.f32 %v6532_v58, %v6580_v42 }
  0xa5   : > { %v6597_v13 = vpop.permute.xlu1 %414  ;;  %5892 = vmatprep.subr.bf16.mxu0 %v5891_v4  ;;  %5900 = vmatprep.subr.bf16.mxu1 %v5899_v5  ;;  %v394_v21 = vmul.f32 %v6505_v48, %v6538_v61  ;;  %v396_v22 = vmul.f32 %v6517_v53, %v6538_v61  ;;  %v393_v23 = vmul.f32 %v6520_v54, %v6538_v61 }
  0xa6   : > { %5894 = vmatpush1.bf16.msra.mxu0 %v5893_v8  ;;  %5902 = vmatpush1.bf16.msra.mxu1 %v5901_v9  ;;  %v395_v24 = vmul.f32 %v6529_v57, %v6538_v61  ;;  %v510_v26 = vadd.f32 %v494_v6, %v426_v11  ;;  %v512_v30 = vadd.f32 %v496_v12, %v428_v15  ;;  %v6653_v11 = vld [vmem:[%s8412_s3 + $0x10] sm:$0xff]  ;;  %v6664_v12 = vld [vmem:[%s8412_s3 + $0x18] sm:$0xff] }
  0xa7   : > { %v430_v25 = vadd.f32 %v6597_v13, %v394_v21  ;;  %v509_v38 = vadd.f32 %v493_v17, %v425_v16  ;;  %v432_v43 = vadd.f32 %v6597_v13, %v396_v22  ;;  %v429_v48 = vadd.f32 %v6597_v13, %v393_v23  ;;  %v6676_v22 = vpop.permute.xlu0 %540 }
  0xa8   : > { %v431_v44 = vadd.f32 %v6597_v13, %v395_v24  ;;  %v511_v53 = vadd.f32 %v495_v20, %v427_v19  ;;  %v526_v0 = vmax.f32 %v510_v26, 0.0  ;;  %v528_v1 = vmax.f32 %v512_v30, 0.0  ;;  %8558 = vst [vmem:[#allocation19_spill] sm:$0xff] %v6676_v22 }
  0xa9   : > { %v525_v2 = vmax.f32 %v509_v38, 0.0 }
  0xaa   : > { %v6615_v41 = vpop.permute.xlu1 %446  ;;  %v527_v3 = vmax.f32 %v511_v53, 0.0 }
  0xab   : > { %v498_v54 = vmul.f32 %v6514_v52, %v6615_v41  ;;  %v500_v57 = vmul.f32 %v6523_v55, %v6615_v41  ;;  %v497_v45 = vmul.f32 %v6526_v56, %v6615_v41  ;;  %v499_v46 = vmul.f32 %v6532_v58, %v6615_v41  ;;  %v6631_v56 = vld [vmem:[%s8412_s3] sm:$0xff]  ;;  %v6642_v58 = vld [vmem:[%s8412_s3 + $0x8] sm:$0xff] }
  0xad   : > { %v514_v51 = vadd.f32 %v498_v54, %v430_v25  ;;  %v516_v59 = vadd.f32 %v500_v57, %v432_v43  ;;  %v513_v60 = vadd.f32 %v497_v45, %v429_v48  ;;  %v515_v62 = vadd.f32 %v499_v46, %v431_v44 }
  0xaf   : > { %v530_v4 = vmax.f32 %v514_v51, 0.0  ;;  %v532_v5 = vmax.f32 %v516_v59, 0.0  ;;  %v529_v52 = vmax.f32 %v513_v60, 0.0  ;;  %v531_v6 = vmax.f32 %v515_v62, 0.0  ;;  %v6672_v15 = vpop.permute.xlu1 %535 }
  0xb0   : > { %8556 = vst [vmem:[#allocation17_spill] sm:$0xff] %v6672_v15 }
  0xb1   : > { %v5895_v7 = vpack.c.bf16 %v530_v4, %v526_v0  ;;  %v5903_v55 = vpack.c.bf16 %v532_v5, %v528_v1  ;;  %v5897_v8 = vpack.c.bf16 %v529_v52, %v525_v2  ;;  %v5905_v9 = vpack.c.bf16 %v531_v6, %v527_v3 }
  0xb3   : > { %5896 = vmatprep.subr.bf16.mxu0 %v5895_v7  ;;  %5904 = vmatprep.subr.bf16.mxu1 %v5903_v55  ;;  %v6674_v21 = vpop.permute.xlu1 %545 }
  0xb4   : > { %5898 = vmatpush1.bf16.msra.mxu0 %v5897_v8  ;;  %5906 = vmatpush1.bf16.msra.mxu1 %v5905_v9  ;;  %8557 = vst [vmem:[#allocation18_spill] sm:$0xff] %v6674_v21 }
  0xb7   : > { %5715 = vmatmul.mubr.msk.f32.vlgmr.msra.gmra.mrb[0].mxu0 %vm553_vm0, %v6631_v56  ;;  %5719 = vmatmul.mubr.msk.f32.vlgmr.msra.gmra.mrb[0].mxu1 %vm553_vm0, %v6631_v56  ;;  %v6686_v8 = vpop.permute.xlu1 %550 }
  0xb8   : > { %636 = vmatprep.mubr.f32.mxu0 %v8418_v10  ;;  %725 = vmatprep.mubr.f32.mxu1 %v8418_v10  ;;  %8559 = vst [vmem:[#allocation20_spill] sm:$0xff] %v6686_v8 }
  0xbb   : > { %5716 = vmatmul.mubr.msk.f32.gmra.mrb[2].mxu0 %vm553_vm0, %v6642_v58  ;;  %5720 = vmatmul.mubr.msk.f32.gmra.mrb[2].mxu1 %vm553_vm0, %v6642_v58 }
  0xbc   : > { %642 = vmatprep.mubr.f32.mxu0 %v8418_v10  ;;  %731 = vmatprep.mubr.f32.mxu1 %v8418_v10 }
  0xbf   : > { %5717 = vmatmul.mubr.msk.f32.gmra.mrb[4].mxu0 %vm553_vm0, %v6653_v11  ;;  %5721 = vmatmul.mubr.msk.f32.gmra.mrb[4].mxu1 %vm553_vm0, %v6653_v11 }
  0xc0   : > { %648 = vmatprep.mubr.f32.mxu0 %v8418_v10  ;;  %737 = vmatprep.mubr.f32.mxu1 %v8418_v10 }
  0xc3   : > { %5718 = vmatmul.mubr.msk.f32.gmra.mrb[6].mxu0 %vm553_vm0, %v6664_v12  ;;  %5722 = vmatmul.mubr.msk.f32.gmra.mrb[6].mxu1 %vm553_vm0, %v6664_v12 }
  0xc4   : > { %856 = vmatprep.mubr.f32.mxu0 %v8418_v10  ;;  %945 = vmatprep.mubr.f32.mxu1 %v8418_v10 }
 0x18a   : > { %v632_v16 = vpop.f32.mrb[0].mxu0  ;;  %v721_v17 = vpop.f32.mrb[0].mxu1 }
 0x18b   : > { %v634_v19 = vpop.f32.mrb[1].mxu0  ;;  %v723_v20 = vpop.f32.mrb[1].mxu1  ;;  %v633_v23 = vadd.f32 %v632_v16, %v6672_v15  ;;  %v722_v24 = vadd.f32 %v721_v17, %v6672_v15 }
 0x18c   : > { %v635_v25 = vadd.f32 %v634_v19, %v6672_v15  ;;  %v724_v26 = vadd.f32 %v723_v20, %v6672_v15 }
 0x18d   : > { %v744_v45 = vmax.f32 %v633_v23, 0.0  ;;  %v746_v46 = vmax.f32 %v722_v24, 0.0 }
 0x18e   : > { %v638_v30 = vpop.f32.mrb[2].mxu0  ;;  %v727_v38 = vpop.f32.mrb[2].mxu1  ;;  %v745_v60 = vmax.f32 %v635_v25, 0.0  ;;  %v747_v62 = vmax.f32 %v724_v26, 0.0 }
 0x18f   : > { %v639_v43 = vadd.f32 %v638_v30, %v6676_v22  ;;  %v728_v48 = vadd.f32 %v727_v38, %v6676_v22  ;;  %v640_v44 = vpop.f32.mrb[3].mxu0  ;;  %v729_v53 = vpop.f32.mrb[3].mxu1 }
 0x190   : > { %v641_v54 = vadd.f32 %v640_v44, %v6676_v22  ;;  %v730_v57 = vadd.f32 %v729_v53, %v6676_v22 }
 0x191   : > { %v748_v51 = vmax.f32 %v639_v43, 0.0  ;;  %v750_v59 = vmax.f32 %v728_v48, 0.0 }
 0x192   : > { %v749_v0 = vmax.f32 %v641_v54, 0.0  ;;  %v751_v1 = vmax.f32 %v730_v57, 0.0  ;;  %v644_v2 = vpop.f32.mrb[4].mxu0  ;;  %v733_v3 = vpop.f32.mrb[4].mxu1 }
 0x193   : > { %v5909_v4 = vpack.c.bf16 %v748_v51, %v744_v45  ;;  %v5917_v5 = vpack.c.bf16 %v750_v59, %v746_v46  ;;  %v646_v52 = vpop.f32.mrb[5].mxu0  ;;  %v735_v6 = vpop.f32.mrb[5].mxu1  ;;  %v645_v9 = vadd.f32 %v644_v2, %v6674_v21  ;;  %v734_v16 = vadd.f32 %v733_v3, %v6674_v21  ;;  %v6710_v2 = vld [vmem:[%s8412_s3 + $0x28] sm:$0xff]  ;;  %v6721_v3 = vld [vmem:[%s8412_s3 + $0x30] sm:$0xff] }
 0x194   : > { %v5907_v7 = vpack.c.bf16 %v749_v0, %v745_v60  ;;  %v5915_v55 = vpack.c.bf16 %v751_v1, %v747_v62  ;;  %v647_v17 = vadd.f32 %v646_v52, %v6674_v21  ;;  %v736_v19 = vadd.f32 %v735_v6, %v6674_v21  ;;  %v6699_v1 = vld [vmem:[%s8412_s3 + $0x20] sm:$0xff] }
 0x195   : > { %v752_v48 = vmax.f32 %v645_v9, 0.0  ;;  %v754_v44 = vmax.f32 %v734_v16, 0.0 }
 0x196   : > { %v650_v20 = vpop.f32.mrb[6].mxu0  ;;  %v739_v23 = vpop.f32.mrb[6].mxu1  ;;  %5908 = vmatprep.subr.bf16.mxu0 %v5907_v7  ;;  %5916 = vmatprep.subr.bf16.mxu1 %v5915_v55  ;;  %v753_v57 = vmax.f32 %v647_v17, 0.0  ;;  %v755_v45 = vmax.f32 %v736_v19, 0.0 }
 0x197   : > { %v651_v24 = vadd.f32 %v650_v20, %v6686_v8  ;;  %v740_v25 = vadd.f32 %v739_v23, %v6686_v8  ;;  %v652_v26 = vpop.f32.mrb[7].mxu0  ;;  %v741_v30 = vpop.f32.mrb[7].mxu1  ;;  %5910 = vmatpush1.bf16.msra.mxu0 %v5909_v4  ;;  %5918 = vmatpush1.bf16.msra.mxu1 %v5917_v5  ;;  %v6732_v4 = vld [vmem:[%s8412_s3 + $0x38] sm:$0xff]  ;;  %v1356_v5 = vld [vmem:[%s6465_s12 + $0x8] sm:$0xff] }
 0x198   : > { %v653_v38 = vadd.f32 %v652_v26, %v6686_v8  ;;  %v742_v43 = vadd.f32 %v741_v30, %v6686_v8  ;;  %v1365_v52 = vrot.slane %v1356_v5, %v6468_v29  ;;  %v1433_v6 = vrot.slane %v1356_v5, %v6475_v32 }
 0x199   : > { %v756_v53 = vmax.f32 %v651_v24, 0.0  ;;  %v758_v54 = vmax.f32 %v740_v25, 0.0  ;;  %v1373_v7 = vrot.slane %v1356_v5, %v6478_v33  ;;  %v1441_v55 = vrot.slane %v1356_v5, %v6484_v35 }
 0x19a   : > { %v757_v46 = vmax.f32 %v653_v38, 0.0  ;;  %v759_v51 = vmax.f32 %v742_v43, 0.0  ;;  %v1361_v9 = vrot.slane %v1356_v5, %v6472_v31  ;;  %v1429_v16 = vrot.slane %v1356_v5, %v6481_v34 }
 0x19b   : > { %v5913_v59 = vpack.c.bf16 %v756_v53, %v752_v48  ;;  %v5921_v60 = vpack.c.bf16 %v758_v54, %v754_v44  ;;  %v1369_v17 = vrot.slane %v1356_v5, %v6487_v36  ;;  %v1437_v19 = vrot.slane %v1356_v5, %v6490_v37 }
 0x19c   : > { %v5911_v62 = vpack.c.bf16 %v757_v46, %v753_v57  ;;  %v5919_v0 = vpack.c.bf16 %v759_v51, %v755_v45  ;;  %v1385_v20 = vrot.slane %v1365_v52, %v6472_v31  ;;  %v1453_v23 = vrot.slane %v1433_v6, %v6481_v34 }
 0x19d   : > { %v1393_v24 = vrot.slane %v1373_v7, %v6472_v31  ;;  %v1461_v25 = vrot.slane %v1441_v55, %v6481_v34  ;;  %v6756_v38 = vrot.slane %v1361_v9, %v6472_v31  ;;  %v6759_v43 = vrot.slane %v1429_v16, %v6481_v34 }
 0x19e   : > { %5912 = vmatprep.subr.bf16.mxu0 %v5911_v62  ;;  %5920 = vmatprep.subr.bf16.mxu1 %v5919_v0  ;;  %v1399_v26 = vmul.f32 %v1385_v20, %v6509_v50  ;;  %v6762_v48 = vrot.slane %v1369_v17, %v6472_v31  ;;  %v6765_v44 = vrot.slane %v1437_v19, %v6481_v34 }
 0x19f   : > { %5914 = vmatpush1.bf16.msra.mxu0 %v5913_v59  ;;  %5922 = vmatpush1.bf16.msra.mxu1 %v5921_v60  ;;  %v1401_v30 = vmul.f32 %v1393_v24, %v6509_v50  ;;  %v1467_v53 = vmul.f32 %v1453_v23, %v6542_v63  ;;  %v1469_v54 = vmul.f32 %v1461_v25, %v6542_v63 }
 0x1a0   : > { %v1398_v57 = vmul.f32 %v6756_v38, %v6509_v50  ;;  %v1400_v45 = vmul.f32 %v6762_v48, %v6509_v50  ;;  %v1395_v46 = vmul.f32 %v1385_v20, %v6495_v40  ;;  %v1415_v51 = vadd.f32 %v1399_v26, %v6507_v49 }
 0x1a1   : > { %v1397_v59 = vmul.f32 %v1393_v24, %v6495_v40  ;;  %v1417_v60 = vadd.f32 %v1401_v30, %v6507_v49  ;;  %v1394_v62 = vmul.f32 %v6756_v38, %v6495_v40  ;;  %v1466_v0 = vmul.f32 %v6759_v43, %v6542_v63 }
 0x1a2   : > { %5723 = vmatmul.mubr.msk.f32.vlgmr.msra.gmra.mrb[8].mxu0 %vm553_vm0, %v6699_v1  ;;  %5727 = vmatmul.mubr.msk.f32.vlgmr.msra.gmra.mrb[8].mxu1 %vm553_vm0, %v6699_v1  ;;  %v1396_v5 = vmul.f32 %v6762_v48, %v6495_v40  ;;  %v1468_v52 = vmul.f32 %v6765_v44, %v6542_v63  ;;  %v6785_v6 = vadd.f32 %v1467_v53, %v1415_v51 }
 0x1a3   : > { %862 = vmatprep.mubr.f32.mxu0 %v8418_v10  ;;  %951 = vmatprep.mubr.f32.mxu1 %v8418_v10  ;;  %v6787_v7 = vadd.f32 %v1469_v54, %v1417_v60  ;;  %v1414_v55 = vadd.f32 %v1398_v57, %v6507_v49  ;;  %v1463_v9 = vmul.f32 %v1453_v23, %v6564_v14 }
 0x1a4   : > { %v1465_v16 = vmul.f32 %v1461_v25, %v6564_v14  ;;  %v1462_v17 = vmul.f32 %v6759_v43, %v6564_v14  ;;  %v1416_v19 = vadd.f32 %v1400_v45, %v6507_v49  ;;  %v1411_v26 = vadd.f32 %v1395_v46, %v6493_v39 }
 0x1a5   : > { %v1413_v30 = vadd.f32 %v1397_v59, %v6493_v39  ;;  %v1464_v53 = vmul.f32 %v6765_v44, %v6564_v14  ;;  %v1410_v54 = vadd.f32 %v1394_v62, %v6493_v39  ;;  %v6800_v51 = vadd.f32 %v1466_v0, %v1414_v55 }
 0x1a6   : > { %5724 = vmatmul.mubr.msk.f32.gmra.mrb[10].mxu0 %vm553_vm0, %v6710_v2  ;;  %5728 = vmatmul.mubr.msk.f32.gmra.mrb[10].mxu1 %vm553_vm0, %v6710_v2  ;;  %v1412_v57 = vadd.f32 %v1396_v5, %v6493_v39  ;;  %v6803_v60 = vadd.f32 %v1468_v52, %v1416_v19  ;;  %v1403_v46 = vmul.f32 %v1385_v20, %v6567_v18  ;;  %v6816_v52 = vpop.permute.xlu0 %762 }
 0x1a7   : > { %868 = vmatprep.mubr.f32.mxu0 %v8418_v10  ;;  %957 = vmatprep.mubr.f32.mxu1 %v8418_v10  ;;  %v1407_v59 = vmul.f32 %v1385_v20, %v6538_v61  ;;  %v6809_v14 = vadd.f32 %v1463_v9, %v1411_v26  ;;  %v6811_v62 = vadd.f32 %v1465_v16, %v1413_v30  ;;  %v6827_v9 = vpop.permute.xlu1 %767 }
 0x1a8   : > { %v6813_v0 = vadd.f32 %v1462_v17, %v1410_v54  ;;  %v1475_v5 = vmul.f32 %v1453_v23, %v6615_v41  ;;  %8560 = vst [vmem:[#allocation21_spill] sm:$0xff] %v6816_v52  ;;  %v6818_v55 = vadd.f32 %v1464_v53, %v1412_v57  ;;  %v6821_v19 = vadd.f32 %v1403_v46, %v6582_v47 }
 0x1a9   : > { %v1423_v45 = vadd.f32 %v1407_v59, %v6597_v13  ;;  %v6825_v20 = vmul.f32 %v1453_v23, %v6580_v42  ;;  %8561 = vst [vmem:[#allocation22_spill] sm:$0xff] %v6827_v9  ;;  %v1405_v26 = vmul.f32 %v1393_v24, %v6567_v18  ;;  %v1409_v30 = vmul.f32 %v1393_v24, %v6538_v61 }
 0x1aa   : > { %5725 = vmatmul.mubr.msk.f32.gmra.mrb[12].mxu0 %vm553_vm0, %v6721_v3  ;;  %5729 = vmatmul.mubr.msk.f32.gmra.mrb[12].mxu1 %vm553_vm0, %v6721_v3  ;;  %v6836_v59 = vmul.f32 %v1461_v25, %v6580_v42  ;;  %v1477_v23 = vmul.f32 %v1461_v25, %v6615_v41  ;;  %v1402_v25 = vmul.f32 %v6756_v38, %v6567_v18 }
 0x1ab   : > { %874 = vmatprep.mubr.f32.mxu0 %v8418_v10  ;;  %963 = vmatprep.mubr.f32.mxu1 %v8418_v10  ;;  %v6841_v35 = vadd.f32 %v1475_v5, %v1423_v45  ;;  %v6844_v24 = vadd.f32 %v1405_v26, %v6582_v47 }
 0x1ae   : > { %5726 = vmatmul.mubr.msk.f32.gmra.mrb[14].mxu0 %vm553_vm0, %v6732_v4  ;;  %5730 = vmatmul.mubr.msk.f32.gmra.mrb[14].mxu1 %vm553_vm0, %v6732_v4 }
 0x1af   : > { %1082 = vmatprep.mubr.f32.mxu0 %v8418_v10  ;;  %1171 = vmatprep.mubr.f32.mxu1 %v8418_v10 }
 0x275   : > { %v858_v27 = vpop.f32.mrb[8].mxu0  ;;  %v947_v10 = vpop.f32.mrb[8].mxu1 }
 0x276   : > { %v860_v49 = vpop.f32.mrb[9].mxu0  ;;  %v949_v63 = vpop.f32.mrb[9].mxu1  ;;  %v859_v16 = vadd.f32 %v858_v27, %v6816_v52  ;;  %v948_v17 = vadd.f32 %v947_v10, %v6816_v52 }
 0x277   : > { %v861_v53 = vadd.f32 %v860_v49, %v6816_v52  ;;  %v950_v54 = vadd.f32 %v949_v63, %v6816_v52  ;;  %v1425_v52 = vadd.f32 %v1409_v30, %v6597_v13  ;;  %v1470_v30 = vmul.f32 %v6759_v43, %v6580_v42 }
 0x278   : > { %v970_v50 = vmax.f32 %v859_v16, 0.0  ;;  %v6855_v16 = vpop.permute.xlu0 %772 }
 0x279   : > { %v864_v57 = vpop.f32.mrb[10].mxu0  ;;  %v953_v46 = vpop.f32.mrb[10].mxu1  ;;  %v971_v36 = vmax.f32 %v861_v53, 0.0  ;;  %v973_v34 = vmax.f32 %v950_v54, 0.0  ;;  %8562 = vst [vmem:[#allocation23_spill] sm:$0xff] %v6855_v16  ;;  %v1418_v53 = vadd.f32 %v1402_v25, %v6582_v47  ;;  %v1474_v54 = vmul.f32 %v6759_v43, %v6615_v41 }
 0x27a   : > { %v865_v37 = vadd.f32 %v864_v57, %v6827_v9  ;;  %v954_v27 = vadd.f32 %v953_v46, %v6827_v9  ;;  %v866_v10 = vpop.f32.mrb[11].mxu0  ;;  %v955_v39 = vpop.f32.mrb[11].mxu1  ;;  %v972_v57 = vmax.f32 %v948_v17, 0.0  ;;  %v1495_v43 = vmax.f32 %v6809_v14, 0.0 }
 0x27b   : > { %v867_v49 = vadd.f32 %v866_v10, %v6827_v9  ;;  %v956_v63 = vadd.f32 %v955_v39, %v6827_v9  ;;  %v1406_v39 = vmul.f32 %v6756_v38, %v6538_v61  ;;  %v1404_v38 = vmul.f32 %v6762_v48, %v6567_v18 }
 0x27c   : > { %v974_v40 = vmax.f32 %v865_v37, 0.0  ;;  %v976_v46 = vmax.f32 %v954_v27, 0.0  ;;  %v6860_v27 = vpop.permute.xlu1 %777 }
 0x27d   : > { %v975_v45 = vmax.f32 %v867_v49, 0.0  ;;  %v977_v5 = vmax.f32 %v956_v63, 0.0  ;;  %v870_v33 = vpop.f32.mrb[12].mxu0  ;;  %v959_v26 = vpop.f32.mrb[12].mxu1  ;;  %8563 = vst [vmem:[#allocation24_spill] sm:$0xff] %v6860_v27  ;;  %v6864_v49 = vadd.f32 %v1477_v23, %v1425_v52  ;;  %v1420_v14 = vadd.f32 %v1404_v38, %v6582_v47 }
 0x27e   : > { %v5925_v31 = vpack.c.bf16 %v974_v40, %v970_v50  ;;  %v5933_v32 = vpack.c.bf16 %v976_v46, %v972_v57  ;;  %v872_v10 = vpop.f32.mrb[13].mxu0  ;;  %v961_v29 = vpop.f32.mrb[13].mxu1  ;;  %v871_v40 = vadd.f32 %v870_v33, %v6855_v16  ;;  %v960_v50 = vadd.f32 %v959_v26, %v6855_v16 }
 0x27f   : > { %v5923_v37 = vpack.c.bf16 %v975_v45, %v971_v36  ;;  %v5931_v17 = vpack.c.bf16 %v977_v5, %v973_v34  ;;  %v873_v63 = vadd.f32 %v872_v10, %v6855_v16  ;;  %v962_v34 = vadd.f32 %v961_v29, %v6855_v16 }
 0x280   : > { %v1422_v57 = vadd.f32 %v1406_v39, %v6597_v13  ;;  %v1497_v45 = vmax.f32 %v6811_v62, 0.0  ;;  %v1408_v29 = vmul.f32 %v6762_v48, %v6538_v61  ;;  %v1476_v10 = vmul.f32 %v6765_v44, %v6615_v41 }
 0x281   : > { %v876_v36 = vpop.f32.mrb[14].mxu0  ;;  %v965_v25 = vpop.f32.mrb[14].mxu1  ;;  %5924 = vmatprep.subr.bf16.mxu0 %v5923_v37  ;;  %5932 = vmatprep.subr.bf16.mxu1 %v5931_v17  ;;  %v978_v39 = vmax.f32 %v871_v40, 0.0  ;;  %v980_v37 = vmax.f32 %v960_v50, 0.0  ;;  %v1489_v40 = vadd.f32 %v6836_v59, %v6844_v24  ;;  %v1494_v50 = vmax.f32 %v6813_v0, 0.0  ;;  %v6900_v0 = vld [vmem:[%s8412_s3 + $0x40] sm:$0xff] }
 0x282   : > { %v877_v33 = vadd.f32 %v876_v36, %v6860_v27  ;;  %v966_v52 = vadd.f32 %v965_v25, %v6860_v27  ;;  %v878_v23 = vpop.f32.mrb[15].mxu0  ;;  %v967_v46 = vpop.f32.mrb[15].mxu1  ;;  %5926 = vmatpush1.bf16.msra.mxu0 %v5925_v31  ;;  %5934 = vmatpush1.bf16.msra.mxu1 %v5933_v32  ;;  %v979_v31 = vmax.f32 %v873_v63, 0.0  ;;  %v981_v32 = vmax.f32 %v962_v34, 0.0 }
 0x283   : > { %v879_v5 = vadd.f32 %v878_v23, %v6860_v27  ;;  %v968_v26 = vadd.f32 %v967_v46, %v6860_v27  ;;  %v1424_v48 = vadd.f32 %v1408_v29, %v6597_v13  ;;  %v1472_v23 = vmul.f32 %v6765_v44, %v6580_v42 }
 0x284   : > { %v982_v17 = vmax.f32 %v877_v33, 0.0  ;;  %v984_v36 = vmax.f32 %v966_v52, 0.0  ;;  %v1487_v27 = vadd.f32 %v6825_v20, %v6821_v19  ;;  %v1496_v63 = vmax.f32 %v6818_v55, 0.0 }
 0x285   : > { %v983_v25 = vmax.f32 %v879_v5, 0.0  ;;  %v985_v62 = vmax.f32 %v968_v26, 0.0  ;;  %v1490_v34 = vadd.f32 %v1474_v54, %v1422_v57  ;;  %v1492_v33 = vadd.f32 %v1476_v10, %v1424_v48 }
 0x286   : > { %v5929_v16 = vpack.c.bf16 %v982_v17, %v978_v39  ;;  %v5937_v9 = vpack.c.bf16 %v984_v36, %v980_v37  ;;  %v8564_v52 = vmax.f32 %v6785_v6, 0.0  ;;  %v8565_v44 = vmax.f32 %v6787_v7, 0.0 }
 0x287   : > { %v5927_v46 = vpack.c.bf16 %v983_v25, %v979_v31  ;;  %v5935_v38 = vpack.c.bf16 %v985_v62, %v981_v32  ;;  %v1507_v26 = vmax.f32 %v6841_v35, 0.0  ;;  %v1509_v19 = vmax.f32 %v6864_v49, 0.0 }
 0x288   : > { %v5939_v29 = vpack.c.bf16 %v8564_v52, %v1495_v43  ;;  %v5947_v5 = vpack.c.bf16 %v8565_v44, %v1497_v45  ;;  %v1498_v55 = vmax.f32 %v6800_v51, 0.0  ;;  %v1500_v20 = vmax.f32 %v6803_v60, 0.0  ;;  %v6911_v60 = vld [vmem:[%s8412_s3 + $0x48] sm:$0xff]  ;;  %v6922_v45 = vld [vmem:[%s8412_s3 + $0x50] sm:$0xff] }
 0x289   : > { %5928 = vmatprep.subr.bf16.mxu0 %v5927_v46  ;;  %5936 = vmatprep.subr.bf16.mxu1 %v5935_v38  ;;  %v1486_v6 = vadd.f32 %v1470_v30, %v1418_v53  ;;  %v1488_v59 = vadd.f32 %v1472_v23, %v1420_v14  ;;  %v1503_v7 = vmax.f32 %v1487_v27, 0.0  ;;  %v1505_v24 = vmax.f32 %v1489_v40, 0.0  ;;  %v6935_v14 = vld [vmem:[%s8412_s3 + $0x58] sm:$0xff] }
 0x28a   : > { %5930 = vmatpush1.bf16.msra.mxu0 %v5929_v16  ;;  %5938 = vmatpush1.bf16.msra.mxu1 %v5937_v9  ;;  %v5941_v35 = vpack.c.bf16 %v1498_v55, %v1494_v50  ;;  %v5949_v54 = vpack.c.bf16 %v1500_v20, %v1496_v63  ;;  %v1506_v49 = vmax.f32 %v1490_v34, 0.0  ;;  %v1508_v16 = vmax.f32 %v1492_v33, 0.0 }
 0x28b   : > { %5940 = vmatprep.subr.bf16.mxu0 %v5939_v29  ;;  %5948 = vmatprep.subr.bf16.mxu1 %v5947_v5  ;;  %v5943_v9 = vpack.c.bf16 %v1507_v26, %v1503_v7  ;;  %v5951_v51 = vpack.c.bf16 %v1509_v19, %v1505_v24  ;;  %v1502_v30 = vmax.f32 %v1486_v6, 0.0  ;;  %v1504_v53 = vmax.f32 %v1488_v59, 0.0 }
 0x28c   : > { %v8566_v27 = vmov 0.0   ;;  %v6985_v5 = vstv %s294_s16 }
 0x28d   : > { %5731 = vmatmul.mubr.msk.f32.vlgmr.msra.gmra.mrb[16].mxu0 %vm553_vm0, %v6900_v0  ;;  %5735 = vmatmul.mubr.msk.f32.vlgmr.msra.gmra.mrb[16].mxu1 %vm553_vm0, %v6900_v0  ;;  %v5945_v43 = vpack.c.bf16 %v1506_v49, %v1502_v30  ;;  %v5953_v57 = vpack.c.bf16 %v1508_v16, %v1504_v53  ;;  %8567 = vst [vmem:[#allocation25_spill] sm:$0xff] %v6985_v5 }
 0x28e   : > { %5942 = vmatpush1.bf16.msra.mxu0 %v5941_v35  ;;  %5950 = vmatpush1.bf16.msra.mxu1 %v5949_v54 }
 0x28f   : > { %5944 = vmatprep.subr.bf16.mxu0 %v5943_v9  ;;  %5952 = vmatprep.subr.bf16.mxu1 %v5951_v51 }
 0x290   : > { %1088 = vmatprep.mubr.f32.mxu0 %v8566_v27  ;;  %1177 = vmatprep.mubr.f32.mxu1 %v8566_v27 }
 0x291   : > { %5732 = vmatmul.mubr.msk.f32.gmra.mrb[18].mxu0 %vm553_vm0, %v6911_v60  ;;  %5736 = vmatmul.mubr.msk.f32.gmra.mrb[18].mxu1 %vm553_vm0, %v6911_v60 }
 0x292   : > { %5946 = vmatpush1.bf16.msra.mxu0 %v5945_v43  ;;  %5954 = vmatpush1.bf16.msra.mxu1 %v5953_v57 }
 0x293   : > { %1094 = vmatprep.mubr.f32.mxu0 %v8566_v27  ;;  %1183 = vmatprep.mubr.f32.mxu1 %v8566_v27 }
 0x295   : > { %5733 = vmatmul.mubr.msk.f32.gmra.mrb[20].mxu0 %vm553_vm0, %v6922_v45  ;;  %5737 = vmatmul.mubr.msk.f32.gmra.mrb[20].mxu1 %vm553_vm0, %v6922_v45 }
 0x296   : > { %1100 = vmatprep.mubr.f32.mxu0 %v8566_v27  ;;  %1189 = vmatprep.mubr.f32.mxu1 %v8566_v27 }
 0x299   : > { %5734 = vmatmul.mubr.msk.f32.gmra.mrb[22].mxu0 %vm553_vm0, %v6935_v14  ;;  %5738 = vmatmul.mubr.msk.f32.gmra.mrb[22].mxu1 %vm553_vm0, %v6935_v14 }
 0x29a   : > { %1574 = vmatprep.mubr.f32.mxu0 %v8566_v27  ;;  %1663 = vmatprep.mubr.f32.mxu1 %v8566_v27 }
 0x29d   : > { %5743 = vmatmul.mubr.msk.f32.vlgmr.msra.gmra.mrb[24].mxu0 %vm553_vm0, %v6631_v56  ;;  %5747 = vmatmul.mubr.msk.f32.vlgmr.msra.gmra.mrb[24].mxu1 %vm553_vm0, %v6631_v56  ;;  %v6967_v56 = vpop.permute.xlu0 %988 }
 0x29e   : > { %1580 = vmatprep.mubr.f32.mxu0 %v8566_v27  ;;  %1669 = vmatprep.mubr.f32.mxu1 %v8566_v27 }
 0x2a1   : > { %5744 = vmatmul.mubr.msk.f32.gmra.mrb[26].mxu0 %vm553_vm0, %v6642_v58  ;;  %5748 = vmatmul.mubr.msk.f32.gmra.mrb[26].mxu1 %vm553_vm0, %v6642_v58  ;;  %v6969_v58 = vpop.permute.xlu1 %993  ;;  %v6971_v10 = vpop.permute.xlu0 %998 }
 0x2a2   : > { %1586 = vmatprep.mubr.f32.mxu0 %v8566_v27  ;;  %1675 = vmatprep.mubr.f32.mxu1 %v8566_v27 }
 0x2a5   : > { %5745 = vmatmul.mubr.msk.f32.gmra.mrb[28].mxu0 %vm553_vm0, %v6653_v11  ;;  %5749 = vmatmul.mubr.msk.f32.gmra.mrb[28].mxu1 %vm553_vm0, %v6653_v11  ;;  %v6973_v11 = vpop.permute.xlu1 %1003  ;;  %v6979_v62 = vpop.permute.xlu0 %1214 }
 0x2a6   : > { %1592 = vmatprep.mubr.f32.mxu0 %v8566_v27  ;;  %1681 = vmatprep.mubr.f32.mxu1 %v8566_v27 }
 0x2a9   : > { %5746 = vmatmul.mubr.msk.f32.gmra.mrb[30].mxu0 %vm553_vm0, %v6664_v12  ;;  %5750 = vmatmul.mubr.msk.f32.gmra.mrb[30].mxu1 %vm553_vm0, %v6664_v12  ;;  %v6987_v26 = vpop.permute.xlu1 %1219 }
 0x2aa   : > { %1768 = vmatprep.mubr.f32.mxu0 %v8566_v27  ;;  %1857 = vmatprep.mubr.f32.mxu1 %v8566_v27 }
 0x360   : > { %v1084_v39 = vpop.f32.mrb[16].mxu0  ;;  %v1173_v37 = vpop.f32.mrb[16].mxu1 }
 0x361   : > { %v1085_v17 = vadd.f32 %v1084_v39, %v6967_v56  ;;  %v1174_v36 = vadd.f32 %v1173_v37, %v6967_v56  ;;  %v1086_v12 = vpop.f32.mrb[17].mxu0  ;;  %v1175_v31 = vpop.f32.mrb[17].mxu1 }
 0x362   : > { %v1087_v32 = vadd.f32 %v1086_v12, %v6967_v56  ;;  %v1176_v25 = vadd.f32 %v1175_v31, %v6967_v56 }
 0x363   : > { %v1196_v48 = vmax.f32 %v1085_v17, 0.0  ;;  %v1198_v23 = vmax.f32 %v1174_v36, 0.0  ;;  %v7001_v36 = vpop.permute.xlu0 %1224 }
 0x364   : > { %v1197_v46 = vmax.f32 %v1087_v32, 0.0  ;;  %v1199_v38 = vmax.f32 %v1176_v25, 0.0  ;;  %v1090_v40 = vpop.f32.mrb[18].mxu0  ;;  %v1179_v50 = vpop.f32.mrb[18].mxu1 }
 0x365   : > { %v1091_v63 = vadd.f32 %v1090_v40, %v6969_v58  ;;  %v1180_v34 = vadd.f32 %v1179_v50, %v6969_v58  ;;  %v1092_v33 = vpop.f32.mrb[19].mxu0  ;;  %v1181_v52 = vpop.f32.mrb[19].mxu1  ;;  %v1232_v19 = vmul.f32 %v6979_v62, %v1196_v48  ;;  %v1234_v55 = vmul.f32 %v6979_v62, %v1198_v23 }
 0x366   : > { %v1093_v29 = vadd.f32 %v1092_v33, %v6969_v58  ;;  %v1182_v44 = vadd.f32 %v1181_v52, %v6969_v58  ;;  %v1233_v59 = vmul.f32 %v6979_v62, %v1197_v46  ;;  %v1235_v7 = vmul.f32 %v6979_v62, %v1199_v38 }
 0x367   : > { %v1200_v20 = vmax.f32 %v1091_v63, 0.0  ;;  %v1202_v6 = vmax.f32 %v1180_v34, 0.0 }
 0x368   : > { %v1201_v24 = vmax.f32 %v1093_v29, 0.0  ;;  %v1203_v35 = vmax.f32 %v1182_v44, 0.0  ;;  %v1096_v54 = vpop.f32.mrb[20].mxu0  ;;  %v1185_v49 = vpop.f32.mrb[20].mxu1 }
 0x369   : > { %v1236_v16 = vmul.f32 %v6987_v26, %v1200_v20  ;;  %v1238_v9 = vmul.f32 %v6987_v26, %v1202_v6  ;;  %v1097_v51 = vadd.f32 %v1096_v54, %v6971_v10  ;;  %v1186_v30 = vadd.f32 %v1185_v49, %v6971_v10  ;;  %v1098_v53 = vpop.f32.mrb[21].mxu0  ;;  %v1187_v43 = vpop.f32.mrb[21].mxu1 }
 0x36a   : > { %v1237_v57 = vmul.f32 %v6987_v26, %v1201_v24  ;;  %v1239_v39 = vmul.f32 %v6987_v26, %v1203_v35  ;;  %v1099_v37 = vadd.f32 %v1098_v53, %v6971_v10  ;;  %v1188_v17 = vadd.f32 %v1187_v43, %v6971_v10 }
 0x36b   : > { %v1248_v12 = vadd.f32 %v1236_v16, %v1232_v19  ;;  %v1266_v31 = vadd.f32 %v1238_v9, %v1234_v55  ;;  %v1204_v32 = vmax.f32 %v1097_v51, 0.0  ;;  %v1206_v25 = vmax.f32 %v1186_v30, 0.0 }
 0x36c   : > { %v1257_v48 = vadd.f32 %v1237_v57, %v1233_v59  ;;  %v1275_v23 = vadd.f32 %v1239_v39, %v1235_v7  ;;  %v1205_v46 = vmax.f32 %v1099_v37, 0.0  ;;  %v1207_v38 = vmax.f32 %v1188_v17, 0.0  ;;  %v1102_v40 = vpop.f32.mrb[22].mxu0  ;;  %v1191_v50 = vpop.f32.mrb[22].mxu1 }
 0x36d   : > { %v1240_v63 = vmul.f32 %v7001_v36, %v1204_v32  ;;  %v1242_v34 = vmul.f32 %v7001_v36, %v1206_v25  ;;  %v1103_v33 = vadd.f32 %v1102_v40, %v6973_v11  ;;  %v1192_v52 = vadd.f32 %v1191_v50, %v6973_v11  ;;  %v1104_v29 = vpop.f32.mrb[23].mxu0  ;;  %v1193_v44 = vpop.f32.mrb[23].mxu1 }
 0x36e   : > { %v1241_v19 = vmul.f32 %v7001_v36, %v1205_v46  ;;  %v1243_v55 = vmul.f32 %v7001_v36, %v1207_v38  ;;  %v1105_v20 = vadd.f32 %v1104_v29, %v6973_v11  ;;  %v1194_v6 = vadd.f32 %v1193_v44, %v6973_v11  ;;  %v7011_v59 = vpop.permute.xlu1 %1229 }
 0x36f   : > { %v1249_v7 = vadd.f32 %v1248_v12, %v1240_v63  ;;  %v1267_v24 = vadd.f32 %v1266_v31, %v1242_v34  ;;  %v1208_v35 = vmax.f32 %v1103_v33, 0.0  ;;  %v1210_v54 = vmax.f32 %v1192_v52, 0.0 }
 0x370   : > { %v1258_v49 = vadd.f32 %v1257_v48, %v1241_v19  ;;  %v1276_v16 = vadd.f32 %v1275_v23, %v1243_v55  ;;  %v1209_v9 = vmax.f32 %v1105_v20, 0.0  ;;  %v1211_v51 = vmax.f32 %v1194_v6, 0.0  ;;  %v1576_v30 = vpop.f32.mrb[24].mxu0  ;;  %v1665_v53 = vpop.f32.mrb[24].mxu1 }
 0x371   : > { %v1244_v43 = vmul.f32 %v7011_v59, %v1208_v35  ;;  %v1246_v57 = vmul.f32 %v7011_v59, %v1210_v54  ;;  %v1577_v39 = vadd.f32 %v1576_v30, %v6672_v15  ;;  %v1666_v37 = vadd.f32 %v1665_v53, %v6672_v15  ;;  %v1578_v17 = vpop.f32.mrb[25].mxu0  ;;  %v1667_v32 = vpop.f32.mrb[25].mxu1 }
 0x372   : > { %v1245_v12 = vmul.f32 %v7011_v59, %v1209_v9  ;;  %v1247_v31 = vmul.f32 %v7011_v59, %v1211_v51  ;;  %v1579_v25 = vadd.f32 %v1578_v17, %v6672_v15  ;;  %v1668_v48 = vadd.f32 %v1667_v32, %v6672_v15 }
 0x373   : > { %v1250_v23 = vadd.f32 %v1249_v7, %v1244_v43  ;;  %v1268_v46 = vadd.f32 %v1267_v24, %v1246_v57  ;;  %v1688_v38 = vmax.f32 %v1577_v39, 0.0  ;;  %v1690_v40 = vmax.f32 %v1666_v37, 0.0 }
 0x374   : > { %v1259_v50 = vadd.f32 %v1258_v49, %v1245_v12  ;;  %v1277_v63 = vadd.f32 %v1276_v16, %v1247_v31  ;;  %v1689_v34 = vmax.f32 %v1579_v25, 0.0  ;;  %v1691_v33 = vmax.f32 %v1668_v48, 0.0  ;;  %v1582_v52 = vpop.f32.mrb[26].mxu0  ;;  %v1671_v29 = vpop.f32.mrb[26].mxu1 }
 0x375   : > { %v1251_v44 = vrot.slane %v1250_v23, 4  ;;  %v1269_v19 = vrot.slane %v1268_v46, 4  ;;  %v1583_v55 = vadd.f32 %v1582_v52, %v6676_v22  ;;  %v1672_v20 = vadd.f32 %v1671_v29, %v6676_v22  ;;  %v1584_v6 = vpop.f32.mrb[27].mxu0  ;;  %v1673_v35 = vpop.f32.mrb[27].mxu1 }
 0x376   : > { %v1260_v54 = vrot.slane %v1259_v50, 4  ;;  %v1278_v9 = vrot.slane %v1277_v63, 4  ;;  %v1585_v7 = vadd.f32 %v1584_v6, %v6676_v22  ;;  %v1674_v24 = vadd.f32 %v1673_v35, %v6676_v22 }
 0x377   : > { %v1252_v49 = vadd.f32 %v1251_v44, %v1250_v23  ;;  %v1270_v16 = vadd.f32 %v1269_v19, %v1268_v46  ;;  %v1692_v51 = vmax.f32 %v1583_v55, 0.0  ;;  %v1694_v30 = vmax.f32 %v1672_v20, 0.0 }
 0x378   : > { %v1261_v53 = vadd.f32 %v1260_v54, %v1259_v50  ;;  %v1279_v43 = vadd.f32 %v1278_v9, %v1277_v63  ;;  %v1693_v57 = vmax.f32 %v1585_v7, 0.0  ;;  %v1695_v39 = vmax.f32 %v1674_v24, 0.0  ;;  %v1588_v37 = vpop.f32.mrb[28].mxu0  ;;  %v1677_v17 = vpop.f32.mrb[28].mxu1 }
 0x379   : > { %v1253_v32 = vrot.slane %v1252_v49, 2  ;;  %v1271_v12 = vrot.slane %v1270_v16, 2  ;;  %v5957_v31 = vpack.c.bf16 %v1692_v51, %v1688_v38  ;;  %v5965_v25 = vpack.c.bf16 %v1694_v30, %v1690_v40  ;;  %v1590_v48 = vpop.f32.mrb[29].mxu0  ;;  %v1679_v52 = vpop.f32.mrb[29].mxu1 }
 0x37a   : > { %v1262_v29 = vrot.slane %v1261_v53, 2  ;;  %v1280_v6 = vrot.slane %v1279_v43, 2  ;;  %v5955_v15 = vpack.c.bf16 %v1693_v57, %v1689_v34  ;;  %v5963_v35 = vpack.c.bf16 %v1695_v39, %v1691_v33 }
 0x37b   : > { %v1254_v23 = vadd.f32 %v1253_v32, %v1252_v49  ;;  %v1272_v46 = vadd.f32 %v1271_v12, %v1270_v16  ;;  %v1589_v44 = vadd.f32 %v1588_v37, %v6674_v21  ;;  %v1678_v50 = vadd.f32 %v1677_v17, %v6674_v21 }
 0x37c   : > { %v1263_v63 = vadd.f32 %v1262_v29, %v1261_v53  ;;  %v1281_v19 = vadd.f32 %v1280_v6, %v1279_v43  ;;  %v1591_v55 = vadd.f32 %v1590_v48, %v6674_v21  ;;  %v1680_v20 = vadd.f32 %v1679_v52, %v6674_v21  ;;  %v1594_v38 = vpop.f32.mrb[30].mxu0  ;;  %v1683_v40 = vpop.f32.mrb[30].mxu1  ;;  %5956 = vmatprep.subr.bf16.mxu0 %v5955_v15 }
 0x37d   : > { %v1255_v54 = vrot.slane %v1254_v23, 1  ;;  %v1273_v9 = vrot.slane %v1272_v46, 1  ;;  %v1696_v7 = vmax.f32 %v1589_v44, 0.0  ;;  %v1698_v34 = vmax.f32 %v1678_v50, 0.0  ;;  %5964 = vmatprep.subr.bf16.mxu1 %v5963_v35  ;;  %v1596_v33 = vpop.f32.mrb[31].mxu0  ;;  %v1685_v24 = vpop.f32.mrb[31].mxu1  ;;  %5958 = vmatpush1.bf16.msra.mxu0 %v5957_v31 }
 0x37e   : > { %v1264_v49 = vrot.slane %v1263_v63, 1  ;;  %v1282_v16 = vrot.slane %v1281_v19, 1  ;;  %v1697_v51 = vmax.f32 %v1591_v55, 0.0  ;;  %v1699_v30 = vmax.f32 %v1680_v20, 0.0  ;;  %5966 = vmatpush1.bf16.msra.mxu1 %v5965_v25 }
 0x37f   : > { %v1256_v53 = vadd.f32 %v1255_v54, %v1254_v23  ;;  %v1274_v43 = vadd.f32 %v1273_v9, %v1272_v46  ;;  %v1595_v57 = vadd.f32 %v1594_v38, %v6686_v8  ;;  %v1684_v39 = vadd.f32 %v1683_v40, %v6686_v8 }
 0x380   : > { %v1265_v15 = vadd.f32 %v1264_v49, %v1263_v63  ;;  %v1283_v37 = vadd.f32 %v1282_v16, %v1281_v19  ;;  %v1597_v17 = vadd.f32 %v1596_v33, %v6686_v8  ;;  %v1686_v32 = vadd.f32 %v1685_v24, %v6686_v8 }
 0x381   : > { %v1285_v12 = vadd.f32 %v6985_v5, %v1256_v53  ;;  %v1287_v31 = vadd.f32 %v6985_v5, %v1274_v43  ;;  %v1700_v48 = vmax.f32 %v1595_v57, 0.0  ;;  %v1702_v52 = vmax.f32 %v1684_v39, 0.0 }
 0x382   : > { %v1286_v25 = vadd.f32 %v6985_v5, %v1265_v15  ;;  %v1288_v29 = vadd.f32 %v6985_v5, %v1283_v37  ;;  %v1701_v6 = vmax.f32 %v1597_v17, 0.0  ;;  %v1703_v35 = vmax.f32 %v1686_v32, 0.0 }
 0x383   : > { %v5739_v23 = vmul.f32 -1.442695, %v1285_v12  ;;  %v5741_v46 = vmul.f32 -1.442695, %v1287_v31  ;;  %v5961_v44 = vpack.c.bf16 %v1700_v48, %v1696_v7  ;;  %v5969_v50 = vpack.c.bf16 %v1702_v52, %v1698_v34 }
 0x384   : > { %v5740_v63 = vmul.f32 -1.442695, %v1286_v25  ;;  %v5742_v19 = vmul.f32 -1.442695, %v1288_v29  ;;  %v5959_v55 = vpack.c.bf16 %v1701_v6, %v1697_v51  ;;  %v5967_v20 = vpack.c.bf16 %v1703_v35, %v1699_v30  ;;  %v2212_v35 = vld [vmem:[%s6465_s12 + $0x10] sm:$0xff] }
 0x385   : > { %6199 = vpow2.f32 %v5739_v23  ;;  %v8569_v29 = vlaneseq  ;;  %v8573_v23 = vld [vmem:[#allocation3_spill] sm:$0xff] }
 0x386   : > { %6201 = vpow2.f32 %v5741_v46  ;;  %5960 = vmatprep.subr.bf16.mxu0 %v5959_v55  ;;  %5968 = vmatprep.subr.bf16.mxu1 %v5967_v20  ;;  %v2221_v46 = vrot.slane %v2212_v35, %v8573_v23  ;;  %v8576_v55 = vld [vmem:[#allocation6_spill] sm:$0xff] }
 0x387   : > { %6203 = vpow2.f32 %v5740_v63  ;;  %5962 = vmatpush1.bf16.msra.mxu0 %v5961_v44  ;;  %5970 = vmatpush1.bf16.msra.mxu1 %v5969_v50  ;;  %vm7074_vm1 = vcmp.lt.s32.totalorder %v8569_v29, 512  ;;  %v8574_v44 = vld [vmem:[#allocation5_spill] sm:$0xff]  ;;  %v8575_v63 = vld [vmem:[#allocation4_spill] sm:$0xff]  ;;  %v2229_v20 = vrot.slane %v2212_v35, %v8576_v55 }
 0x388   : > { %6205 = vpow2.f32 %v5742_v19  ;;  %v2289_v50 = vrot.slane %v2212_v35, %v8574_v44  ;;  %v2241_v19 = vrot.slane %v2221_v46, %v8575_v63 }
 0x38a   : > { %5751 = vmatmul.mubr.msk.f32.vlgmr.msra.gmra.mrb[32].mxu0 %vm553_vm0, %v6699_v1  ;;  %5755 = vmatmul.mubr.msk.f32.vlgmr.msra.gmra.mrb[32].mxu1 %vm553_vm0, %v6699_v1 }
 0x38b   : > { %1774 = vmatprep.mubr.f32.mxu0 %v8566_v27  ;;  %1863 = vmatprep.mubr.f32.mxu1 %v8566_v27 }
 0x38e   : > { %5752 = vmatmul.mubr.msk.f32.gmra.mrb[34].mxu0 %vm553_vm0, %v6710_v2  ;;  %5756 = vmatmul.mubr.msk.f32.gmra.mrb[34].mxu1 %vm553_vm0, %v6710_v2 }
 0x38f   : > { %v6200_v38 = vpop.eup %6199  ;;  %1780 = vmatprep.mubr.f32.mxu0 %v8566_v27  ;;  %1869 = vmatprep.mubr.f32.mxu1 %v8566_v27 }
 0x390   : > { %v6202_v40 = vpop.eup %6201  ;;  %v1301_v54 = vadd.f32 1.0, %v6200_v38  ;;  %v8577_v38 = vld [vmem:[#allocation7_spill] sm:$0xff] }
 0x391   : > { %v6204_v9 = vpop.eup %6203  ;;  %v1303_v7 = vadd.f32 1.0, %v6202_v40  ;;  %v2309_v40 = vrot.slane %v2289_v50, %v8577_v38 }
 0x392   : > { %v6206_v1 = vpop.eup %6205  ;;  %6207 = vrcp.f32 %v1301_v54  ;;  %v1302_v34 = vadd.f32 1.0, %v6204_v9  ;;  %5753 = vmatmul.mubr.msk.f32.gmra.mrb[36].mxu0 %vm553_vm0, %v6721_v3  ;;  %5757 = vmatmul.mubr.msk.f32.gmra.mrb[36].mxu1 %vm553_vm0, %v6721_v3  ;;  %v6330_v3 = vmov 1966171168   ;;  %v2217_v54 = vrot.slane %v2212_v35, %v8575_v63  ;;  %v8578_v9 = vld [vmem:[#allocation9_spill] sm:$0xff] }
 0x393   : > { %6209 = vrcp.f32 %v1303_v7  ;;  %v1304_v2 = vadd.f32 1.0, %v6206_v1  ;;  %1786 = vmatprep.mubr.f32.mxu0 %v8566_v27  ;;  %1875 = vmatprep.mubr.f32.mxu1 %v8566_v27  ;;  %v1328_v33 = vunpack.c.l.s4 %v6330_v3  ;;  %v2225_v7 = vrot.slane %v2212_v35, %v8578_v9  ;;  %v8579_v1 = vld [vmem:[#allocation12_spill] sm:$0xff] }
 0x394   : > { %6211 = vrcp.f32 %v1302_v34  ;;  %v2251_v34 = vmul.f32 %v2241_v19, %v8579_v1 }
 0x395   : > { %6213 = vrcp.f32 %v1304_v2  ;;  %v1329_v16 = vunpack.c.0.s8 %v1328_v33  ;;  %v8580_v2 = vld [vmem:[#allocation14_spill] sm:$0xff]  ;;  %v2249_v33 = vrot.slane %v2229_v20, %v8575_v63 }
 0x396   : > { %5754 = vmatmul.mubr.msk.f32.gmra.mrb[38].mxu0 %vm553_vm0, %v6732_v4  ;;  %5758 = vmatmul.mubr.msk.f32.gmra.mrb[38].mxu1 %vm553_vm0, %v6732_v4  ;;  %v2255_v3 = vmul.f32 %v2241_v19, %v8580_v2 }
 0x397   : > { %1962 = vmatprep.mubr.f32.mxu0 %v8566_v27  ;;  %2051 = vmatprep.mubr.f32.mxu1 %v8566_v27  ;;  %v7063_v37 = vsub.s32 %v1329_v16, %v6460_v28  ;;  %v8570_v28 = vmov 0  ;;  %v2285_v16 = vrot.slane %v2212_v35, %v8577_v38 }
 0x398   : > { %v8571_v28 = vsel %vm7074_vm1, 4294967295, %v8570_v28 }
 0x399   : > { %8568 = vst [vmem:[#allocation26_spill] sm:$0xff] %v7063_v37  ;;  %8572 = vst [vmem:[#allocation27_spill] sm:$0xff] %v8571_v28 }
 0x39c   : > { %v6208_v24 = vpop.eup %6207 }
 0x39d   : > { %v6210_v49 = vpop.eup %6209  ;;  %v1313_v51 = vmul.f32 0.995, %v6208_v24  ;;  %v8581_v24 = vld [vmem:[#allocation8_spill] sm:$0xff] }
 0x39e   : > { %v6212_v30 = vpop.eup %6211  ;;  %v1315_v53 = vmul.f32 0.995, %v6210_v49  ;;  %v2297_v49 = vrot.slane %v2212_v35, %v8581_v24 }
 0x39f   : > { %v6214_v43 = vpop.eup %6213  ;;  %v1317_v57 = vadd.f32 0.005, %v1313_v51  ;;  %v1314_v39 = vmul.f32 0.995, %v6212_v30  ;;  %v8582_v51 = vld [vmem:[#allocation16_spill] sm:$0xff] }
 0x3a0   : > { %v1319_v15 = vadd.f32 0.005, %v1315_v53  ;;  %v1316_v4 = vmul.f32 0.995, %v6214_v43  ;;  %v2319_v30 = vmul.f32 %v2309_v40, %v8582_v51  ;;  %v8583_v53 = vld [vmem:[#allocation15_spill] sm:$0xff] }
 0x3a1   : > { %v1318_v17 = vadd.f32 0.005, %v1314_v39  ;;  %v2323_v43 = vmul.f32 %v2309_v40, %v8583_v53 }
 0x3a2   : > { %v1320_v32 = vadd.f32 0.005, %v1316_v4  ;;  %v7102_v4 = vrot.slane %v2225_v7, %v8575_v63 }
 0x3a3   : > { %v1325_v12 = vcombine.low %v1317_v57, %v1318_v17  ;;  %v8584_v57 = vld [vmem:[#allocation10_spill] sm:$0xff]  ;;  %v8585_v17 = vld [vmem:[#allocation11_spill] sm:$0xff] }
 0x3a4   : > { %v1326_v31 = vcombine.low %v1319_v15, %v1320_v32  ;;  %v2293_v39 = vrot.slane %v2212_v35, %v8584_v57  ;;  %v7099_v15 = vrot.slane %v2217_v54, %v8575_v63  ;;  %v2267_v32 = vadd.f32 %v2251_v34, %v8585_v17 }
 0x3a5   : > { %v1333_v48 = vrot.slane %v1325_v12, %v7063_v37  ;;  %v8586_v12 = vld [vmem:[#allocation13_spill] sm:$0xff]  ;;  %v2257_v35 = vmul.f32 %v2249_v33, %v8580_v2  ;;  %v2252_v7 = vmul.f32 %v7102_v4, %v8579_v1 }
 0x3a6   : > { %v1340_v52 = vrot.slane %v1326_v31, %v7063_v37  ;;  %v2271_v31 = vadd.f32 %v2255_v3, %v8586_v12  ;;  %v7111_v29 = vadd.f32 %v2319_v30, %v2267_v32  ;;  %v7117_v46 = vrot.slane %v2293_v39, %v8577_v38 }
 0x3a7   : > { %v2250_v20 = vmul.f32 %v7099_v15, %v8579_v1  ;;  %v2254_v54 = vmul.f32 %v7099_v15, %v8580_v2  ;;  %v2256_v3 = vmul.f32 %v7102_v4, %v8580_v2  ;;  %v2259_v39 = vmul.f32 %v2241_v19, %v6567_v18 }
 0x3a8   : > { %v1341_v25 = vcombine.low %v1333_v48, %v1340_v52  ;;  %v2253_v48 = vmul.f32 %v2249_v33, %v8579_v1  ;;  %v2317_v52 = vrot.slane %v2297_v49, %v8577_v38  ;;  %v2268_v1 = vadd.f32 %v2252_v7, %v8585_v17 }
 0x3a9   : > { %v2266_v24 = vadd.f32 %v2250_v20, %v8585_v17  ;;  %v2270_v2 = vadd.f32 %v2254_v54, %v8586_v12  ;;  %v2263_v32 = vmul.f32 %v2241_v19, %v6538_v61  ;;  %v2261_v19 = vmul.f32 %v2249_v33, %v6567_v18 }
 0x3aa   : > { %v1348_v6 = vrot.slane %v1341_v25, %v7063_v37  ;;  %v7109_v25 = vrot.slane %v2285_v16, %v8577_v38  ;;  %v2321_v50 = vmul.f32 %v2317_v52, %v8582_v51  ;;  %v2269_v34 = vadd.f32 %v2253_v48, %v8585_v17  ;;  %v8587_v17 = vld [vmem:[#allocation21_spill] sm:$0xff] }
 0x3ab   : > { %v2325_v49 = vmul.f32 %v2317_v52, %v8583_v53  ;;  %v2324_v48 = vmul.f32 %v7117_v46, %v8583_v53 }
 0x3ac   : > { %1354 = vst.msk [vmem:[%s7071_s20] ss:$8 sm:$0xf] %vm7074_vm1, %v1348_v6  ;;  %v7113_v6 = vadd.f32 %v2323_v43, %v2271_v31  ;;  %v2318_v16 = vmul.f32 %v7109_v25, %v8582_v51  ;;  %v2322_v30 = vmul.f32 %v7109_v25, %v8583_v53  ;;  %v2320_v43 = vmul.f32 %v7117_v46, %v8582_v51 }
 0x3ad   : > { %v2273_v31 = vadd.f32 %v2257_v35, %v8586_v12  ;;  %v7141_v57 = vadd.f32 %v2321_v50, %v2269_v34  ;;  %v2272_v51 = vadd.f32 %v2256_v3, %v8586_v12  ;;  %v2331_v35 = vmul.f32 %v2309_v40, %v6615_v41 }
 0x3ae   : > { %v7152_v34 = vadd.f32 %v2318_v16, %v2266_v24  ;;  %v7154_v20 = vadd.f32 %v2322_v30, %v2270_v2  ;;  %v7156_v54 = vadd.f32 %v2320_v43, %v2268_v1  ;;  %v7161_v3 = vadd.f32 %v2259_v39, %v6582_v47 }
 0x3af   : > { %v7150_v50 = vadd.f32 %v2325_v49, %v2273_v31  ;;  %v7158_v7 = vadd.f32 %v2324_v48, %v2272_v51  ;;  %v2279_v12 = vadd.f32 %v2263_v32, %v6597_v13  ;;  %v7168_v24 = vmul.f32 %v2309_v40, %v6580_v42  ;;  %v8588_v32 = vld [vmem:[#allocation22_spill] sm:$0xff] }
 0x3b0   : > { %v2265_v2 = vmul.f32 %v2249_v33, %v6538_v61  ;;  %v7176_v39 = vadd.f32 %v2261_v19, %v6582_v47  ;;  %v7181_v48 = vmul.f32 %v2317_v52, %v6580_v42 }
 0x3b1   : > { %v7173_v43 = vadd.f32 %v2331_v35, %v2279_v12  ;;  %v2258_v35 = vmul.f32 %v7099_v15, %v6567_v18 }
 0x3b2   : > { %v2281_v12 = vadd.f32 %v2265_v2, %v6597_v13  ;;  %v2262_v2 = vmul.f32 %v7099_v15, %v6538_v61 }
 0x45d   : > { %v1770_v9 = vpop.f32.mrb[32].mxu0  ;;  %v1859_v38 = vpop.f32.mrb[32].mxu1 }
 0x45e   : > { %v1772_v55 = vpop.f32.mrb[33].mxu0  ;;  %v1861_v53 = vpop.f32.mrb[33].mxu1  ;;  %v1771_v63 = vadd.f32 %v1770_v9, %v8587_v17  ;;  %v1860_v49 = vadd.f32 %v1859_v38, %v8587_v17 }
 0x45f   : > { %v1773_v1 = vadd.f32 %v1772_v55, %v8587_v17  ;;  %v1862_v51 = vadd.f32 %v1861_v53, %v8587_v17  ;;  %v2333_v55 = vmul.f32 %v2317_v52, %v6615_v41 }
 0x460   : > { %v1882_v19 = vmax.f32 %v1771_v63, 0.0 }
 0x461   : > { %v1776_v16 = vpop.f32.mrb[34].mxu0  ;;  %v1865_v30 = vpop.f32.mrb[34].mxu1  ;;  %v1883_v44 = vmax.f32 %v1773_v1, 0.0  ;;  %v1885_v23 = vmax.f32 %v1862_v51, 0.0  ;;  %v2274_v1 = vadd.f32 %v2258_v35, %v6582_v47  ;;  %v8589_v51 = vld [vmem:[#allocation23_spill] sm:$0xff]  ;;  %v2357_v35 = vmax.f32 %v7150_v50, 0.0 }
 0x462   : > { %v1777_v9 = vadd.f32 %v1776_v16, %v8588_v32  ;;  %v1866_v38 = vadd.f32 %v1865_v30, %v8588_v32  ;;  %v1778_v31 = vpop.f32.mrb[35].mxu0  ;;  %v1867_v40 = vpop.f32.mrb[35].mxu1  ;;  %v1884_v16 = vmax.f32 %v1860_v49, 0.0 }
 0x463   : > { %v1779_v33 = vadd.f32 %v1778_v31, %v8588_v32  ;;  %v1868_v53 = vadd.f32 %v1867_v40, %v8588_v32  ;;  %v2326_v40 = vmul.f32 %v7109_v25, %v6580_v42 }
 0x464   : > { %v1886_v17 = vmax.f32 %v1777_v9, 0.0  ;;  %v1888_v30 = vmax.f32 %v1866_v38, 0.0  ;;  %v7193_v9 = vadd.f32 %v2333_v55, %v2281_v12 }
 0x465   : > { %v1887_v28 = vmax.f32 %v1779_v33, 0.0  ;;  %v1889_v37 = vmax.f32 %v1868_v53, 0.0  ;;  %v1782_v5 = vpop.f32.mrb[36].mxu0  ;;  %v1871_v8 = vpop.f32.mrb[36].mxu1  ;;  %v2260_v53 = vmul.f32 %v7102_v4, %v6567_v18 }
 0x466   : > { %v5973_v52 = vpack.c.bf16 %v1886_v17, %v1882_v19  ;;  %v5981_v21 = vpack.c.bf16 %v1888_v30, %v1884_v16  ;;  %v1784_v31 = vpop.f32.mrb[37].mxu0  ;;  %v1873_v22 = vpop.f32.mrb[37].mxu1  ;;  %v1783_v38 = vadd.f32 %v1782_v5, %v8589_v51  ;;  %v1872_v33 = vadd.f32 %v1871_v8, %v8589_v51 }
 0x467   : > { %v5971_v63 = vpack.c.bf16 %v1887_v28, %v1883_v44  ;;  %v5979_v49 = vpack.c.bf16 %v1889_v37, %v1885_v23  ;;  %v2330_v17 = vmul.f32 %v7109_v25, %v6615_v41  ;;  %v1785_v15 = vadd.f32 %v1784_v31, %v8589_v51  ;;  %v8590_v44 = vld [vmem:[#allocation24_spill] sm:$0xff] }
 0x468   : > { %v1874_v19 = vadd.f32 %v1873_v22, %v8589_v51  ;;  %v2353_v23 = vmax.f32 %v7141_v57, 0.0  ;;  %v2278_v5 = vadd.f32 %v2262_v2, %v6597_v13  ;;  %v2264_v22 = vmul.f32 %v7102_v4, %v6538_v61 }
 0x469   : > { %v1788_v28 = vpop.f32.mrb[38].mxu0  ;;  %v1877_v37 = vpop.f32.mrb[38].mxu1  ;;  %5972 = vmatprep.subr.bf16.mxu0 %v5971_v63  ;;  %5980 = vmatprep.subr.bf16.mxu1 %v5979_v49  ;;  %v2276_v57 = vadd.f32 %v2260_v53, %v6582_v47  ;;  %v2332_v31 = vmul.f32 %v7117_v46, %v6615_v41  ;;  %v1890_v2 = vmax.f32 %v1783_v38, 0.0  ;;  %v1892_v63 = vmax.f32 %v1872_v33, 0.0 }
 0x46a   : > { %v1789_v8 = vadd.f32 %v1788_v28, %v8590_v44  ;;  %v1878_v55 = vadd.f32 %v1877_v37, %v8590_v44  ;;  %v1790_v25 = vpop.f32.mrb[39].mxu0  ;;  %v1879_v12 = vpop.f32.mrb[39].mxu1  ;;  %5974 = vmatpush1.bf16.msra.mxu0 %v5973_v52  ;;  %5982 = vmatpush1.bf16.msra.mxu1 %v5981_v21  ;;  %v1891_v52 = vmax.f32 %v1785_v15, 0.0  ;;  %v1893_v21 = vmax.f32 %v1874_v19, 0.0 }
 0x46b   : > { %v1791_v16 = vadd.f32 %v1790_v25, %v8590_v44  ;;  %v1880_v30 = vadd.f32 %v1879_v12, %v8590_v44  ;;  %v2280_v4 = vadd.f32 %v2264_v22, %v6597_v13  ;;  %v2328_v25 = vmul.f32 %v7117_v46, %v6580_v42 }
 0x46c   : > { %v1894_v49 = vmax.f32 %v1789_v8, 0.0  ;;  %v1896_v28 = vmax.f32 %v1878_v55, 0.0  ;;  %v2343_v44 = vadd.f32 %v7168_v24, %v7161_v3  ;;  %v2345_v38 = vadd.f32 %v7181_v48, %v7176_v39 }
 0x46d   : > { %v1895_v37 = vmax.f32 %v1791_v16, 0.0  ;;  %v1897_v50 = vmax.f32 %v1880_v30, 0.0  ;;  %v2350_v33 = vmax.f32 %v7152_v34, 0.0  ;;  %v2352_v15 = vmax.f32 %v7156_v54, 0.0 }
 0x46e   : > { %v5977_v51 = vpack.c.bf16 %v1894_v49, %v1890_v2  ;;  %v5985_v32 = vpack.c.bf16 %v1896_v28, %v1892_v63  ;;  %v2346_v19 = vadd.f32 %v2330_v17, %v2278_v5  ;;  %v2348_v8 = vadd.f32 %v2332_v31, %v2280_v4 }
 0x46f   : > { %v5975_v12 = vpack.c.bf16 %v1895_v37, %v1891_v52  ;;  %v5983_v53 = vpack.c.bf16 %v1897_v50, %v1893_v21  ;;  %v8591_v55 = vmax.f32 %v7111_v29, 0.0  ;;  %v8592_v46 = vmax.f32 %v7113_v6, 0.0 }
 0x470   : > { %v5995_v16 = vpack.c.bf16 %v2357_v35, %v2353_v23  ;;  %v2363_v30 = vmax.f32 %v7173_v43, 0.0  ;;  %v2365_v3 = vmax.f32 %v7193_v9, 0.0  ;;  %v2354_v34 = vmax.f32 %v7154_v20, 0.0 }
 0x471   : > { %5976 = vmatprep.subr.bf16.mxu0 %v5975_v12  ;;  %5984 = vmatprep.subr.bf16.mxu1 %v5983_v53  ;;  %v5987_v22 = vpack.c.bf16 %v8592_v46, %v8591_v55  ;;  %v2356_v54 = vmax.f32 %v7158_v7, 0.0  ;;  %v2342_v24 = vadd.f32 %v2326_v40, %v2274_v1  ;;  %v2344_v39 = vadd.f32 %v2328_v25, %v2276_v57 }
 0x472   : > { %5978 = vmatpush1.bf16.msra.mxu0 %v5977_v51  ;;  %5986 = vmatpush1.bf16.msra.mxu1 %v5985_v32  ;;  %v2359_v48 = vmax.f32 %v2343_v44, 0.0  ;;  %v2361_v29 = vmax.f32 %v2345_v38, 0.0  ;;  %v5989_v17 = vpack.c.bf16 %v2354_v34, %v2350_v33  ;;  %v2362_v5 = vmax.f32 %v2346_v19, 0.0 }
 0x473   : > { %5988 = vmatprep.subr.bf16.mxu0 %v5987_v22  ;;  %5996 = vmatprep.subr.bf16.mxu1 %v5995_v16  ;;  %v5997_v6 = vpack.c.bf16 %v2356_v54, %v2352_v15  ;;  %v2364_v23 = vmax.f32 %v2348_v8, 0.0  ;;  %v2358_v7 = vmax.f32 %v2342_v24, 0.0  ;;  %v2360_v32 = vmax.f32 %v2344_v39, 0.0 }
 0x474   : > { %v5991_v43 = vpack.c.bf16 %v2363_v30, %v2359_v48  ;;  %v5999_v20 = vpack.c.bf16 %v2365_v3, %v2361_v29 }
 0x475   : > { %5759 = vmatmul.mubr.msk.f32.vlgmr.msra.gmra.mrb[40].mxu0 %vm553_vm0, %v6900_v0  ;;  %5763 = vmatmul.mubr.msk.f32.vlgmr.msra.gmra.mrb[40].mxu1 %vm553_vm0, %v6900_v0  ;;  %v5993_v40 = vpack.c.bf16 %v2362_v5, %v2358_v7  ;;  %v6001_v9 = vpack.c.bf16 %v2364_v23, %v2360_v32  ;;  %v7260_v0 = vld [vmem:[%s8412_s3] sm:$0xff] }
 0x476   : > { %5990 = vmatpush1.bf16.msra.mxu0 %v5989_v17  ;;  %5998 = vmatpush1.bf16.msra.mxu1 %v5997_v6 }
 0x477   : > { %5992 = vmatprep.subr.bf16.mxu0 %v5991_v43  ;;  %6000 = vmatprep.subr.bf16.mxu1 %v5999_v20 }
 0x478   : > { %1968 = vmatprep.mubr.f32.mxu0 %v8566_v27  ;;  %2057 = vmatprep.mubr.f32.mxu1 %v8566_v27 }
 0x479   : > { %5760 = vmatmul.mubr.msk.f32.gmra.mrb[42].mxu0 %vm553_vm0, %v6911_v60  ;;  %5764 = vmatmul.mubr.msk.f32.gmra.mrb[42].mxu1 %vm553_vm0, %v6911_v60  ;;  %v7271_v60 = vld [vmem:[%s8412_s3 + $0x8] sm:$0xff] }
 0x47a   : > { %5994 = vmatpush1.bf16.msra.mxu0 %v5993_v40  ;;  %6002 = vmatpush1.bf16.msra.mxu1 %v6001_v9 }
 0x47b   : > { %1974 = vmatprep.mubr.f32.mxu0 %v8566_v27  ;;  %2063 = vmatprep.mubr.f32.mxu1 %v8566_v27 }
 0x47d   : > { %5761 = vmatmul.mubr.msk.f32.gmra.mrb[44].mxu0 %vm553_vm0, %v6922_v45  ;;  %5765 = vmatmul.mubr.msk.f32.gmra.mrb[44].mxu1 %vm553_vm0, %v6922_v45  ;;  %v7282_v45 = vld [vmem:[%s8412_s3 + $0x10] sm:$0xff] }
 0x47e   : > { %1980 = vmatprep.mubr.f32.mxu0 %v8566_v27  ;;  %2069 = vmatprep.mubr.f32.mxu1 %v8566_v27 }
 0x481   : > { %5762 = vmatmul.mubr.msk.f32.gmra.mrb[46].mxu0 %vm553_vm0, %v6935_v14  ;;  %5766 = vmatmul.mubr.msk.f32.gmra.mrb[46].mxu1 %vm553_vm0, %v6935_v14  ;;  %v7293_v14 = vld [vmem:[%s8412_s3 + $0x18] sm:$0xff] }
 0x482   : > { %2430 = vmatprep.mubr.f32.mxu0 %v8566_v27  ;;  %2519 = vmatprep.mubr.f32.mxu1 %v8566_v27 }
 0x485   : > { %5772 = vmatmul.mubr.msk.f32.vlgmr.msra.gmra.mrb[48].mxu0 %vm553_vm0, %v7260_v0  ;;  %5776 = vmatmul.mubr.msk.f32.vlgmr.msra.gmra.mrb[48].mxu1 %vm553_vm0, %v7260_v0 }
 0x486   : > { %2436 = vmatprep.mubr.f32.mxu0 %v8566_v27  ;;  %2525 = vmatprep.mubr.f32.mxu1 %v8566_v27 }
 0x489   : > { %5773 = vmatmul.mubr.msk.f32.gmra.mrb[50].mxu0 %vm553_vm0, %v7271_v60  ;;  %5777 = vmatmul.mubr.msk.f32.gmra.mrb[50].mxu1 %vm553_vm0, %v7271_v60 }
 0x48a   : > { %2442 = vmatprep.mubr.f32.mxu0 %v8566_v27  ;;  %2531 = vmatprep.mubr.f32.mxu1 %v8566_v27 }
 0x48d   : > { %5774 = vmatmul.mubr.msk.f32.gmra.mrb[52].mxu0 %vm553_vm0, %v7282_v45  ;;  %5778 = vmatmul.mubr.msk.f32.gmra.mrb[52].mxu1 %vm553_vm0, %v7282_v45 }
 0x48e   : > { %2448 = vmatprep.mubr.f32.mxu0 %v8566_v27  ;;  %2537 = vmatprep.mubr.f32.mxu1 %v8566_v27 }
 0x491   : > { %5775 = vmatmul.mubr.msk.f32.gmra.mrb[54].mxu0 %vm553_vm0, %v7293_v14  ;;  %5779 = vmatmul.mubr.msk.f32.gmra.mrb[54].mxu1 %vm553_vm0, %v7293_v14 }
 0x492   : > { %2624 = vmatprep.mubr.f32.mxu0 %v8566_v27  ;;  %2713 = vmatprep.mubr.f32.mxu1 %v8566_v27 }
 0x548   : > { %v1964_v1 = vpop.f32.mrb[40].mxu0  ;;  %v2053_v51 = vpop.f32.mrb[40].mxu1 }
 0x549   : > { %v1965_v44 = vadd.f32 %v1964_v1, %v6967_v56  ;;  %v2054_v35 = vadd.f32 %v2053_v51, %v6967_v56  ;;  %v1966_v57 = vpop.f32.mrb[41].mxu0  ;;  %v2055_v31 = vpop.f32.mrb[41].mxu1 }
 0x54a   : > { %v1967_v2 = vadd.f32 %v1966_v57, %v6967_v56  ;;  %v2056_v63 = vadd.f32 %v2055_v31, %v6967_v56 }
 0x54b   : > { %v2076_v49 = vmax.f32 %v1965_v44, 0.0  ;;  %v2078_v28 = vmax.f32 %v2054_v35, 0.0 }
 0x54c   : > { %v2077_v52 = vmax.f32 %v1967_v2, 0.0  ;;  %v2079_v21 = vmax.f32 %v2056_v63, 0.0  ;;  %v1970_v37 = vpop.f32.mrb[42].mxu0  ;;  %v2059_v50 = vpop.f32.mrb[42].mxu1 }
 0x54d   : > { %v1971_v4 = vadd.f32 %v1970_v37, %v6969_v58  ;;  %v2060_v25 = vadd.f32 %v2059_v50, %v6969_v58  ;;  %v1972_v12 = vpop.f32.mrb[43].mxu0  ;;  %v2061_v53 = vpop.f32.mrb[43].mxu1  ;;  %v2092_v15 = vmul.f32 %v2076_v49, %v6979_v62  ;;  %v2094_v19 = vmul.f32 %v2078_v28, %v6979_v62 }
 0x54e   : > { %v1973_v38 = vadd.f32 %v1972_v12, %v6969_v58  ;;  %v2062_v33 = vadd.f32 %v2061_v53, %v6969_v58  ;;  %v2093_v46 = vmul.f32 %v2077_v52, %v6979_v62  ;;  %v2095_v22 = vmul.f32 %v2079_v21, %v6979_v62 }
 0x54f   : > { %v2080_v8 = vmax.f32 %v1971_v4, 0.0  ;;  %v2082_v55 = vmax.f32 %v2060_v25, 0.0 }
 0x550   : > { %v2081_v16 = vmax.f32 %v1973_v38, 0.0  ;;  %v2083_v30 = vmax.f32 %v2062_v33, 0.0  ;;  %v1976_v3 = vpop.f32.mrb[44].mxu0  ;;  %v2065_v34 = vpop.f32.mrb[44].mxu1 }
 0x551   : > { %v2096_v54 = vmul.f32 %v2080_v8, %v6987_v26  ;;  %v2098_v24 = vmul.f32 %v2082_v55, %v6987_v26  ;;  %v1977_v39 = vadd.f32 %v1976_v3, %v6971_v10  ;;  %v2066_v48 = vadd.f32 %v2065_v34, %v6971_v10  ;;  %v1978_v29 = vpop.f32.mrb[45].mxu0  ;;  %v2067_v17 = vpop.f32.mrb[45].mxu1 }
 0x552   : > { %v2097_v6 = vmul.f32 %v2081_v16, %v6987_v26  ;;  %v2099_v5 = vmul.f32 %v2083_v30, %v6987_v26  ;;  %v1979_v23 = vadd.f32 %v1978_v29, %v6971_v10  ;;  %v2068_v43 = vadd.f32 %v2067_v17, %v6971_v10  ;;  %v8593_v30 = vld [vmem:[#allocation17_spill] sm:$0xff] }
 0x553   : > { %v2108_v20 = vadd.f32 %v2096_v54, %v2092_v15  ;;  %v2126_v7 = vadd.f32 %v2098_v24, %v2094_v19  ;;  %v2084_v32 = vmax.f32 %v1977_v39, 0.0  ;;  %v2086_v40 = vmax.f32 %v2066_v48, 0.0 }
 0x554   : > { %v2117_v9 = vadd.f32 %v2097_v6, %v2093_v46  ;;  %v2135_v1 = vadd.f32 %v2099_v5, %v2095_v22  ;;  %v2085_v51 = vmax.f32 %v1979_v23, 0.0  ;;  %v2087_v44 = vmax.f32 %v2068_v43, 0.0  ;;  %v1982_v35 = vpop.f32.mrb[46].mxu0  ;;  %v2071_v57 = vpop.f32.mrb[46].mxu1 }
 0x555   : > { %v2100_v31 = vmul.f32 %v2084_v32, %v7001_v36  ;;  %v2102_v2 = vmul.f32 %v2086_v40, %v7001_v36  ;;  %v1983_v63 = vadd.f32 %v1982_v35, %v6973_v11  ;;  %v2072_v49 = vadd.f32 %v2071_v57, %v6973_v11  ;;  %v1984_v28 = vpop.f32.mrb[47].mxu0  ;;  %v2073_v52 = vpop.f32.mrb[47].mxu1  ;;  %v8594_v35 = vld [vmem:[#allocation19_spill] sm:$0xff] }
 0x556   : > { %v2101_v21 = vmul.f32 %v2085_v51, %v7001_v36  ;;  %v2103_v37 = vmul.f32 %v2087_v44, %v7001_v36  ;;  %v1985_v50 = vadd.f32 %v1984_v28, %v6973_v11  ;;  %v2074_v4 = vadd.f32 %v2073_v52, %v6973_v11 }
 0x557   : > { %v2109_v25 = vadd.f32 %v2108_v20, %v2100_v31  ;;  %v2127_v12 = vadd.f32 %v2126_v7, %v2102_v2  ;;  %v2088_v53 = vmax.f32 %v1983_v63, 0.0  ;;  %v2090_v38 = vmax.f32 %v2072_v49, 0.0 }
 0x558   : > { %v2118_v33 = vadd.f32 %v2117_v9, %v2101_v21  ;;  %v2136_v15 = vadd.f32 %v2135_v1, %v2103_v37  ;;  %v2089_v19 = vmax.f32 %v1985_v50, 0.0  ;;  %v2091_v8 = vmax.f32 %v2074_v4, 0.0  ;;  %v2432_v55 = vpop.f32.mrb[48].mxu0  ;;  %v2521_v46 = vpop.f32.mrb[48].mxu1 }
 0x559   : > { %v2104_v22 = vmul.f32 %v2088_v53, %v7011_v59  ;;  %v2106_v16 = vmul.f32 %v2090_v38, %v7011_v59  ;;  %v2433_v3 = vadd.f32 %v2432_v55, %v8593_v30  ;;  %v2522_v34 = vadd.f32 %v2521_v46, %v8593_v30  ;;  %v2434_v54 = vpop.f32.mrb[49].mxu0  ;;  %v2523_v24 = vpop.f32.mrb[49].mxu1 }
 0x55a   : > { %v2105_v39 = vmul.f32 %v2089_v19, %v7011_v59  ;;  %v2107_v48 = vmul.f32 %v2091_v8, %v7011_v59  ;;  %v2435_v29 = vadd.f32 %v2434_v54, %v8593_v30  ;;  %v2524_v17 = vadd.f32 %v2523_v24, %v8593_v30 }
 0x55b   : > { %v2110_v6 = vadd.f32 %v2109_v25, %v2104_v22  ;;  %v2128_v5 = vadd.f32 %v2127_v12, %v2106_v16  ;;  %v2544_v23 = vmax.f32 %v2433_v3, 0.0  ;;  %v2546_v43 = vmax.f32 %v2522_v34, 0.0 }
 0x55c   : > { %v2119_v20 = vadd.f32 %v2118_v33, %v2105_v39  ;;  %v2137_v7 = vadd.f32 %v2136_v15, %v2107_v48  ;;  %v2545_v32 = vmax.f32 %v2435_v29, 0.0  ;;  %v2547_v40 = vmax.f32 %v2524_v17, 0.0  ;;  %v2438_v9 = vpop.f32.mrb[50].mxu0  ;;  %v2527_v1 = vpop.f32.mrb[50].mxu1  ;;  %v8595_v17 = vld [vmem:[#allocation18_spill] sm:$0xff] }
 0x55d   : > { %v2111_v51 = vrot.slane %v2110_v6, 4  ;;  %v2129_v44 = vrot.slane %v2128_v5, 4  ;;  %v2439_v57 = vadd.f32 %v2438_v9, %v8594_v35  ;;  %v2528_v31 = vadd.f32 %v2527_v1, %v8594_v35  ;;  %v2440_v2 = vpop.f32.mrb[51].mxu0  ;;  %v2529_v63 = vpop.f32.mrb[51].mxu1 }
 0x55e   : > { %v2120_v49 = vrot.slane %v2119_v20, 4  ;;  %v2138_v28 = vrot.slane %v2137_v7, 4  ;;  %v2441_v52 = vadd.f32 %v2440_v2, %v8594_v35  ;;  %v2530_v21 = vadd.f32 %v2529_v63, %v8594_v35 }
 0x55f   : > { %v2112_v37 = vadd.f32 %v2111_v51, %v2110_v6  ;;  %v2130_v50 = vadd.f32 %v2129_v44, %v2128_v5  ;;  %v2548_v4 = vmax.f32 %v2439_v57, 0.0  ;;  %v2550_v25 = vmax.f32 %v2528_v31, 0.0 }
 0x560   : > { %v2121_v12 = vadd.f32 %v2120_v49, %v2119_v20  ;;  %v2139_v53 = vadd.f32 %v2138_v28, %v2137_v7  ;;  %v2549_v38 = vmax.f32 %v2441_v52, 0.0  ;;  %v2551_v33 = vmax.f32 %v2530_v21, 0.0  ;;  %v2444_v15 = vpop.f32.mrb[52].mxu0  ;;  %v2533_v19 = vpop.f32.mrb[52].mxu1 }
 0x561   : > { %v2113_v8 = vrot.slane %v2112_v37, 2  ;;  %v2131_v55 = vrot.slane %v2130_v50, 2  ;;  %v6005_v46 = vpack.c.bf16 %v2548_v4, %v2544_v23  ;;  %v6013_v22 = vpack.c.bf16 %v2550_v25, %v2546_v43  ;;  %v2446_v16 = vpop.f32.mrb[53].mxu0  ;;  %v2535_v3 = vpop.f32.mrb[53].mxu1 }
 0x562   : > { %v2122_v34 = vrot.slane %v2121_v12, 2  ;;  %v2140_v54 = vrot.slane %v2139_v53, 2  ;;  %v6003_v24 = vpack.c.bf16 %v2549_v38, %v2545_v32  ;;  %v6011_v39 = vpack.c.bf16 %v2551_v33, %v2547_v40  ;;  %v8597_v33 = vld [vmem:[#allocation25_spill] sm:$0xff] }
 0x563   : > { %v2114_v48 = vadd.f32 %v2113_v8, %v2112_v37  ;;  %v2132_v29 = vadd.f32 %v2131_v55, %v2130_v50  ;;  %v2445_v6 = vadd.f32 %v2444_v15, %v8595_v17  ;;  %v2534_v5 = vadd.f32 %v2533_v19, %v8595_v17  ;;  %v8596_v37 = vld [vmem:[#allocation20_spill] sm:$0xff] }
 0x564   : > { %v2123_v20 = vadd.f32 %v2122_v34, %v2121_v12  ;;  %v2141_v7 = vadd.f32 %v2140_v54, %v2139_v53  ;;  %v2447_v9 = vadd.f32 %v2446_v16, %v8595_v17  ;;  %v2536_v1 = vadd.f32 %v2535_v3, %v8595_v17  ;;  %v2450_v23 = vpop.f32.mrb[54].mxu0  ;;  %v2539_v43 = vpop.f32.mrb[54].mxu1  ;;  %6004 = vmatprep.subr.bf16.mxu0 %v6003_v24 }
 0x565   : > { %v2115_v51 = vrot.slane %v2114_v48, 1  ;;  %v2133_v44 = vrot.slane %v2132_v29, 1  ;;  %v2552_v57 = vmax.f32 %v2445_v6, 0.0  ;;  %v2554_v32 = vmax.f32 %v2534_v5, 0.0  ;;  %6012 = vmatprep.subr.bf16.mxu1 %v6011_v39  ;;  %v2452_v40 = vpop.f32.mrb[55].mxu0  ;;  %v2541_v31 = vpop.f32.mrb[55].mxu1  ;;  %6006 = vmatpush1.bf16.msra.mxu0 %v6005_v46 }
 0x566   : > { %v2124_v2 = vrot.slane %v2123_v20, 1  ;;  %v2142_v63 = vrot.slane %v2141_v7, 1  ;;  %v2553_v49 = vmax.f32 %v2447_v9, 0.0  ;;  %v2555_v28 = vmax.f32 %v2536_v1, 0.0  ;;  %6014 = vmatpush1.bf16.msra.mxu1 %v6013_v22 }
 0x567   : > { %v2116_v52 = vadd.f32 %v2115_v51, %v2114_v48  ;;  %v2134_v21 = vadd.f32 %v2133_v44, %v2132_v29  ;;  %v2451_v50 = vadd.f32 %v2450_v23, %v8596_v37  ;;  %v2540_v4 = vadd.f32 %v2539_v43, %v8596_v37 }
 0x568   : > { %v2125_v25 = vadd.f32 %v2124_v2, %v2123_v20  ;;  %v2143_v12 = vadd.f32 %v2142_v63, %v2141_v7  ;;  %v2453_v53 = vadd.f32 %v2452_v40, %v8596_v37  ;;  %v2542_v38 = vadd.f32 %v2541_v31, %v8596_v37  ;;  %v7356_v20 = vld [vmem:[%s8412_s3 + $0x20] sm:$0xff]  ;;  %v7367_v7 = vld [vmem:[%s8412_s3 + $0x28] sm:$0xff]  ;;  %v7389_v31 = vld [vmem:[%s8412_s3 + $0x38] sm:$0xff] }
 0x569   : > { %v2144_v15 = vadd.f32 %v2116_v52, %v8597_v33  ;;  %v2146_v19 = vadd.f32 %v2134_v21, %v8597_v33  ;;  %v2556_v8 = vmax.f32 %v2451_v50, 0.0  ;;  %v2558_v55 = vmax.f32 %v2540_v4, 0.0  ;;  %8598 = vst [vmem:[#allocation28_spill] sm:$0xff] %v7356_v20  ;;  %8599 = vst [vmem:[#allocation29_spill] sm:$0xff] %v7367_v7 }
 0x56a   : > { %v2145_v46 = vadd.f32 %v2125_v25, %v8597_v33  ;;  %v2147_v22 = vadd.f32 %v2143_v12, %v8597_v33  ;;  %v2557_v16 = vmax.f32 %v2453_v53, 0.0  ;;  %v2559_v3 = vmax.f32 %v2542_v38, 0.0  ;;  %8601 = vst [vmem:[#allocation31_spill] sm:$0xff] %v7389_v31 }
 0x56b   : > { %v5767_v34 = vmul.f32 -1.442695, %v2144_v15  ;;  %v5769_v54 = vmul.f32 -1.442695, %v2146_v19  ;;  %v6009_v24 = vpack.c.bf16 %v2556_v8, %v2552_v57  ;;  %v6017_v39 = vpack.c.bf16 %v2558_v55, %v2554_v32  ;;  %v7378_v32 = vld [vmem:[%s8412_s3 + $0x30] sm:$0xff]  ;;  %v8602_v8 = vld [vmem:[#allocation26_spill] sm:$0xff] }
 0x56c   : > { %v5768_v48 = vmul.f32 -1.442695, %v2145_v46  ;;  %v5770_v29 = vmul.f32 -1.442695, %v2147_v22  ;;  %v6007_v6 = vpack.c.bf16 %v2557_v16, %v2553_v49  ;;  %v6015_v5 = vpack.c.bf16 %v2559_v3, %v2555_v28  ;;  %8600 = vst [vmem:[#allocation30_spill] sm:$0xff] %v7378_v32 }
 0x56d   : > { %6215 = vpow2.f32 %v5767_v34  ;;  %v3068_v34 = vld [vmem:[%s6465_s12 + $0x18] sm:$0xff] }
 0x56e   : > { %6217 = vpow2.f32 %v5769_v54  ;;  %6008 = vmatprep.subr.bf16.mxu0 %v6007_v6  ;;  %6016 = vmatprep.subr.bf16.mxu1 %v6015_v5  ;;  %v8604_v54 = vld [vmem:[#allocation3_spill] sm:$0xff]  ;;  %v8607_v5 = vld [vmem:[#allocation6_spill] sm:$0xff] }
 0x56f   : > { %6219 = vpow2.f32 %v5768_v48  ;;  %6010 = vmatpush1.bf16.msra.mxu0 %v6009_v24  ;;  %6018 = vmatpush1.bf16.msra.mxu1 %v6017_v39  ;;  %v3077_v24 = vrot.slane %v3068_v34, %v8604_v54  ;;  %v8605_v39 = vld [vmem:[#allocation5_spill] sm:$0xff] }
 0x570   : > { %6221 = vpow2.f32 %v5770_v29  ;;  %v3145_v48 = vrot.slane %v3068_v34, %v8605_v39  ;;  %v8606_v29 = vld [vmem:[#allocation4_spill] sm:$0xff] }
 0x571   : > { %v3097_v6 = vrot.slane %v3077_v24, %v8606_v29 }
 0x572   : > { %5780 = vmatmul.mubr.msk.f32.vlgmr.msra.gmra.mrb[56].mxu0 %vm553_vm0, %v7356_v20  ;;  %5784 = vmatmul.mubr.msk.f32.vlgmr.msra.gmra.mrb[56].mxu1 %vm553_vm0, %v7356_v20 }
 0x573   : > { %2630 = vmatprep.mubr.f32.mxu0 %v8566_v27  ;;  %2719 = vmatprep.mubr.f32.mxu1 %v8566_v27 }
 0x576   : > { %5781 = vmatmul.mubr.msk.f32.gmra.mrb[58].mxu0 %vm553_vm0, %v7367_v7  ;;  %5785 = vmatmul.mubr.msk.f32.gmra.mrb[58].mxu1 %vm553_vm0, %v7367_v7 }
 0x577   : > { %v6216_v9 = vpop.eup %6215  ;;  %2636 = vmatprep.mubr.f32.mxu0 %v8566_v27  ;;  %2725 = vmatprep.mubr.f32.mxu1 %v8566_v27 }
 0x578   : > { %v6218_v1 = vpop.eup %6217  ;;  %v2160_v23 = vadd.f32 1.0, %v6216_v9  ;;  %v3085_v9 = vrot.slane %v3068_v34, %v8607_v5 }
 0x579   : > { %v6220_v43 = vpop.eup %6219  ;;  %v2162_v51 = vadd.f32 1.0, %v6218_v1  ;;  %v8608_v1 = vld [vmem:[#allocation7_spill] sm:$0xff] }
 0x57a   : > { %v6222_v44 = vpop.eup %6221  ;;  %6223 = vrcp.f32 %v2160_v23  ;;  %v2161_v57 = vadd.f32 1.0, %v6220_v43  ;;  %5782 = vmatmul.mubr.msk.f32.gmra.mrb[60].mxu0 %vm553_vm0, %v7378_v32  ;;  %5786 = vmatmul.mubr.msk.f32.gmra.mrb[60].mxu1 %vm553_vm0, %v7378_v32  ;;  %v3165_v23 = vrot.slane %v3145_v48, %v8608_v1  ;;  %v3073_v43 = vrot.slane %v3068_v34, %v8606_v29 }
 0x57b   : > { %6225 = vrcp.f32 %v2162_v51  ;;  %v2163_v40 = vadd.f32 1.0, %v6222_v44  ;;  %2642 = vmatprep.mubr.f32.mxu0 %v8566_v27  ;;  %2731 = vmatprep.mubr.f32.mxu1 %v8566_v27  ;;  %v8609_v51 = vld [vmem:[#allocation9_spill] sm:$0xff] }
 0x57c   : > { %6227 = vrcp.f32 %v2161_v57  ;;  %v3081_v44 = vrot.slane %v3068_v34, %v8609_v51  ;;  %v8610_v57 = vld [vmem:[#allocation12_spill] sm:$0xff]  ;;  %v3115_v51 = vmul.f32 %v3097_v6, %v6567_v18 }
 0x57d   : > { %6229 = vrcp.f32 %v2163_v40  ;;  %v3107_v40 = vmul.f32 %v3097_v6, %v8610_v57 }
 0x57e   : > { %5783 = vmatmul.mubr.msk.f32.gmra.mrb[62].mxu0 %vm553_vm0, %v7389_v31  ;;  %5787 = vmatmul.mubr.msk.f32.gmra.mrb[62].mxu1 %vm553_vm0, %v7389_v31 }
 0x57f   : > { %2818 = vmatprep.mubr.f32.mxu0 %v8566_v27  ;;  %2907 = vmatprep.mubr.f32.mxu1 %v8566_v27 }
 0x584   : > { %v6224_v2 = vpop.eup %6223 }
 0x585   : > { %v6226_v63 = vpop.eup %6225  ;;  %v2172_v49 = vmul.f32 0.995, %v6224_v2  ;;  %v8611_v2 = vld [vmem:[#allocation14_spill] sm:$0xff] }
 0x586   : > { %v6228_v28 = vpop.eup %6227  ;;  %v2174_v52 = vmul.f32 0.995, %v6226_v63  ;;  %v3111_v63 = vmul.f32 %v3097_v6, %v8611_v2 }
 0x587   : > { %v6230_v21 = vpop.eup %6229  ;;  %v2176_v50 = vadd.f32 0.005, %v2172_v49  ;;  %v2173_v4 = vmul.f32 0.995, %v6228_v28  ;;  %v3105_v49 = vrot.slane %v3085_v9, %v8606_v29  ;;  %v8612_v28 = vld [vmem:[#allocation8_spill] sm:$0xff] }
 0x588   : > { %v2178_v25 = vadd.f32 0.005, %v2174_v52  ;;  %v2175_v12 = vmul.f32 0.995, %v6230_v21  ;;  %v3153_v52 = vrot.slane %v3068_v34, %v8612_v28  ;;  %v3141_v21 = vrot.slane %v3068_v34, %v8608_v1 }
 0x589   : > { %v2177_v53 = vadd.f32 0.005, %v2173_v4  ;;  %v3109_v24 = vmul.f32 %v3105_v49, %v8610_v57 }
 0x58a   : > { %v2179_v38 = vadd.f32 0.005, %v2175_v12  ;;  %v3173_v48 = vrot.slane %v3153_v52, %v8608_v1  ;;  %v7430_v9 = vrot.slane %v3141_v21, %v8608_v1 }
 0x58b   : > { %v2184_v15 = vcombine.low %v2176_v50, %v2177_v53  ;;  %v8613_v50 = vld [vmem:[#allocation16_spill] sm:$0xff]  ;;  %v8615_v53 = vld [vmem:[#allocation10_spill] sm:$0xff] }
 0x58c   : > { %v2185_v19 = vcombine.low %v2178_v25, %v2179_v38  ;;  %v3175_v4 = vmul.f32 %v3165_v23, %v8613_v50  ;;  %v8614_v25 = vld [vmem:[#allocation15_spill] sm:$0xff]  ;;  %v3149_v38 = vrot.slane %v3068_v34, %v8615_v53 }
 0x58d   : > { %v2192_v55 = vrot.slane %v2184_v15, %v8602_v8  ;;  %v3179_v12 = vmul.f32 %v3165_v23, %v8614_v25  ;;  %v7420_v15 = vrot.slane %v3073_v43, %v8606_v29  ;;  %v3113_v43 = vmul.f32 %v3105_v49, %v8611_v2 }
 0x58e   : > { %v2199_v46 = vrot.slane %v2185_v19, %v8602_v8  ;;  %v7423_v19 = vrot.slane %v3081_v44, %v8606_v29  ;;  %v7438_v44 = vrot.slane %v3149_v38, %v8608_v1  ;;  %v3174_v38 = vmul.f32 %v7430_v9, %v8613_v50 }
 0x58f   : > { %v3110_v52 = vmul.f32 %v7420_v15, %v8611_v2 }
 0x590   : > { %v2200_v22 = vcombine.low %v2192_v55, %v2199_v46  ;;  %v8616_v55 = vld [vmem:[#allocation11_spill] sm:$0xff]  ;;  %v3108_v21 = vmul.f32 %v7423_v19, %v8610_v57  ;;  %v3176_v53 = vmul.f32 %v7438_v44, %v8613_v50 }
 0x591   : > { %v3123_v46 = vadd.f32 %v3107_v40, %v8616_v55  ;;  %v3177_v40 = vmul.f32 %v3173_v48, %v8613_v50 }
 0x592   : > { %v2207_v16 = vrot.slane %v2200_v22, %v8602_v8  ;;  %v8617_v22 = vld [vmem:[#allocation13_spill] sm:$0xff]  ;;  %v3124_v39 = vadd.f32 %v3108_v21, %v8616_v55 }
 0x593   : > { %v7432_v28 = vadd.f32 %v3175_v4, %v3123_v46  ;;  %v3125_v4 = vadd.f32 %v3109_v24, %v8616_v55  ;;  %v3181_v46 = vmul.f32 %v3173_v48, %v8614_v25  ;;  %v3129_v24 = vadd.f32 %v3113_v43, %v8617_v22 }
 0x594   : > { %5771 = vst.msk [vmem:[%s7071_s20 + $0x1] ss:$8 sm:$0xf] %vm7074_vm1, %v2207_v16  ;;  %v3127_v16 = vadd.f32 %v3111_v63, %v8617_v22  ;;  %v3106_v63 = vmul.f32 %v7420_v15, %v8610_v57  ;;  %v3126_v29 = vadd.f32 %v3110_v52, %v8617_v22  ;;  %v3119_v57 = vmul.f32 %v3097_v6, %v6538_v61 }
 0x595   : > { %v7462_v1 = vadd.f32 %v3177_v40, %v3125_v4  ;;  %v3187_v43 = vmul.f32 %v3165_v23, %v6615_v41  ;;  %v7471_v40 = vadd.f32 %v3181_v46, %v3129_v24  ;;  %v7477_v52 = vadd.f32 %v3176_v53, %v3124_v39 }
 0x596   : > { %v7434_v34 = vadd.f32 %v3179_v12, %v3127_v16  ;;  %v3112_v12 = vmul.f32 %v7423_v19, %v8611_v2  ;;  %v3178_v16 = vmul.f32 %v7430_v9, %v8614_v25  ;;  %v3180_v2 = vmul.f32 %v7438_v44, %v8614_v25 }
 0x597   : > { %v3122_v5 = vadd.f32 %v3106_v63, %v8616_v55  ;;  %v3117_v6 = vmul.f32 %v3105_v49, %v6567_v18  ;;  %v8618_v55 = vld [vmem:[#allocation21_spill] sm:$0xff]  ;;  %v7502_v24 = vmul.f32 %v3173_v48, %v6580_v42 }
 0x598   : > { %v3128_v50 = vadd.f32 %v3112_v12, %v8617_v22  ;;  %v7475_v63 = vadd.f32 %v3178_v16, %v3126_v29  ;;  %v7482_v12 = vadd.f32 %v3115_v51, %v6582_v47  ;;  %v3135_v22 = vadd.f32 %v3119_v57, %v6597_v13 }
 0x599   : > { %v7473_v4 = vadd.f32 %v3174_v38, %v3122_v5  ;;  %v7489_v5 = vmul.f32 %v3165_v23, %v6580_v42  ;;  %v3121_v29 = vmul.f32 %v3105_v49, %v6538_v61  ;;  %v7497_v57 = vadd.f32 %v3117_v6, %v6582_v47  ;;  %v8619_v38 = vld [vmem:[#allocation22_spill] sm:$0xff] }
 0x59a   : > { %v7479_v21 = vadd.f32 %v3180_v2, %v3128_v50  ;;  %v7494_v53 = vadd.f32 %v3187_v43, %v3135_v22  ;;  %v3114_v43 = vmul.f32 %v7420_v15, %v6567_v18 }
 0x59b   : > { %v3137_v22 = vadd.f32 %v3121_v29, %v6597_v13  ;;  %v3118_v29 = vmul.f32 %v7420_v15, %v6538_v61 }
 0x645   : > { %v2626_v54 = vpop.f32.mrb[56].mxu0  ;;  %v2715_v3 = vpop.f32.mrb[56].mxu1 }
 0x646   : > { %v2628_v8 = vpop.f32.mrb[57].mxu0  ;;  %v2717_v25 = vpop.f32.mrb[57].mxu1  ;;  %v2627_v31 = vadd.f32 %v2626_v54, %v8618_v55  ;;  %v2716_v46 = vadd.f32 %v2715_v3, %v8618_v55 }
 0x647   : > { %v2629_v39 = vadd.f32 %v2628_v8, %v8618_v55  ;;  %v2718_v2 = vadd.f32 %v2717_v25, %v8618_v55  ;;  %v3189_v8 = vmul.f32 %v3173_v48, %v6615_v41 }
 0x648   : > { %v2738_v6 = vmax.f32 %v2627_v31, 0.0 }
 0x649   : > { %v2632_v50 = vpop.f32.mrb[58].mxu0  ;;  %v2721_v51 = vpop.f32.mrb[58].mxu1  ;;  %v2739_v32 = vmax.f32 %v2629_v39, 0.0  ;;  %v2741_v7 = vmax.f32 %v2718_v2, 0.0  ;;  %v3130_v39 = vadd.f32 %v3114_v43, %v6582_v47  ;;  %v8620_v2 = vld [vmem:[#allocation23_spill] sm:$0xff]  ;;  %v3213_v43 = vmax.f32 %v7471_v40, 0.0 }
 0x64a   : > { %v2633_v54 = vadd.f32 %v2632_v50, %v8619_v38  ;;  %v2722_v3 = vadd.f32 %v2721_v51, %v8619_v38  ;;  %v2634_v16 = vpop.f32.mrb[59].mxu0  ;;  %v2723_v23 = vpop.f32.mrb[59].mxu1  ;;  %v2740_v50 = vmax.f32 %v2716_v46, 0.0 }
 0x64b   : > { %v2635_v49 = vadd.f32 %v2634_v16, %v8619_v38  ;;  %v2724_v25 = vadd.f32 %v2723_v23, %v8619_v38  ;;  %v3182_v23 = vmul.f32 %v7430_v9, %v6580_v42 }
 0x64c   : > { %v2742_v55 = vmax.f32 %v2633_v54, 0.0  ;;  %v2744_v51 = vmax.f32 %v2722_v3, 0.0  ;;  %v7514_v54 = vadd.f32 %v3189_v8, %v3137_v22 }
 0x64d   : > { %v2743_v20 = vmax.f32 %v2635_v49, 0.0  ;;  %v2745_v33 = vmax.f32 %v2724_v25, 0.0  ;;  %v2638_v37 = vpop.f32.mrb[60].mxu0  ;;  %v2727_v17 = vpop.f32.mrb[60].mxu1  ;;  %v3116_v25 = vmul.f32 %v7423_v19, %v6567_v18 }
 0x64e   : > { %v6021_v48 = vpack.c.bf16 %v2742_v55, %v2738_v6  ;;  %v6029_v35 = vpack.c.bf16 %v2744_v51, %v2740_v50  ;;  %v2640_v16 = vpop.f32.mrb[61].mxu0  ;;  %v2729_v30 = vpop.f32.mrb[61].mxu1  ;;  %v2639_v3 = vadd.f32 %v2638_v37, %v8620_v2  ;;  %v2728_v49 = vadd.f32 %v2727_v17, %v8620_v2 }
 0x64f   : > { %v6019_v31 = vpack.c.bf16 %v2743_v20, %v2739_v32  ;;  %v6027_v46 = vpack.c.bf16 %v2745_v33, %v2741_v7  ;;  %v3186_v55 = vmul.f32 %v7430_v9, %v6615_v41  ;;  %v2641_v15 = vadd.f32 %v2640_v16, %v8620_v2  ;;  %v8621_v32 = vld [vmem:[#allocation24_spill] sm:$0xff] }
 0x650   : > { %v2730_v6 = vadd.f32 %v2729_v30, %v8620_v2  ;;  %v3209_v7 = vmax.f32 %v7462_v1, 0.0  ;;  %v3134_v37 = vadd.f32 %v3118_v29, %v6597_v13  ;;  %v3120_v30 = vmul.f32 %v7423_v19, %v6538_v61 }
 0x651   : > { %v2644_v20 = vpop.f32.mrb[62].mxu0  ;;  %v2733_v33 = vpop.f32.mrb[62].mxu1  ;;  %6020 = vmatprep.subr.bf16.mxu0 %v6019_v31  ;;  %6028 = vmatprep.subr.bf16.mxu1 %v6027_v46  ;;  %v3132_v1 = vadd.f32 %v3116_v25, %v6582_v47  ;;  %v3188_v16 = vmul.f32 %v7438_v44, %v6615_v41  ;;  %v2746_v29 = vmax.f32 %v2639_v3, 0.0  ;;  %v2748_v31 = vmax.f32 %v2728_v49, 0.0 }
 0x652   : > { %v2645_v17 = vadd.f32 %v2644_v20, %v8621_v32  ;;  %v2734_v8 = vadd.f32 %v2733_v33, %v8621_v32  ;;  %v2646_v9 = vpop.f32.mrb[63].mxu0  ;;  %v2735_v22 = vpop.f32.mrb[63].mxu1  ;;  %6022 = vmatpush1.bf16.msra.mxu0 %v6021_v48  ;;  %6030 = vmatpush1.bf16.msra.mxu1 %v6029_v35  ;;  %v2747_v48 = vmax.f32 %v2641_v15, 0.0  ;;  %v2749_v35 = vmax.f32 %v2730_v6, 0.0 }
 0x653   : > { %v2647_v50 = vadd.f32 %v2646_v9, %v8621_v32  ;;  %v2736_v51 = vadd.f32 %v2735_v22, %v8621_v32  ;;  %v3136_v19 = vadd.f32 %v3120_v30, %v6597_v13  ;;  %v3184_v9 = vmul.f32 %v7438_v44, %v6580_v42 }
 0x654   : > { %v2750_v46 = vmax.f32 %v2645_v17, 0.0  ;;  %v2752_v20 = vmax.f32 %v2734_v8, 0.0  ;;  %v3199_v32 = vadd.f32 %v7489_v5, %v7482_v12  ;;  %v3201_v3 = vadd.f32 %v7502_v24, %v7497_v57 }
 0x655   : > { %v2751_v33 = vmax.f32 %v2647_v50, 0.0  ;;  %v2753_v40 = vmax.f32 %v2736_v51, 0.0  ;;  %v3206_v49 = vmax.f32 %v7473_v4, 0.0  ;;  %v3208_v15 = vmax.f32 %v7477_v52, 0.0 }
 0x656   : > { %v6025_v2 = vpack.c.bf16 %v2750_v46, %v2746_v29  ;;  %v6033_v38 = vpack.c.bf16 %v2752_v20, %v2748_v31  ;;  %v3202_v6 = vadd.f32 %v3186_v55, %v3134_v37  ;;  %v3204_v17 = vadd.f32 %v3188_v16, %v3136_v19 }
 0x657   : > { %v6023_v22 = vpack.c.bf16 %v2751_v33, %v2747_v48  ;;  %v6031_v25 = vpack.c.bf16 %v2753_v40, %v2749_v35  ;;  %v8622_v8 = vmax.f32 %v7432_v28, 0.0  ;;  %v8623_v44 = vmax.f32 %v7434_v34, 0.0 }
 0x658   : > { %v6043_v50 = vpack.c.bf16 %v3213_v43, %v3209_v7  ;;  %v3219_v51 = vmax.f32 %v7494_v53, 0.0  ;;  %v3221_v12 = vmax.f32 %v7514_v54, 0.0  ;;  %v3210_v4 = vmax.f32 %v7475_v63, 0.0  ;;  %v7557_v53 = vld [vmem:[%s8412_s3 + $0x40] sm:$0xff]  ;;  %v7590_v43 = vld [vmem:[%s8412_s3 + $0x58] sm:$0xff] }
 0x659   : > { %6024 = vmatprep.subr.bf16.mxu0 %v6023_v22  ;;  %6032 = vmatprep.subr.bf16.mxu1 %v6031_v25  ;;  %v6035_v30 = vpack.c.bf16 %v8623_v44, %v8622_v8  ;;  %v3212_v52 = vmax.f32 %v7479_v21, 0.0  ;;  %v3198_v5 = vadd.f32 %v3182_v23, %v3130_v39  ;;  %v3200_v57 = vadd.f32 %v3184_v9, %v3132_v1 }
 0x65a   : > { %6026 = vmatpush1.bf16.msra.mxu0 %v6025_v2  ;;  %6034 = vmatpush1.bf16.msra.mxu1 %v6033_v38  ;;  %v3215_v24 = vmax.f32 %v3199_v32, 0.0  ;;  %v3217_v28 = vmax.f32 %v3201_v3, 0.0  ;;  %v6037_v55 = vpack.c.bf16 %v3210_v4, %v3206_v49  ;;  %v3218_v37 = vmax.f32 %v3202_v6, 0.0  ;;  %v7568_v2 = vld [vmem:[%s8412_s3 + $0x48] sm:$0xff]  ;;  %v7579_v32 = vld [vmem:[%s8412_s3 + $0x50] sm:$0xff] }
 0x65b   : > { %6036 = vmatprep.subr.bf16.mxu0 %v6035_v30  ;;  %6044 = vmatprep.subr.bf16.mxu1 %v6043_v50  ;;  %v6045_v34 = vpack.c.bf16 %v3212_v52, %v3208_v15  ;;  %v3220_v7 = vmax.f32 %v3204_v17, 0.0  ;;  %v3214_v38 = vmax.f32 %v3198_v5, 0.0  ;;  %v3216_v23 = vmax.f32 %v3200_v57, 0.0 }
 0x65c   : > { %v6039_v63 = vpack.c.bf16 %v3219_v51, %v3215_v24  ;;  %v6047_v21 = vpack.c.bf16 %v3221_v12, %v3217_v28 }
 0x65d   : > { %5788 = vmatmul.mubr.msk.f32.vlgmr.msra.gmra.mrb[64].mxu0 %vm553_vm0, %v7557_v53  ;;  %5792 = vmatmul.mubr.msk.f32.vlgmr.msra.gmra.mrb[64].mxu1 %vm553_vm0, %v7557_v53  ;;  %v6041_v54 = vpack.c.bf16 %v3218_v37, %v3214_v38  ;;  %v6049_v39 = vpack.c.bf16 %v3220_v7, %v3216_v23 }
 0x65e   : > { %6038 = vmatpush1.bf16.msra.mxu0 %v6037_v55  ;;  %6046 = vmatpush1.bf16.msra.mxu1 %v6045_v34 }
 0x65f   : > { %6040 = vmatprep.subr.bf16.mxu0 %v6039_v63  ;;  %6048 = vmatprep.subr.bf16.mxu1 %v6047_v21 }
 0x660   : > { %2824 = vmatprep.mubr.f32.mxu0 %v8566_v27  ;;  %2913 = vmatprep.mubr.f32.mxu1 %v8566_v27 }
 0x661   : > { %5789 = vmatmul.mubr.msk.f32.gmra.mrb[66].mxu0 %vm553_vm0, %v7568_v2  ;;  %5793 = vmatmul.mubr.msk.f32.gmra.mrb[66].mxu1 %vm553_vm0, %v7568_v2 }
 0x662   : > { %6042 = vmatpush1.bf16.msra.mxu0 %v6041_v54  ;;  %6050 = vmatpush1.bf16.msra.mxu1 %v6049_v39 }
 0x663   : > { %2830 = vmatprep.mubr.f32.mxu0 %v8566_v27  ;;  %2919 = vmatprep.mubr.f32.mxu1 %v8566_v27 }
 0x665   : > { %5790 = vmatmul.mubr.msk.f32.gmra.mrb[68].mxu0 %vm553_vm0, %v7579_v32  ;;  %5794 = vmatmul.mubr.msk.f32.gmra.mrb[68].mxu1 %vm553_vm0, %v7579_v32 }
 0x666   : > { %2836 = vmatprep.mubr.f32.mxu0 %v8566_v27  ;;  %2925 = vmatprep.mubr.f32.mxu1 %v8566_v27 }
 0x669   : > { %5791 = vmatmul.mubr.msk.f32.gmra.mrb[70].mxu0 %vm553_vm0, %v7590_v43  ;;  %5795 = vmatmul.mubr.msk.f32.gmra.mrb[70].mxu1 %vm553_vm0, %v7590_v43 }
 0x66a   : > { %3286 = vmatprep.mubr.f32.mxu0 %v8566_v27  ;;  %3375 = vmatprep.mubr.f32.mxu1 %v8566_v27 }
 0x66d   : > { %5801 = vmatmul.mubr.msk.f32.vlgmr.msra.gmra.mrb[72].mxu0 %vm553_vm0, %v7260_v0  ;;  %5805 = vmatmul.mubr.msk.f32.vlgmr.msra.gmra.mrb[72].mxu1 %vm553_vm0, %v7260_v0 }
 0x66e   : > { %3292 = vmatprep.mubr.f32.mxu0 %v8566_v27  ;;  %3381 = vmatprep.mubr.f32.mxu1 %v8566_v27 }
 0x671   : > { %5802 = vmatmul.mubr.msk.f32.gmra.mrb[74].mxu0 %vm553_vm0, %v7271_v60  ;;  %5806 = vmatmul.mubr.msk.f32.gmra.mrb[74].mxu1 %vm553_vm0, %v7271_v60 }
 0x672   : > { %3298 = vmatprep.mubr.f32.mxu0 %v8566_v27  ;;  %3387 = vmatprep.mubr.f32.mxu1 %v8566_v27 }
 0x675   : > { %5803 = vmatmul.mubr.msk.f32.gmra.mrb[76].mxu0 %vm553_vm0, %v7282_v45  ;;  %5807 = vmatmul.mubr.msk.f32.gmra.mrb[76].mxu1 %vm553_vm0, %v7282_v45 }
 0x676   : > { %3304 = vmatprep.mubr.f32.mxu0 %v8566_v27  ;;  %3393 = vmatprep.mubr.f32.mxu1 %v8566_v27 }
 0x679   : > { %5804 = vmatmul.mubr.msk.f32.gmra.mrb[78].mxu0 %vm553_vm0, %v7293_v14  ;;  %5808 = vmatmul.mubr.msk.f32.gmra.mrb[78].mxu1 %vm553_vm0, %v7293_v14 }
 0x67a   : > { %3480 = vmatprep.mubr.f32.mxu0 %v8566_v27  ;;  %3569 = vmatprep.mubr.f32.mxu1 %v8566_v27 }
 0x730   : > { %v2820_v0 = vpop.f32.mrb[64].mxu0  ;;  %v2909_v60 = vpop.f32.mrb[64].mxu1 }
 0x731   : > { %v2821_v1 = vadd.f32 %v2820_v0, %v6967_v56  ;;  %v2910_v45 = vadd.f32 %v2909_v60, %v6967_v56  ;;  %v2822_v16 = vpop.f32.mrb[65].mxu0  ;;  %v2911_v29 = vpop.f32.mrb[65].mxu1 }
 0x732   : > { %v2823_v31 = vadd.f32 %v2822_v16, %v6967_v56  ;;  %v2912_v46 = vadd.f32 %v2911_v29, %v6967_v56 }
 0x733   : > { %v2932_v20 = vmax.f32 %v2821_v1, 0.0  ;;  %v2934_v48 = vmax.f32 %v2910_v45, 0.0 }
 0x734   : > { %v2933_v35 = vmax.f32 %v2823_v31, 0.0  ;;  %v2935_v14 = vmax.f32 %v2912_v46, 0.0  ;;  %v2826_v33 = vpop.f32.mrb[66].mxu0  ;;  %v2915_v40 = vpop.f32.mrb[66].mxu1 }
 0x735   : > { %v2827_v19 = vadd.f32 %v2826_v33, %v6969_v58  ;;  %v2916_v9 = vadd.f32 %v2915_v40, %v6969_v58  ;;  %v2828_v22 = vpop.f32.mrb[67].mxu0  ;;  %v2917_v25 = vpop.f32.mrb[67].mxu1  ;;  %v2948_v15 = vmul.f32 %v2932_v20, %v6979_v62  ;;  %v2950_v6 = vmul.f32 %v2934_v48, %v6979_v62 }
 0x736   : > { %v2829_v3 = vadd.f32 %v2828_v22, %v6969_v58  ;;  %v2918_v49 = vadd.f32 %v2917_v25, %v6969_v58  ;;  %v2949_v44 = vmul.f32 %v2933_v35, %v6979_v62  ;;  %v2951_v30 = vmul.f32 %v2935_v14, %v6979_v62 }
 0x737   : > { %v2936_v17 = vmax.f32 %v2827_v19, 0.0  ;;  %v2938_v8 = vmax.f32 %v2916_v9, 0.0 }
 0x738   : > { %v2937_v50 = vmax.f32 %v2829_v3, 0.0  ;;  %v2939_v51 = vmax.f32 %v2918_v49, 0.0  ;;  %v2832_v12 = vpop.f32.mrb[68].mxu0  ;;  %v2921_v4 = vpop.f32.mrb[68].mxu1 }
 0x739   : > { %v2952_v52 = vmul.f32 %v2936_v17, %v6987_v26  ;;  %v2954_v5 = vmul.f32 %v2938_v8, %v6987_v26  ;;  %v2833_v57 = vadd.f32 %v2832_v12, %v6971_v10  ;;  %v2922_v24 = vadd.f32 %v2921_v4, %v6971_v10  ;;  %v2834_v28 = vpop.f32.mrb[69].mxu0  ;;  %v2923_v55 = vpop.f32.mrb[69].mxu1 }
 0x73a   : > { %v2953_v34 = vmul.f32 %v2937_v50, %v6987_v26  ;;  %v2955_v37 = vmul.f32 %v2939_v51, %v6987_v26  ;;  %v2835_v7 = vadd.f32 %v2834_v28, %v6971_v10  ;;  %v2924_v63 = vadd.f32 %v2923_v55, %v6971_v10  ;;  %v8624_v51 = vld [vmem:[#allocation17_spill] sm:$0xff] }
 0x73b   : > { %v2964_v21 = vadd.f32 %v2952_v52, %v2948_v15  ;;  %v2982_v38 = vadd.f32 %v2954_v5, %v2950_v6  ;;  %v2940_v23 = vmax.f32 %v2833_v57, 0.0  ;;  %v2942_v54 = vmax.f32 %v2922_v24, 0.0 }
 0x73c   : > { %v2973_v39 = vadd.f32 %v2953_v34, %v2949_v44  ;;  %v2991_v0 = vadd.f32 %v2955_v37, %v2951_v30  ;;  %v2941_v60 = vmax.f32 %v2835_v7, 0.0  ;;  %v2943_v1 = vmax.f32 %v2924_v63, 0.0  ;;  %v2838_v45 = vpop.f32.mrb[70].mxu0  ;;  %v2927_v16 = vpop.f32.mrb[70].mxu1 }
 0x73d   : > { %v2956_v29 = vmul.f32 %v2940_v23, %v7001_v36  ;;  %v2958_v31 = vmul.f32 %v2942_v54, %v7001_v36  ;;  %v2839_v46 = vadd.f32 %v2838_v45, %v6973_v11  ;;  %v2928_v20 = vadd.f32 %v2927_v16, %v6973_v11  ;;  %v2840_v48 = vpop.f32.mrb[71].mxu0  ;;  %v2929_v35 = vpop.f32.mrb[71].mxu1  ;;  %v8625_v45 = vld [vmem:[#allocation19_spill] sm:$0xff] }
 0x73e   : > { %v2957_v14 = vmul.f32 %v2941_v60, %v7001_v36  ;;  %v2959_v33 = vmul.f32 %v2943_v1, %v7001_v36  ;;  %v2841_v40 = vadd.f32 %v2840_v48, %v6973_v11  ;;  %v2930_v19 = vadd.f32 %v2929_v35, %v6973_v11 }
 0x73f   : > { %v2965_v9 = vadd.f32 %v2964_v21, %v2956_v29  ;;  %v2983_v22 = vadd.f32 %v2982_v38, %v2958_v31  ;;  %v2944_v25 = vmax.f32 %v2839_v46, 0.0  ;;  %v2946_v3 = vmax.f32 %v2928_v20, 0.0 }
 0x740   : > { %v2974_v49 = vadd.f32 %v2973_v39, %v2957_v14  ;;  %v2992_v15 = vadd.f32 %v2991_v0, %v2959_v33  ;;  %v2945_v6 = vmax.f32 %v2841_v40, 0.0  ;;  %v2947_v17 = vmax.f32 %v2930_v19, 0.0  ;;  %v3288_v8 = vpop.f32.mrb[72].mxu0  ;;  %v3377_v44 = vpop.f32.mrb[72].mxu1 }
 0x741   : > { %v2960_v30 = vmul.f32 %v2944_v25, %v7011_v59  ;;  %v2962_v50 = vmul.f32 %v2946_v3, %v7011_v59  ;;  %v3289_v12 = vadd.f32 %v3288_v8, %v8624_v51  ;;  %v3378_v4 = vadd.f32 %v3377_v44, %v8624_v51  ;;  %v3290_v52 = vpop.f32.mrb[73].mxu0  ;;  %v3379_v5 = vpop.f32.mrb[73].mxu1 }
 0x742   : > { %v2961_v57 = vmul.f32 %v2945_v6, %v7011_v59  ;;  %v2963_v24 = vmul.f32 %v2947_v17, %v7011_v59  ;;  %v3291_v28 = vadd.f32 %v3290_v52, %v8624_v51  ;;  %v3380_v55 = vadd.f32 %v3379_v5, %v8624_v51 }
 0x743   : > { %v2966_v34 = vadd.f32 %v2965_v9, %v2960_v30  ;;  %v2984_v37 = vadd.f32 %v2983_v22, %v2962_v50  ;;  %v3400_v7 = vmax.f32 %v3289_v12, 0.0  ;;  %v3402_v63 = vmax.f32 %v3378_v4, 0.0 }
 0x744   : > { %v2975_v21 = vadd.f32 %v2974_v49, %v2961_v57  ;;  %v2993_v38 = vadd.f32 %v2992_v15, %v2963_v24  ;;  %v3401_v23 = vmax.f32 %v3291_v28, 0.0  ;;  %v3403_v54 = vmax.f32 %v3380_v55, 0.0  ;;  %v3294_v39 = vpop.f32.mrb[74].mxu0  ;;  %v3383_v0 = vpop.f32.mrb[74].mxu1  ;;  %v8626_v55 = vld [vmem:[#allocation18_spill] sm:$0xff] }
 0x745   : > { %v2967_v60 = vrot.slane %v2966_v34, 4  ;;  %v2985_v1 = vrot.slane %v2984_v37, 4  ;;  %v3295_v16 = vadd.f32 %v3294_v39, %v8625_v45  ;;  %v3384_v29 = vadd.f32 %v3383_v0, %v8625_v45  ;;  %v3296_v31 = vpop.f32.mrb[75].mxu0  ;;  %v3385_v46 = vpop.f32.mrb[75].mxu1 }
 0x746   : > { %v2976_v20 = vrot.slane %v2975_v21, 4  ;;  %v2994_v48 = vrot.slane %v2993_v38, 4  ;;  %v3297_v35 = vadd.f32 %v3296_v31, %v8625_v45  ;;  %v3386_v14 = vadd.f32 %v3385_v46, %v8625_v45 }
 0x747   : > { %v2968_v33 = vadd.f32 %v2967_v60, %v2966_v34  ;;  %v2986_v40 = vadd.f32 %v2985_v1, %v2984_v37  ;;  %v3404_v19 = vmax.f32 %v3295_v16, 0.0  ;;  %v3406_v9 = vmax.f32 %v3384_v29, 0.0 }
 0x748   : > { %v2977_v22 = vadd.f32 %v2976_v20, %v2975_v21  ;;  %v2995_v25 = vadd.f32 %v2994_v48, %v2993_v38  ;;  %v3405_v3 = vmax.f32 %v3297_v35, 0.0  ;;  %v3407_v49 = vmax.f32 %v3386_v14, 0.0  ;;  %v3300_v15 = vpop.f32.mrb[76].mxu0  ;;  %v3389_v6 = vpop.f32.mrb[76].mxu1 }
 0x749   : > { %v2969_v17 = vrot.slane %v2968_v33, 2  ;;  %v2987_v8 = vrot.slane %v2986_v40, 2  ;;  %v6053_v44 = vpack.c.bf16 %v3404_v19, %v3400_v7  ;;  %v6061_v30 = vpack.c.bf16 %v3406_v9, %v3402_v63  ;;  %v3302_v50 = vpop.f32.mrb[77].mxu0  ;;  %v3391_v12 = vpop.f32.mrb[77].mxu1 }
 0x74a   : > { %v2978_v4 = vrot.slane %v2977_v22, 2  ;;  %v2996_v52 = vrot.slane %v2995_v25, 2  ;;  %v6051_v5 = vpack.c.bf16 %v3405_v3, %v3401_v23  ;;  %v6059_v57 = vpack.c.bf16 %v3407_v49, %v3403_v54  ;;  %v8628_v49 = vld [vmem:[#allocation25_spill] sm:$0xff] }
 0x74b   : > { %v2970_v24 = vadd.f32 %v2969_v17, %v2968_v33  ;;  %v2988_v28 = vadd.f32 %v2987_v8, %v2986_v40  ;;  %v3301_v34 = vadd.f32 %v3300_v15, %v8626_v55  ;;  %v3390_v37 = vadd.f32 %v3389_v6, %v8626_v55  ;;  %v8627_v33 = vld [vmem:[#allocation20_spill] sm:$0xff] }
 0x74c   : > { %v2979_v21 = vadd.f32 %v2978_v4, %v2977_v22  ;;  %v2997_v38 = vadd.f32 %v2996_v52, %v2995_v25  ;;  %v3303_v39 = vadd.f32 %v3302_v50, %v8626_v55  ;;  %v3392_v0 = vadd.f32 %v3391_v12, %v8626_v55  ;;  %v3306_v7 = vpop.f32.mrb[78].mxu0  ;;  %v3395_v63 = vpop.f32.mrb[78].mxu1  ;;  %6052 = vmatprep.subr.bf16.mxu0 %v6051_v5 }
 0x74d   : > { %v2971_v60 = vrot.slane %v2970_v24, 1  ;;  %v2989_v1 = vrot.slane %v2988_v28, 1  ;;  %v3408_v16 = vmax.f32 %v3301_v34, 0.0  ;;  %v3410_v23 = vmax.f32 %v3390_v37, 0.0  ;;  %6060 = vmatprep.subr.bf16.mxu1 %v6059_v57  ;;  %v3308_v54 = vpop.f32.mrb[79].mxu0  ;;  %v3397_v29 = vpop.f32.mrb[79].mxu1  ;;  %6054 = vmatpush1.bf16.msra.mxu0 %v6053_v44 }
 0x74e   : > { %v2980_v31 = vrot.slane %v2979_v21, 1  ;;  %v2998_v46 = vrot.slane %v2997_v38, 1  ;;  %v3409_v20 = vmax.f32 %v3303_v39, 0.0  ;;  %v3411_v48 = vmax.f32 %v3392_v0, 0.0  ;;  %6062 = vmatpush1.bf16.msra.mxu1 %v6061_v30 }
 0x74f   : > { %v2972_v35 = vadd.f32 %v2971_v60, %v2970_v24  ;;  %v2990_v14 = vadd.f32 %v2989_v1, %v2988_v28  ;;  %v3307_v40 = vadd.f32 %v3306_v7, %v8627_v33  ;;  %v3396_v19 = vadd.f32 %v3395_v63, %v8627_v33 }
 0x750   : > { %v2981_v9 = vadd.f32 %v2980_v31, %v2979_v21  ;;  %v2999_v22 = vadd.f32 %v2998_v46, %v2997_v38  ;;  %v3309_v25 = vadd.f32 %v3308_v54, %v8627_v33  ;;  %v3398_v3 = vadd.f32 %v3397_v29, %v8627_v33  ;;  %v8629_v21 = vld [vmem:[#allocation28_spill] sm:$0xff]  ;;  %v8630_v38 = vld [vmem:[#allocation29_spill] sm:$0xff]  ;;  %v8632_v29 = vld [vmem:[#allocation31_spill] sm:$0xff] }
 0x751   : > { %v3000_v15 = vadd.f32 %v2972_v35, %v8628_v49  ;;  %v3002_v6 = vadd.f32 %v2990_v14, %v8628_v49  ;;  %v3412_v17 = vmax.f32 %v3307_v40, 0.0  ;;  %v3414_v8 = vmax.f32 %v3396_v19, 0.0 }
 0x752   : > { %v3001_v44 = vadd.f32 %v2981_v9, %v8628_v49  ;;  %v3003_v30 = vadd.f32 %v2999_v22, %v8628_v49  ;;  %v3413_v50 = vmax.f32 %v3309_v25, 0.0  ;;  %v3415_v12 = vmax.f32 %v3398_v3, 0.0 }
 0x753   : > { %v5796_v4 = vmul.f32 -1.442695, %v3000_v15  ;;  %v5798_v52 = vmul.f32 -1.442695, %v3002_v6  ;;  %v6057_v5 = vpack.c.bf16 %v3412_v17, %v3408_v16  ;;  %v6065_v57 = vpack.c.bf16 %v3414_v8, %v3410_v23  ;;  %v8631_v23 = vld [vmem:[#allocation30_spill] sm:$0xff] }
 0x754   : > { %v5797_v24 = vmul.f32 -1.442695, %v3001_v44  ;;  %v5799_v28 = vmul.f32 -1.442695, %v3003_v30  ;;  %v6055_v34 = vpack.c.bf16 %v3413_v50, %v3409_v20  ;;  %v6063_v37 = vpack.c.bf16 %v3415_v12, %v3411_v48  ;;  %v8633_v17 = vld [vmem:[#allocation26_spill] sm:$0xff] }
 0x755   : > { %6231 = vpow2.f32 %v5796_v4  ;;  %v3924_v4 = vld [vmem:[%s6465_s12 + $0x20] sm:$0xff] }
 0x756   : > { %6233 = vpow2.f32 %v5798_v52  ;;  %6056 = vmatprep.subr.bf16.mxu0 %v6055_v34  ;;  %6064 = vmatprep.subr.bf16.mxu1 %v6063_v37  ;;  %v8635_v52 = vld [vmem:[#allocation3_spill] sm:$0xff]  ;;  %v8638_v37 = vld [vmem:[#allocation6_spill] sm:$0xff] }
 0x757   : > { %6235 = vpow2.f32 %v5797_v24  ;;  %6058 = vmatpush1.bf16.msra.mxu0 %v6057_v5  ;;  %6066 = vmatpush1.bf16.msra.mxu1 %v6065_v57  ;;  %v3933_v5 = vrot.slane %v3924_v4, %v8635_v52  ;;  %v8636_v57 = vld [vmem:[#allocation5_spill] sm:$0xff] }
 0x758   : > { %6237 = vpow2.f32 %v5799_v28  ;;  %v4001_v24 = vrot.slane %v3924_v4, %v8636_v57  ;;  %v8637_v28 = vld [vmem:[#allocation4_spill] sm:$0xff] }
 0x759   : > { %v3953_v34 = vrot.slane %v3933_v5, %v8637_v28 }
 0x75a   : > { %5809 = vmatmul.mubr.msk.f32.vlgmr.msra.gmra.mrb[80].mxu0 %vm553_vm0, %v8629_v21  ;;  %5813 = vmatmul.mubr.msk.f32.vlgmr.msra.gmra.mrb[80].mxu1 %vm553_vm0, %v8629_v21  ;;  %v3941_v21 = vrot.slane %v3924_v4, %v8638_v37 }
 0x75b   : > { %3486 = vmatprep.mubr.f32.mxu0 %v8566_v27  ;;  %3575 = vmatprep.mubr.f32.mxu1 %v8566_v27 }
 0x75e   : > { %5810 = vmatmul.mubr.msk.f32.gmra.mrb[82].mxu0 %vm553_vm0, %v8630_v38  ;;  %5814 = vmatmul.mubr.msk.f32.gmra.mrb[82].mxu1 %vm553_vm0, %v8630_v38  ;;  %v8639_v38 = vld [vmem:[#allocation7_spill] sm:$0xff] }
 0x75f   : > { %v6232_v39 = vpop.eup %6231  ;;  %3492 = vmatprep.mubr.f32.mxu0 %v8566_v27  ;;  %3581 = vmatprep.mubr.f32.mxu1 %v8566_v27 }
 0x760   : > { %v6234_v0 = vpop.eup %6233  ;;  %v3016_v7 = vadd.f32 1.0, %v6232_v39  ;;  %v4021_v39 = vrot.slane %v4001_v24, %v8639_v38 }
 0x761   : > { %v6236_v63 = vpop.eup %6235  ;;  %v3018_v60 = vadd.f32 1.0, %v6234_v0  ;;  %v3929_v0 = vrot.slane %v3924_v4, %v8637_v28 }
 0x762   : > { %v6238_v1 = vpop.eup %6237  ;;  %6239 = vrcp.f32 %v3016_v7  ;;  %v3017_v16 = vadd.f32 1.0, %v6236_v63  ;;  %5811 = vmatmul.mubr.msk.f32.gmra.mrb[84].mxu0 %vm553_vm0, %v8631_v23  ;;  %5815 = vmatmul.mubr.msk.f32.gmra.mrb[84].mxu1 %vm553_vm0, %v8631_v23  ;;  %v8640_v7 = vld [vmem:[#allocation9_spill] sm:$0xff] }
 0x763   : > { %6241 = vrcp.f32 %v3018_v60  ;;  %v3019_v54 = vadd.f32 1.0, %v6238_v1  ;;  %3498 = vmatprep.mubr.f32.mxu0 %v8566_v27  ;;  %3587 = vmatprep.mubr.f32.mxu1 %v8566_v27  ;;  %v3937_v63 = vrot.slane %v3924_v4, %v8640_v7  ;;  %v8641_v60 = vld [vmem:[#allocation12_spill] sm:$0xff] }
 0x764   : > { %6243 = vrcp.f32 %v3017_v16  ;;  %v3963_v1 = vmul.f32 %v3953_v34, %v8641_v60  ;;  %v8642_v16 = vld [vmem:[#allocation14_spill] sm:$0xff] }
 0x765   : > { %6245 = vrcp.f32 %v3019_v54  ;;  %v3967_v23 = vmul.f32 %v3953_v34, %v8642_v16  ;;  %v3961_v54 = vrot.slane %v3941_v21, %v8637_v28 }
 0x766   : > { %5812 = vmatmul.mubr.msk.f32.gmra.mrb[86].mxu0 %vm553_vm0, %v8632_v29  ;;  %5816 = vmatmul.mubr.msk.f32.gmra.mrb[86].mxu1 %vm553_vm0, %v8632_v29  ;;  %v8643_v29 = vld [vmem:[#allocation8_spill] sm:$0xff] }
 0x767   : > { %3674 = vmatprep.mubr.f32.mxu0 %v8566_v27  ;;  %3763 = vmatprep.mubr.f32.mxu1 %v8566_v27  ;;  %v3969_v5 = vmul.f32 %v3961_v54, %v8642_v16 }
 0x76c   : > { %v6240_v31 = vpop.eup %6239 }
 0x76d   : > { %v6242_v46 = vpop.eup %6241  ;;  %v3028_v20 = vmul.f32 0.995, %v6240_v31  ;;  %v4009_v31 = vrot.slane %v3924_v4, %v8643_v29 }
 0x76e   : > { %v6244_v48 = vpop.eup %6243  ;;  %v3030_v35 = vmul.f32 0.995, %v6242_v46  ;;  %v3997_v46 = vrot.slane %v3924_v4, %v8639_v38 }
 0x76f   : > { %v6246_v14 = vpop.eup %6245  ;;  %v3032_v40 = vadd.f32 0.005, %v3028_v20  ;;  %v3029_v19 = vmul.f32 0.995, %v6244_v48  ;;  %v8644_v20 = vld [vmem:[#allocation16_spill] sm:$0xff] }
 0x770   : > { %v3034_v9 = vadd.f32 0.005, %v3030_v35  ;;  %v3031_v22 = vmul.f32 0.995, %v6246_v14  ;;  %v4031_v48 = vmul.f32 %v4021_v39, %v8644_v20  ;;  %v8645_v35 = vld [vmem:[#allocation15_spill] sm:$0xff] }
 0x771   : > { %v3033_v25 = vadd.f32 0.005, %v3029_v19  ;;  %v4035_v14 = vmul.f32 %v4021_v39, %v8645_v35 }
 0x772   : > { %v3035_v3 = vadd.f32 0.005, %v3031_v22  ;;  %v7724_v22 = vrot.slane %v3937_v63, %v8637_v28 }
 0x773   : > { %v3040_v15 = vcombine.low %v3032_v40, %v3033_v25  ;;  %v8646_v40 = vld [vmem:[#allocation10_spill] sm:$0xff]  ;;  %v8647_v25 = vld [vmem:[#allocation11_spill] sm:$0xff] }
 0x774   : > { %v3041_v6 = vcombine.low %v3034_v9, %v3035_v3  ;;  %v4005_v19 = vrot.slane %v3924_v4, %v8646_v40  ;;  %v7721_v9 = vrot.slane %v3929_v0, %v8637_v28  ;;  %v3979_v3 = vadd.f32 %v3963_v1, %v8647_v25 }
 0x775   : > { %v3048_v8 = vrot.slane %v3040_v15, %v8633_v17  ;;  %v8648_v15 = vld [vmem:[#allocation13_spill] sm:$0xff]  ;;  %v3964_v1 = vmul.f32 %v7724_v22, %v8641_v60 }
 0x776   : > { %v3055_v44 = vrot.slane %v3041_v6, %v8633_v17  ;;  %v3983_v6 = vadd.f32 %v3967_v23, %v8648_v15  ;;  %v7739_v24 = vrot.slane %v4005_v19, %v8639_v38  ;;  %v3962_v0 = vmul.f32 %v7721_v9, %v8641_v60 }
 0x777   : > { %v3966_v63 = vmul.f32 %v7721_v9, %v8642_v16  ;;  %v3980_v7 = vadd.f32 %v3964_v1, %v8647_v25 }
 0x778   : > { %v3056_v30 = vcombine.low %v3048_v8, %v3055_v44  ;;  %v3965_v8 = vmul.f32 %v3961_v54, %v8641_v60  ;;  %v4029_v44 = vrot.slane %v4009_v31, %v8639_v38  ;;  %v7735_v4 = vadd.f32 %v4035_v14, %v3983_v6 }
 0x779   : > { %v3968_v31 = vmul.f32 %v7724_v22, %v8642_v16  ;;  %v4032_v19 = vmul.f32 %v7739_v24, %v8644_v20  ;;  %v4036_v40 = vmul.f32 %v7739_v24, %v8645_v35  ;;  %v3978_v16 = vadd.f32 %v3962_v0, %v8647_v25 }
 0x77a   : > { %v3063_v50 = vrot.slane %v3056_v30, %v8633_v17  ;;  %v7731_v30 = vrot.slane %v3997_v46, %v8639_v38  ;;  %v4033_v21 = vmul.f32 %v4029_v44, %v8644_v20  ;;  %v3981_v23 = vadd.f32 %v3965_v8, %v8647_v25  ;;  %v8649_v25 = vld [vmem:[#allocation21_spill] sm:$0xff] }
 0x77b   : > { %v4037_v46 = vmul.f32 %v4029_v44, %v8645_v35  ;;  %v3985_v8 = vadd.f32 %v3969_v5, %v8648_v15  ;;  %v3982_v60 = vadd.f32 %v3966_v63, %v8648_v15  ;;  %v3975_v6 = vmul.f32 %v3953_v34, %v6538_v61 }
 0x77c   : > { %5800 = vst.msk [vmem:[%s7071_s20 + $0x2] ss:$8 sm:$0xf] %vm7074_vm1, %v3063_v50  ;;  %v7733_v50 = vadd.f32 %v4031_v48, %v3979_v3  ;;  %v4030_v48 = vmul.f32 %v7731_v30, %v8644_v20  ;;  %v4034_v14 = vmul.f32 %v7731_v30, %v8645_v35  ;;  %v7763_v29 = vadd.f32 %v4033_v21, %v3981_v23 }
 0x77d   : > { %v3984_v20 = vadd.f32 %v3968_v31, %v8648_v15  ;;  %v3971_v3 = vmul.f32 %v3953_v34, %v6567_v18  ;;  %v4043_v5 = vmul.f32 %v4021_v39, %v6615_v41  ;;  %v7772_v21 = vadd.f32 %v4037_v46, %v3985_v8 }
 0x77e   : > { %v7774_v23 = vadd.f32 %v4030_v48, %v3978_v16  ;;  %v7776_v0 = vadd.f32 %v4034_v14, %v3982_v60  ;;  %v7778_v63 = vadd.f32 %v4032_v19, %v3980_v7  ;;  %v3991_v15 = vadd.f32 %v3975_v6, %v6597_v13 }
 0x77f   : > { %v7780_v1 = vadd.f32 %v4036_v40, %v3984_v20  ;;  %v7783_v31 = vadd.f32 %v3971_v3, %v6582_v47  ;;  %v3973_v34 = vmul.f32 %v3961_v54, %v6567_v18  ;;  %v7790_v16 = vmul.f32 %v4021_v39, %v6580_v42  ;;  %v8650_v3 = vld [vmem:[#allocation22_spill] sm:$0xff] }
 0x780   : > { %v3977_v60 = vmul.f32 %v3961_v54, %v6538_v61  ;;  %v7795_v14 = vadd.f32 %v4043_v5, %v3991_v15  ;;  %v7803_v8 = vmul.f32 %v4029_v44, %v6580_v42  ;;  %v3970_v5 = vmul.f32 %v7721_v9, %v6567_v18 }
 0x781   : > { %v7798_v19 = vadd.f32 %v3973_v34, %v6582_v47 }
 0x782   : > { %v3993_v15 = vadd.f32 %v3977_v60, %v6597_v13  ;;  %v3974_v60 = vmul.f32 %v7721_v9, %v6538_v61 }
 0x82d   : > { %v3482_v38 = vpop.f32.mrb[80].mxu0  ;;  %v3571_v37 = vpop.f32.mrb[80].mxu1 }
 0x82e   : > { %v3484_v28 = vpop.f32.mrb[81].mxu0  ;;  %v3573_v35 = vpop.f32.mrb[81].mxu1  ;;  %v3483_v57 = vadd.f32 %v3482_v38, %v8649_v25  ;;  %v3572_v46 = vadd.f32 %v3571_v37, %v8649_v25 }
 0x82f   : > { %v3485_v7 = vadd.f32 %v3484_v28, %v8649_v25  ;;  %v3574_v20 = vadd.f32 %v3573_v35, %v8649_v25  ;;  %v4045_v28 = vmul.f32 %v4029_v44, %v6615_v41 }
 0x830   : > { %v3594_v34 = vmax.f32 %v3483_v57, 0.0 }
 0x831   : > { %v3488_v40 = vpop.f32.mrb[82].mxu0  ;;  %v3577_v48 = vpop.f32.mrb[82].mxu1  ;;  %v3595_v52 = vmax.f32 %v3485_v7, 0.0  ;;  %v3597_v12 = vmax.f32 %v3574_v20, 0.0  ;;  %v3986_v7 = vadd.f32 %v3970_v5, %v6582_v47  ;;  %v8651_v20 = vld [vmem:[#allocation23_spill] sm:$0xff]  ;;  %v4069_v5 = vmax.f32 %v7772_v21, 0.0 }
 0x832   : > { %v3489_v38 = vadd.f32 %v3488_v40, %v8650_v3  ;;  %v3578_v37 = vadd.f32 %v3577_v48, %v8650_v3  ;;  %v3490_v6 = vpop.f32.mrb[83].mxu0  ;;  %v3579_v39 = vpop.f32.mrb[83].mxu1  ;;  %v3596_v40 = vmax.f32 %v3572_v46, 0.0 }
 0x833   : > { %v3491_v54 = vadd.f32 %v3490_v6, %v8650_v3  ;;  %v3580_v35 = vadd.f32 %v3579_v39, %v8650_v3  ;;  %v4038_v39 = vmul.f32 %v7731_v30, %v6580_v42 }
 0x834   : > { %v3598_v25 = vmax.f32 %v3489_v38, 0.0  ;;  %v3600_v48 = vmax.f32 %v3578_v37, 0.0  ;;  %v7815_v38 = vadd.f32 %v4045_v28, %v3993_v15 }
 0x835   : > { %v3599_v17 = vmax.f32 %v3491_v54, 0.0  ;;  %v3601_v49 = vmax.f32 %v3580_v35, 0.0  ;;  %v3494_v33 = vpop.f32.mrb[84].mxu0  ;;  %v3583_v55 = vpop.f32.mrb[84].mxu1  ;;  %v3972_v35 = vmul.f32 %v7724_v22, %v6567_v18 }
 0x836   : > { %v6069_v44 = vpack.c.bf16 %v3598_v25, %v3594_v34  ;;  %v6077_v45 = vpack.c.bf16 %v3600_v48, %v3596_v40  ;;  %v3496_v6 = vpop.f32.mrb[85].mxu0  ;;  %v3585_v51 = vpop.f32.mrb[85].mxu1  ;;  %v3495_v37 = vadd.f32 %v3494_v33, %v8651_v20  ;;  %v3584_v54 = vadd.f32 %v3583_v55, %v8651_v20 }
 0x837   : > { %v6067_v57 = vpack.c.bf16 %v3599_v17, %v3595_v52  ;;  %v6075_v46 = vpack.c.bf16 %v3601_v49, %v3597_v12  ;;  %v4042_v25 = vmul.f32 %v7731_v30, %v6615_v41  ;;  %v3497_v9 = vadd.f32 %v3496_v6, %v8651_v20  ;;  %v8652_v52 = vld [vmem:[#allocation24_spill] sm:$0xff] }
 0x838   : > { %v3586_v34 = vadd.f32 %v3585_v51, %v8651_v20  ;;  %v4065_v12 = vmax.f32 %v7763_v29, 0.0  ;;  %v3990_v33 = vadd.f32 %v3974_v60, %v6597_v13  ;;  %v3976_v51 = vmul.f32 %v7724_v22, %v6538_v61 }
 0x839   : > { %v3500_v17 = vpop.f32.mrb[86].mxu0  ;;  %v3589_v49 = vpop.f32.mrb[86].mxu1  ;;  %6068 = vmatprep.subr.bf16.mxu0 %v6067_v57  ;;  %6076 = vmatprep.subr.bf16.mxu1 %v6075_v46  ;;  %v3988_v29 = vadd.f32 %v3972_v35, %v6582_v47  ;;  %v4044_v6 = vmul.f32 %v7739_v24, %v6615_v41  ;;  %v3602_v60 = vmax.f32 %v3495_v37, 0.0  ;;  %v3604_v57 = vmax.f32 %v3584_v54, 0.0 }
 0x83a   : > { %v3501_v55 = vadd.f32 %v3500_v17, %v8652_v52  ;;  %v3590_v28 = vadd.f32 %v3589_v49, %v8652_v52  ;;  %v3502_v30 = vpop.f32.mrb[87].mxu0  ;;  %v3591_v15 = vpop.f32.mrb[87].mxu1  ;;  %6070 = vmatpush1.bf16.msra.mxu0 %v6069_v44  ;;  %6078 = vmatpush1.bf16.msra.mxu1 %v6077_v45  ;;  %v3603_v44 = vmax.f32 %v3497_v9, 0.0  ;;  %v3605_v45 = vmax.f32 %v3586_v34, 0.0 }
 0x83b   : > { %v3503_v40 = vadd.f32 %v3502_v30, %v8652_v52  ;;  %v3592_v48 = vadd.f32 %v3591_v15, %v8652_v52  ;;  %v3992_v22 = vadd.f32 %v3976_v51, %v6597_v13  ;;  %v4040_v30 = vmul.f32 %v7739_v24, %v6580_v42 }
 0x83c   : > { %v3606_v46 = vmax.f32 %v3501_v55, 0.0  ;;  %v3608_v17 = vmax.f32 %v3590_v28, 0.0  ;;  %v4055_v52 = vadd.f32 %v7790_v16, %v7783_v31  ;;  %v4057_v37 = vadd.f32 %v7803_v8, %v7798_v19 }
 0x83d   : > { %v3607_v49 = vmax.f32 %v3503_v40, 0.0  ;;  %v3609_v21 = vmax.f32 %v3592_v48, 0.0  ;;  %v4062_v54 = vmax.f32 %v7774_v23, 0.0  ;;  %v4064_v9 = vmax.f32 %v7778_v63, 0.0 }
 0x83e   : > { %v6073_v20 = vpack.c.bf16 %v3606_v46, %v3602_v60  ;;  %v6081_v3 = vpack.c.bf16 %v3608_v17, %v3604_v57  ;;  %v4058_v34 = vadd.f32 %v4042_v25, %v3990_v33  ;;  %v4060_v55 = vadd.f32 %v4044_v6, %v3992_v22 }
 0x83f   : > { %v6071_v15 = vpack.c.bf16 %v3607_v49, %v3603_v44  ;;  %v6079_v35 = vpack.c.bf16 %v3609_v21, %v3605_v45  ;;  %v8653_v28 = vmax.f32 %v7733_v50, 0.0  ;;  %v8654_v24 = vmax.f32 %v7735_v4, 0.0 }
 0x840   : > { %v6091_v40 = vpack.c.bf16 %v4069_v5, %v4065_v12  ;;  %v4075_v48 = vmax.f32 %v7795_v14, 0.0  ;;  %v4077_v31 = vmax.f32 %v7815_v38, 0.0  ;;  %v4066_v23 = vmax.f32 %v7776_v0, 0.0 }
 0x841   : > { %6072 = vmatprep.subr.bf16.mxu0 %v6071_v15  ;;  %6080 = vmatprep.subr.bf16.mxu1 %v6079_v35  ;;  %v6083_v51 = vpack.c.bf16 %v8654_v24, %v8653_v28  ;;  %v4068_v63 = vmax.f32 %v7780_v1, 0.0  ;;  %v4054_v16 = vadd.f32 %v4038_v39, %v3986_v7  ;;  %v4056_v19 = vadd.f32 %v4040_v30, %v3988_v29 }
 0x842   : > { %6074 = vmatpush1.bf16.msra.mxu0 %v6073_v20  ;;  %6082 = vmatpush1.bf16.msra.mxu1 %v6081_v3  ;;  %v4071_v8 = vmax.f32 %v4055_v52, 0.0  ;;  %v4073_v50 = vmax.f32 %v4057_v37, 0.0  ;;  %v6085_v25 = vpack.c.bf16 %v4066_v23, %v4062_v54  ;;  %v4074_v33 = vmax.f32 %v4058_v34, 0.0 }
 0x843   : > { %6084 = vmatprep.subr.bf16.mxu0 %v6083_v51  ;;  %6092 = vmatprep.subr.bf16.mxu1 %v6091_v40  ;;  %v6093_v4 = vpack.c.bf16 %v4068_v63, %v4064_v9  ;;  %v4076_v12 = vmax.f32 %v4060_v55, 0.0  ;;  %v4070_v1 = vmax.f32 %v4054_v16, 0.0  ;;  %v4072_v3 = vmax.f32 %v4056_v19, 0.0 }
 0x844   : > { %v6087_v14 = vpack.c.bf16 %v4075_v48, %v4071_v8  ;;  %v6095_v0 = vpack.c.bf16 %v4077_v31, %v4073_v50 }
 0x845   : > { %5817 = vmatmul.mubr.msk.f32.vlgmr.msra.gmra.mrb[88].mxu0 %vm553_vm0, %v7557_v53  ;;  %5821 = vmatmul.mubr.msk.f32.vlgmr.msra.gmra.mrb[88].mxu1 %vm553_vm0, %v7557_v53  ;;  %v6089_v39 = vpack.c.bf16 %v4074_v33, %v4070_v1  ;;  %v6097_v38 = vpack.c.bf16 %v4076_v12, %v4072_v3  ;;  %v7882_v53 = vld [vmem:[%s8412_s3] sm:$0xff] }
 0x846   : > { %6086 = vmatpush1.bf16.msra.mxu0 %v6085_v25  ;;  %6094 = vmatpush1.bf16.msra.mxu1 %v6093_v4 }
 0x847   : > { %6088 = vmatprep.subr.bf16.mxu0 %v6087_v14  ;;  %6096 = vmatprep.subr.bf16.mxu1 %v6095_v0 }
 0x848   : > { %3680 = vmatprep.mubr.f32.mxu0 %v8566_v27  ;;  %3769 = vmatprep.mubr.f32.mxu1 %v8566_v27 }
 0x849   : > { %5818 = vmatmul.mubr.msk.f32.gmra.mrb[90].mxu0 %vm553_vm0, %v7568_v2  ;;  %5822 = vmatmul.mubr.msk.f32.gmra.mrb[90].mxu1 %vm553_vm0, %v7568_v2  ;;  %v7893_v2 = vld [vmem:[%s8412_s3 + $0x8] sm:$0xff] }
 0x84a   : > { %6090 = vmatpush1.bf16.msra.mxu0 %v6089_v39  ;;  %6098 = vmatpush1.bf16.msra.mxu1 %v6097_v38 }
 0x84b   : > { %3686 = vmatprep.mubr.f32.mxu0 %v8566_v27  ;;  %3775 = vmatprep.mubr.f32.mxu1 %v8566_v27 }
 0x84d   : > { %5819 = vmatmul.mubr.msk.f32.gmra.mrb[92].mxu0 %vm553_vm0, %v7579_v32  ;;  %5823 = vmatmul.mubr.msk.f32.gmra.mrb[92].mxu1 %vm553_vm0, %v7579_v32  ;;  %v7904_v32 = vld [vmem:[%s8412_s3 + $0x10] sm:$0xff] }
 0x84e   : > { %3692 = vmatprep.mubr.f32.mxu0 %v8566_v27  ;;  %3781 = vmatprep.mubr.f32.mxu1 %v8566_v27 }
 0x851   : > { %5820 = vmatmul.mubr.msk.f32.gmra.mrb[94].mxu0 %vm553_vm0, %v7590_v43  ;;  %5824 = vmatmul.mubr.msk.f32.gmra.mrb[94].mxu1 %vm553_vm0, %v7590_v43  ;;  %v7915_v43 = vld [vmem:[%s8412_s3 + $0x18] sm:$0xff] }
 0x852   : > { %4142 = vmatprep.mubr.f32.mxu0 %v8566_v27  ;;  %4231 = vmatprep.mubr.f32.mxu1 %v8566_v27 }
 0x855   : > { %5830 = vmatmul.mubr.msk.f32.vlgmr.msra.gmra.mrb[96].mxu0 %vm553_vm0, %v7882_v53  ;;  %5834 = vmatmul.mubr.msk.f32.vlgmr.msra.gmra.mrb[96].mxu1 %vm553_vm0, %v7882_v53 }
 0x856   : > { %4148 = vmatprep.mubr.f32.mxu0 %v8566_v27  ;;  %4237 = vmatprep.mubr.f32.mxu1 %v8566_v27 }
 0x859   : > { %5831 = vmatmul.mubr.msk.f32.gmra.mrb[98].mxu0 %vm553_vm0, %v7893_v2  ;;  %5835 = vmatmul.mubr.msk.f32.gmra.mrb[98].mxu1 %vm553_vm0, %v7893_v2 }
 0x85a   : > { %4154 = vmatprep.mubr.f32.mxu0 %v8566_v27  ;;  %4243 = vmatprep.mubr.f32.mxu1 %v8566_v27 }
 0x85d   : > { %5832 = vmatmul.mubr.msk.f32.gmra.mrb[100].mxu0 %vm553_vm0, %v7904_v32  ;;  %5836 = vmatmul.mubr.msk.f32.gmra.mrb[100].mxu1 %vm553_vm0, %v7904_v32 }
 0x85e   : > { %4160 = vmatprep.mubr.f32.mxu0 %v8566_v27  ;;  %4249 = vmatprep.mubr.f32.mxu1 %v8566_v27 }
 0x861   : > { %5833 = vmatmul.mubr.msk.f32.gmra.mrb[102].mxu0 %vm553_vm0, %v7915_v43  ;;  %5837 = vmatmul.mubr.msk.f32.gmra.mrb[102].mxu1 %vm553_vm0, %v7915_v43 }
 0x862   : > { %4336 = vmatprep.mubr.f32.mxu0 %v8566_v27  ;;  %4425 = vmatprep.mubr.f32.mxu1 %v8566_v27 }
 0x918   : > { %v3676_v7 = vpop.f32.mrb[88].mxu0  ;;  %v3765_v20 = vpop.f32.mrb[88].mxu1 }
 0x919   : > { %v3677_v52 = vadd.f32 %v3676_v7, %v6967_v56  ;;  %v3766_v5 = vadd.f32 %v3765_v20, %v6967_v56  ;;  %v3678_v29 = vpop.f32.mrb[89].mxu0  ;;  %v3767_v6 = vpop.f32.mrb[89].mxu1 }
 0x91a   : > { %v3679_v60 = vadd.f32 %v3678_v29, %v6967_v56  ;;  %v3768_v57 = vadd.f32 %v3767_v6, %v6967_v56 }
 0x91b   : > { %v3788_v46 = vmax.f32 %v3677_v52, 0.0  ;;  %v3790_v17 = vmax.f32 %v3766_v5, 0.0 }
 0x91c   : > { %v3789_v44 = vmax.f32 %v3679_v60, 0.0  ;;  %v3791_v45 = vmax.f32 %v3768_v57, 0.0  ;;  %v3682_v49 = vpop.f32.mrb[90].mxu0  ;;  %v3771_v21 = vpop.f32.mrb[90].mxu1 }
 0x91d   : > { %v3683_v22 = vadd.f32 %v3682_v49, %v6969_v58  ;;  %v3772_v30 = vadd.f32 %v3771_v21, %v6969_v58  ;;  %v3684_v15 = vpop.f32.mrb[91].mxu0  ;;  %v3773_v35 = vpop.f32.mrb[91].mxu1  ;;  %v3804_v9 = vmul.f32 %v3788_v46, %v6979_v62  ;;  %v3806_v34 = vmul.f32 %v3790_v17, %v6979_v62 }
 0x91e   : > { %v3685_v37 = vadd.f32 %v3684_v15, %v6969_v58  ;;  %v3774_v54 = vadd.f32 %v3773_v35, %v6969_v58  ;;  %v3805_v24 = vmul.f32 %v3789_v44, %v6979_v62  ;;  %v3807_v51 = vmul.f32 %v3791_v45, %v6979_v62 }
 0x91f   : > { %v3792_v55 = vmax.f32 %v3683_v22, 0.0  ;;  %v3794_v28 = vmax.f32 %v3772_v30, 0.0 }
 0x920   : > { %v3793_v40 = vmax.f32 %v3685_v37, 0.0  ;;  %v3795_v48 = vmax.f32 %v3774_v54, 0.0  ;;  %v3688_v31 = vpop.f32.mrb[92].mxu0  ;;  %v3777_v23 = vpop.f32.mrb[92].mxu1 }
 0x921   : > { %v3808_v63 = vmul.f32 %v3792_v55, %v6987_v26  ;;  %v3810_v16 = vmul.f32 %v3794_v28, %v6987_v26  ;;  %v3689_v19 = vadd.f32 %v3688_v31, %v6971_v10  ;;  %v3778_v8 = vadd.f32 %v3777_v23, %v6971_v10  ;;  %v3690_v50 = vpop.f32.mrb[93].mxu0  ;;  %v3779_v25 = vpop.f32.mrb[93].mxu1 }
 0x922   : > { %v3809_v4 = vmul.f32 %v3793_v40, %v6987_v26  ;;  %v3811_v33 = vmul.f32 %v3795_v48, %v6987_v26  ;;  %v3691_v12 = vadd.f32 %v3690_v50, %v6971_v10  ;;  %v3780_v14 = vadd.f32 %v3779_v25, %v6971_v10  ;;  %v8655_v48 = vld [vmem:[#allocation17_spill] sm:$0xff] }
 0x923   : > { %v3820_v0 = vadd.f32 %v3808_v63, %v3804_v9  ;;  %v3838_v1 = vadd.f32 %v3810_v16, %v3806_v34  ;;  %v3796_v3 = vmax.f32 %v3689_v19, 0.0  ;;  %v3798_v39 = vmax.f32 %v3778_v8, 0.0 }
 0x924   : > { %v3829_v38 = vadd.f32 %v3809_v4, %v3805_v24  ;;  %v3847_v7 = vadd.f32 %v3811_v33, %v3807_v51  ;;  %v3797_v20 = vmax.f32 %v3691_v12, 0.0  ;;  %v3799_v52 = vmax.f32 %v3780_v14, 0.0  ;;  %v3694_v5 = vpop.f32.mrb[94].mxu0  ;;  %v3783_v29 = vpop.f32.mrb[94].mxu1 }
 0x925   : > { %v3812_v6 = vmul.f32 %v3796_v3, %v7001_v36  ;;  %v3814_v60 = vmul.f32 %v3798_v39, %v7001_v36  ;;  %v3695_v57 = vadd.f32 %v3694_v5, %v6973_v11  ;;  %v3784_v46 = vadd.f32 %v3783_v29, %v6973_v11  ;;  %v3696_v17 = vpop.f32.mrb[95].mxu0  ;;  %v3785_v44 = vpop.f32.mrb[95].mxu1  ;;  %v8656_v5 = vld [vmem:[#allocation19_spill] sm:$0xff] }
 0x926   : > { %v3813_v45 = vmul.f32 %v3797_v20, %v7001_v36  ;;  %v3815_v49 = vmul.f32 %v3799_v52, %v7001_v36  ;;  %v3697_v21 = vadd.f32 %v3696_v17, %v6973_v11  ;;  %v3786_v22 = vadd.f32 %v3785_v44, %v6973_v11 }
 0x927   : > { %v3821_v30 = vadd.f32 %v3820_v0, %v3812_v6  ;;  %v3839_v15 = vadd.f32 %v3838_v1, %v3814_v60  ;;  %v3800_v35 = vmax.f32 %v3695_v57, 0.0  ;;  %v3802_v37 = vmax.f32 %v3784_v46, 0.0 }
 0x928   : > { %v3830_v54 = vadd.f32 %v3829_v38, %v3813_v45  ;;  %v3848_v9 = vadd.f32 %v3847_v7, %v3815_v49  ;;  %v3801_v34 = vmax.f32 %v3697_v21, 0.0  ;;  %v3803_v55 = vmax.f32 %v3786_v22, 0.0  ;;  %v4144_v28 = vpop.f32.mrb[96].mxu0  ;;  %v4233_v24 = vpop.f32.mrb[96].mxu1 }
 0x929   : > { %v3816_v51 = vmul.f32 %v3800_v35, %v7011_v59  ;;  %v3818_v40 = vmul.f32 %v3802_v37, %v7011_v59  ;;  %v4145_v31 = vadd.f32 %v4144_v28, %v8655_v48  ;;  %v4234_v23 = vadd.f32 %v4233_v24, %v8655_v48  ;;  %v4146_v63 = vpop.f32.mrb[97].mxu0  ;;  %v4235_v16 = vpop.f32.mrb[97].mxu1 }
 0x92a   : > { %v3817_v19 = vmul.f32 %v3801_v34, %v7011_v59  ;;  %v3819_v8 = vmul.f32 %v3803_v55, %v7011_v59  ;;  %v4147_v50 = vadd.f32 %v4146_v63, %v8655_v48  ;;  %v4236_v25 = vadd.f32 %v4235_v16, %v8655_v48 }
 0x92b   : > { %v3822_v4 = vadd.f32 %v3821_v30, %v3816_v51  ;;  %v3840_v33 = vadd.f32 %v3839_v15, %v3818_v40  ;;  %v4256_v12 = vmax.f32 %v4145_v31, 0.0  ;;  %v4258_v14 = vmax.f32 %v4234_v23, 0.0 }
 0x92c   : > { %v3831_v0 = vadd.f32 %v3830_v54, %v3817_v19  ;;  %v3849_v1 = vadd.f32 %v3848_v9, %v3819_v8  ;;  %v4257_v3 = vmax.f32 %v4147_v50, 0.0  ;;  %v4259_v39 = vmax.f32 %v4236_v25, 0.0  ;;  %v4150_v38 = vpop.f32.mrb[98].mxu0  ;;  %v4239_v7 = vpop.f32.mrb[98].mxu1  ;;  %v8657_v25 = vld [vmem:[#allocation18_spill] sm:$0xff] }
 0x92d   : > { %v3823_v20 = vrot.slane %v3822_v4, 4  ;;  %v3841_v52 = vrot.slane %v3840_v33, 4  ;;  %v4151_v29 = vadd.f32 %v4150_v38, %v8656_v5  ;;  %v4240_v6 = vadd.f32 %v4239_v7, %v8656_v5  ;;  %v4152_v60 = vpop.f32.mrb[99].mxu0  ;;  %v4241_v57 = vpop.f32.mrb[99].mxu1 }
 0x92e   : > { %v3832_v46 = vrot.slane %v3831_v0, 4  ;;  %v3850_v17 = vrot.slane %v3849_v1, 4  ;;  %v4153_v44 = vadd.f32 %v4152_v60, %v8656_v5  ;;  %v4242_v45 = vadd.f32 %v4241_v57, %v8656_v5 }
 0x92f   : > { %v3824_v49 = vadd.f32 %v3823_v20, %v3822_v4  ;;  %v3842_v21 = vadd.f32 %v3841_v52, %v3840_v33  ;;  %v4260_v22 = vmax.f32 %v4151_v29, 0.0  ;;  %v4262_v30 = vmax.f32 %v4240_v6, 0.0 }
 0x930   : > { %v3833_v15 = vadd.f32 %v3832_v46, %v3831_v0  ;;  %v3851_v35 = vadd.f32 %v3850_v17, %v3849_v1  ;;  %v4261_v37 = vmax.f32 %v4153_v44, 0.0  ;;  %v4263_v54 = vmax.f32 %v4242_v45, 0.0  ;;  %v4156_v9 = vpop.f32.mrb[100].mxu0  ;;  %v4245_v34 = vpop.f32.mrb[100].mxu1 }
 0x931   : > { %v3825_v55 = vrot.slane %v3824_v49, 2  ;;  %v3843_v28 = vrot.slane %v3842_v21, 2  ;;  %v6101_v24 = vpack.c.bf16 %v4260_v22, %v4256_v12  ;;  %v6109_v51 = vpack.c.bf16 %v4262_v30, %v4258_v14  ;;  %v4158_v40 = vpop.f32.mrb[101].mxu0  ;;  %v4247_v31 = vpop.f32.mrb[101].mxu1 }
 0x932   : > { %v3834_v23 = vrot.slane %v3833_v15, 2  ;;  %v3852_v63 = vrot.slane %v3851_v35, 2  ;;  %v6099_v16 = vpack.c.bf16 %v4261_v37, %v4257_v3  ;;  %v6107_v19 = vpack.c.bf16 %v4263_v54, %v4259_v39  ;;  %v8659_v54 = vld [vmem:[#allocation25_spill] sm:$0xff] }
 0x933   : > { %v3826_v8 = vadd.f32 %v3825_v55, %v3824_v49  ;;  %v3844_v50 = vadd.f32 %v3843_v28, %v3842_v21  ;;  %v4157_v4 = vadd.f32 %v4156_v9, %v8657_v25  ;;  %v4246_v33 = vadd.f32 %v4245_v34, %v8657_v25  ;;  %v8658_v49 = vld [vmem:[#allocation20_spill] sm:$0xff] }
 0x934   : > { %v3835_v0 = vadd.f32 %v3834_v23, %v3833_v15  ;;  %v3853_v1 = vadd.f32 %v3852_v63, %v3851_v35  ;;  %v4159_v38 = vadd.f32 %v4158_v40, %v8657_v25  ;;  %v4248_v7 = vadd.f32 %v4247_v31, %v8657_v25  ;;  %v4162_v12 = vpop.f32.mrb[102].mxu0  ;;  %v4251_v14 = vpop.f32.mrb[102].mxu1  ;;  %6100 = vmatprep.subr.bf16.mxu0 %v6099_v16 }
 0x935   : > { %v3827_v20 = vrot.slane %v3826_v8, 1  ;;  %v3845_v52 = vrot.slane %v3844_v50, 1  ;;  %v4264_v29 = vmax.f32 %v4157_v4, 0.0  ;;  %v4266_v3 = vmax.f32 %v4246_v33, 0.0  ;;  %6108 = vmatprep.subr.bf16.mxu1 %v6107_v19  ;;  %v4164_v39 = vpop.f32.mrb[103].mxu0  ;;  %v4253_v6 = vpop.f32.mrb[103].mxu1  ;;  %6102 = vmatpush1.bf16.msra.mxu0 %v6101_v24 }
 0x936   : > { %v3836_v60 = vrot.slane %v3835_v0, 1  ;;  %v3854_v57 = vrot.slane %v3853_v1, 1  ;;  %v4265_v46 = vmax.f32 %v4159_v38, 0.0  ;;  %v4267_v17 = vmax.f32 %v4248_v7, 0.0  ;;  %6110 = vmatpush1.bf16.msra.mxu1 %v6109_v51 }
 0x937   : > { %v3828_v44 = vadd.f32 %v3827_v20, %v3826_v8  ;;  %v3846_v45 = vadd.f32 %v3845_v52, %v3844_v50  ;;  %v4163_v21 = vadd.f32 %v4162_v12, %v8658_v49  ;;  %v4252_v22 = vadd.f32 %v4251_v14, %v8658_v49 }
 0x938   : > { %v3837_v30 = vadd.f32 %v3836_v60, %v3835_v0  ;;  %v3855_v15 = vadd.f32 %v3854_v57, %v3853_v1  ;;  %v4165_v35 = vadd.f32 %v4164_v39, %v8658_v49  ;;  %v4254_v37 = vadd.f32 %v4253_v6, %v8658_v49  ;;  %v7978_v0 = vld [vmem:[%s8412_s3 + $0x20] sm:$0xff]  ;;  %v7989_v1 = vld [vmem:[%s8412_s3 + $0x28] sm:$0xff]  ;;  %v8011_v6 = vld [vmem:[%s8412_s3 + $0x38] sm:$0xff] }
 0x939   : > { %v3856_v9 = vadd.f32 %v3828_v44, %v8659_v54  ;;  %v3858_v34 = vadd.f32 %v3846_v45, %v8659_v54  ;;  %v4268_v55 = vmax.f32 %v4163_v21, 0.0  ;;  %v4270_v28 = vmax.f32 %v4252_v22, 0.0  ;;  %8660 = vst [vmem:[#allocation28_spill] sm:$0xff] %v7978_v0  ;;  %8661 = vst [vmem:[#allocation29_spill] sm:$0xff] %v7989_v1 }
 0x93a   : > { %v3857_v24 = vadd.f32 %v3837_v30, %v8659_v54  ;;  %v3859_v51 = vadd.f32 %v3855_v15, %v8659_v54  ;;  %v4269_v40 = vmax.f32 %v4165_v35, 0.0  ;;  %v4271_v31 = vmax.f32 %v4254_v37, 0.0  ;;  %8663 = vst [vmem:[#allocation31_spill] sm:$0xff] %v8011_v6 }
 0x93b   : > { %v5825_v23 = vmul.f32 -1.442695, %v3856_v9  ;;  %v5827_v63 = vmul.f32 -1.442695, %v3858_v34  ;;  %v6105_v16 = vpack.c.bf16 %v4268_v55, %v4264_v29  ;;  %v6113_v19 = vpack.c.bf16 %v4270_v28, %v4266_v3  ;;  %v8000_v3 = vld [vmem:[%s8412_s3 + $0x30] sm:$0xff]  ;;  %v8664_v55 = vld [vmem:[#allocation26_spill] sm:$0xff] }
 0x93c   : > { %v5826_v8 = vmul.f32 -1.442695, %v3857_v24  ;;  %v5828_v50 = vmul.f32 -1.442695, %v3859_v51  ;;  %v6103_v4 = vpack.c.bf16 %v4269_v40, %v4265_v46  ;;  %v6111_v33 = vpack.c.bf16 %v4271_v31, %v4267_v17  ;;  %8662 = vst [vmem:[#allocation30_spill] sm:$0xff] %v8000_v3 }
 0x93d   : > { %6247 = vpow2.f32 %v5825_v23  ;;  %v4780_v23 = vld [vmem:[%s6465_s12 + $0x28] sm:$0xff] }
 0x93e   : > { %6249 = vpow2.f32 %v5827_v63  ;;  %6104 = vmatprep.subr.bf16.mxu0 %v6103_v4  ;;  %6112 = vmatprep.subr.bf16.mxu1 %v6111_v33  ;;  %v8666_v63 = vld [vmem:[#allocation3_spill] sm:$0xff]  ;;  %v8669_v33 = vld [vmem:[#allocation6_spill] sm:$0xff] }
 0x93f   : > { %6251 = vpow2.f32 %v5826_v8  ;;  %6106 = vmatpush1.bf16.msra.mxu0 %v6105_v16  ;;  %6114 = vmatpush1.bf16.msra.mxu1 %v6113_v19  ;;  %v4789_v16 = vrot.slane %v4780_v23, %v8666_v63  ;;  %v8667_v19 = vld [vmem:[#allocation5_spill] sm:$0xff] }
 0x940   : > { %6253 = vpow2.f32 %v5828_v50  ;;  %v4857_v8 = vrot.slane %v4780_v23, %v8667_v19  ;;  %v8668_v50 = vld [vmem:[#allocation4_spill] sm:$0xff] }
 0x941   : > { %v4809_v4 = vrot.slane %v4789_v16, %v8668_v50 }
 0x942   : > { %5838 = vmatmul.mubr.msk.f32.vlgmr.msra.gmra.mrb[104].mxu0 %vm553_vm0, %v7978_v0  ;;  %5842 = vmatmul.mubr.msk.f32.vlgmr.msra.gmra.mrb[104].mxu1 %vm553_vm0, %v7978_v0 }
 0x943   : > { %4342 = vmatprep.mubr.f32.mxu0 %v8566_v27  ;;  %4431 = vmatprep.mubr.f32.mxu1 %v8566_v27 }
 0x946   : > { %5839 = vmatmul.mubr.msk.f32.gmra.mrb[106].mxu0 %vm553_vm0, %v7989_v1  ;;  %5843 = vmatmul.mubr.msk.f32.gmra.mrb[106].mxu1 %vm553_vm0, %v7989_v1 }
 0x947   : > { %v6248_v38 = vpop.eup %6247  ;;  %4348 = vmatprep.mubr.f32.mxu0 %v8566_v27  ;;  %4437 = vmatprep.mubr.f32.mxu1 %v8566_v27 }
 0x948   : > { %v6250_v7 = vpop.eup %6249  ;;  %v3872_v12 = vadd.f32 1.0, %v6248_v38  ;;  %v4797_v38 = vrot.slane %v4780_v23, %v8669_v33 }
 0x949   : > { %v6252_v14 = vpop.eup %6251  ;;  %v3874_v20 = vadd.f32 1.0, %v6250_v7  ;;  %v8670_v7 = vld [vmem:[#allocation7_spill] sm:$0xff] }
 0x94a   : > { %v6254_v52 = vpop.eup %6253  ;;  %6255 = vrcp.f32 %v3872_v12  ;;  %v3873_v29 = vadd.f32 1.0, %v6252_v14  ;;  %5840 = vmatmul.mubr.msk.f32.gmra.mrb[108].mxu0 %vm553_vm0, %v8000_v3  ;;  %5844 = vmatmul.mubr.msk.f32.gmra.mrb[108].mxu1 %vm553_vm0, %v8000_v3  ;;  %v4877_v12 = vrot.slane %v4857_v8, %v8670_v7  ;;  %v4785_v14 = vrot.slane %v4780_v23, %v8668_v50 }
 0x94b   : > { %6257 = vrcp.f32 %v3874_v20  ;;  %v3875_v39 = vadd.f32 1.0, %v6254_v52  ;;  %4354 = vmatprep.mubr.f32.mxu0 %v8566_v27  ;;  %4443 = vmatprep.mubr.f32.mxu1 %v8566_v27  ;;  %v8671_v20 = vld [vmem:[#allocation9_spill] sm:$0xff] }
 0x94c   : > { %6259 = vrcp.f32 %v3873_v29  ;;  %v4793_v52 = vrot.slane %v4780_v23, %v8671_v20  ;;  %v8672_v29 = vld [vmem:[#allocation12_spill] sm:$0xff] }
 0x94d   : > { %6261 = vrcp.f32 %v3875_v39  ;;  %v4819_v39 = vmul.f32 %v4809_v4, %v8672_v29 }
 0x94e   : > { %5841 = vmatmul.mubr.msk.f32.gmra.mrb[110].mxu0 %vm553_vm0, %v8011_v6  ;;  %5845 = vmatmul.mubr.msk.f32.gmra.mrb[110].mxu1 %vm553_vm0, %v8011_v6 }
 0x94f   : > { %4530 = vmatprep.mubr.f32.mxu0 %v8566_v27  ;;  %4619 = vmatprep.mubr.f32.mxu1 %v8566_v27 }
 0x954   : > { %v6256_v60 = vpop.eup %6255 }
 0x955   : > { %v6258_v57 = vpop.eup %6257  ;;  %v3884_v46 = vmul.f32 0.995, %v6256_v60  ;;  %v8673_v60 = vld [vmem:[#allocation14_spill] sm:$0xff] }
 0x956   : > { %v6260_v17 = vpop.eup %6259  ;;  %v3886_v44 = vmul.f32 0.995, %v6258_v57  ;;  %v4823_v57 = vmul.f32 %v4809_v4, %v8673_v60 }
 0x957   : > { %v6262_v45 = vpop.eup %6261  ;;  %v3888_v21 = vadd.f32 0.005, %v3884_v46  ;;  %v3885_v22 = vmul.f32 0.995, %v6260_v17  ;;  %v4817_v46 = vrot.slane %v4797_v38, %v8668_v50  ;;  %v8674_v17 = vld [vmem:[#allocation8_spill] sm:$0xff] }
 0x958   : > { %v3890_v30 = vadd.f32 0.005, %v3886_v44  ;;  %v3887_v15 = vmul.f32 0.995, %v6262_v45  ;;  %v4865_v44 = vrot.slane %v4780_v23, %v8674_v17  ;;  %v4853_v45 = vrot.slane %v4780_v23, %v8670_v7 }
 0x959   : > { %v3889_v35 = vadd.f32 0.005, %v3885_v22  ;;  %v4821_v63 = vmul.f32 %v4817_v46, %v8672_v29  ;;  %v4825_v33 = vmul.f32 %v4817_v46, %v8673_v60 }
 0x95a   : > { %v3891_v37 = vadd.f32 0.005, %v3887_v15  ;;  %v4885_v16 = vrot.slane %v4865_v44, %v8670_v7  ;;  %v8052_v19 = vrot.slane %v4853_v45, %v8670_v7 }
 0x95b   : > { %v3896_v9 = vcombine.low %v3888_v21, %v3889_v35  ;;  %v8675_v21 = vld [vmem:[#allocation16_spill] sm:$0xff]  ;;  %v8677_v35 = vld [vmem:[#allocation10_spill] sm:$0xff] }
 0x95c   : > { %v3897_v34 = vcombine.low %v3890_v30, %v3891_v37  ;;  %v4887_v22 = vmul.f32 %v4877_v12, %v8675_v21  ;;  %v8676_v30 = vld [vmem:[#allocation15_spill] sm:$0xff]  ;;  %v4861_v37 = vrot.slane %v4780_v23, %v8677_v35  ;;  %v4889_v38 = vmul.f32 %v4885_v16, %v8675_v21 }
 0x95d   : > { %v3904_v28 = vrot.slane %v3896_v9, %v8664_v55  ;;  %v4891_v15 = vmul.f32 %v4877_v12, %v8676_v30  ;;  %v8042_v9 = vrot.slane %v4785_v14, %v8668_v50  ;;  %v4893_v17 = vmul.f32 %v4885_v16, %v8676_v30 }
 0x95e   : > { %v3911_v24 = vrot.slane %v3897_v34, %v8664_v55  ;;  %v8045_v34 = vrot.slane %v4793_v52, %v8668_v50  ;;  %v8060_v50 = vrot.slane %v4861_v37, %v8670_v7  ;;  %v4886_v7 = vmul.f32 %v8052_v19, %v8675_v21 }
 0x95f   : > { %v4818_v14 = vmul.f32 %v8042_v9, %v8672_v29  ;;  %v4822_v20 = vmul.f32 %v8042_v9, %v8673_v60  ;;  %v4890_v44 = vmul.f32 %v8052_v19, %v8676_v30 }
 0x960   : > { %v3912_v51 = vcombine.low %v3904_v28, %v3911_v24  ;;  %v8678_v28 = vld [vmem:[#allocation11_spill] sm:$0xff]  ;;  %v4820_v52 = vmul.f32 %v8045_v34, %v8672_v29  ;;  %v4888_v45 = vmul.f32 %v8060_v50, %v8675_v21  ;;  %v4831_v29 = vmul.f32 %v4809_v4, %v6538_v61 }
 0x961   : > { %v4835_v24 = vadd.f32 %v4819_v39, %v8678_v28  ;;  %v4837_v39 = vadd.f32 %v4821_v63, %v8678_v28  ;;  %v4834_v37 = vadd.f32 %v4818_v14, %v8678_v28 }
 0x962   : > { %v3919_v40 = vrot.slane %v3912_v51, %v8664_v55  ;;  %v8679_v51 = vld [vmem:[#allocation13_spill] sm:$0xff] }
 0x963   : > { %v8054_v8 = vadd.f32 %v4887_v22, %v4835_v24  ;;  %v8084_v35 = vadd.f32 %v4889_v38, %v4837_v39  ;;  %v4838_v24 = vadd.f32 %v4822_v20, %v8679_v51  ;;  %v4827_v22 = vmul.f32 %v4809_v4, %v6567_v18 }
 0x964   : > { %5829 = vst.msk [vmem:[%s7071_s20 + $0x3] ss:$8 sm:$0xf] %vm7074_vm1, %v3919_v40  ;;  %v4839_v40 = vadd.f32 %v4823_v57, %v8679_v51  ;;  %v4824_v57 = vmul.f32 %v8045_v34, %v8673_v60  ;;  %v4892_v60 = vmul.f32 %v8060_v50, %v8676_v30  ;;  %v8095_v39 = vadd.f32 %v4886_v7, %v4834_v37 }
 0x965   : > { %v8097_v14 = vadd.f32 %v4890_v44, %v4838_v24  ;;  %v4829_v4 = vmul.f32 %v4817_v46, %v6567_v18  ;;  %v8111_v7 = vmul.f32 %v4877_v12, %v6580_v42  ;;  %v4833_v44 = vmul.f32 %v4817_v46, %v6538_v61  ;;  %v8681_v24 = vld [vmem:[#allocation22_spill] sm:$0xff] }
 0x966   : > { %v8056_v23 = vadd.f32 %v4891_v15, %v4839_v40  ;;  %v4841_v15 = vadd.f32 %v4825_v33, %v8679_v51  ;;  %v4836_v40 = vadd.f32 %v4820_v52, %v8678_v28  ;;  %v4840_v21 = vadd.f32 %v4824_v57, %v8679_v51  ;;  %v8680_v57 = vld [vmem:[#allocation21_spill] sm:$0xff] }
 0x967   : > { %v4899_v33 = vmul.f32 %v4877_v12, %v6615_v41  ;;  %v8104_v51 = vadd.f32 %v4827_v22, %v6582_v47  ;;  %v4847_v52 = vadd.f32 %v4831_v29, %v6597_v13  ;;  %v8119_v29 = vadd.f32 %v4829_v4, %v6582_v47 }
 0x968   : > { %v8093_v38 = vadd.f32 %v4893_v17, %v4841_v15  ;;  %v8099_v20 = vadd.f32 %v4888_v45, %v4836_v40  ;;  %v8101_v28 = vadd.f32 %v4892_v60, %v4840_v21  ;;  %v8124_v21 = vmul.f32 %v4885_v16, %v6580_v42 }
 0x969   : > { %v8116_v37 = vadd.f32 %v4899_v33, %v4847_v52  ;;  %v4849_v33 = vadd.f32 %v4833_v44, %v6597_v13  ;;  %v4826_v52 = vmul.f32 %v8042_v9, %v6567_v18  ;;  %v4830_v44 = vmul.f32 %v8042_v9, %v6538_v61 }
 0xa15   : > { %v4338_v63 = vpop.f32.mrb[104].mxu0  ;;  %v4427_v31 = vpop.f32.mrb[104].mxu1 }
 0xa16   : > { %v4340_v55 = vpop.f32.mrb[105].mxu0  ;;  %v4429_v30 = vpop.f32.mrb[105].mxu1  ;;  %v4339_v6 = vadd.f32 %v4338_v63, %v8680_v57  ;;  %v4428_v17 = vadd.f32 %v4427_v31, %v8680_v57 }
 0xa17   : > { %v4341_v45 = vadd.f32 %v4340_v55, %v8680_v57  ;;  %v4430_v15 = vadd.f32 %v4429_v30, %v8680_v57  ;;  %v4901_v55 = vmul.f32 %v4885_v16, %v6615_v41 }
 0xa18   : > { %v4450_v4 = vmax.f32 %v4339_v6, 0.0 }
 0xa19   : > { %v4344_v60 = vpop.f32.mrb[106].mxu0  ;;  %v4433_v22 = vpop.f32.mrb[106].mxu1  ;;  %v4451_v3 = vmax.f32 %v4341_v45, 0.0  ;;  %v4453_v1 = vmax.f32 %v4430_v15, 0.0  ;;  %v4842_v45 = vadd.f32 %v4826_v52, %v6582_v47  ;;  %v8682_v15 = vld [vmem:[#allocation23_spill] sm:$0xff] }
 0xa1a   : > { %v4345_v40 = vadd.f32 %v4344_v60, %v8681_v24  ;;  %v4434_v31 = vadd.f32 %v4433_v22, %v8681_v24  ;;  %v4346_v63 = vpop.f32.mrb[107].mxu0  ;;  %v4435_v12 = vpop.f32.mrb[107].mxu1  ;;  %v4452_v60 = vmax.f32 %v4428_v17, 0.0 }
 0xa1b   : > { %v4347_v46 = vadd.f32 %v4346_v63, %v8681_v24  ;;  %v4436_v30 = vadd.f32 %v4435_v12, %v8681_v24  ;;  %v4894_v12 = vmul.f32 %v8052_v19, %v6580_v42 }
 0xa1c   : > { %v4454_v57 = vmax.f32 %v4345_v40, 0.0  ;;  %v4456_v22 = vmax.f32 %v4434_v31, 0.0  ;;  %v8136_v40 = vadd.f32 %v4901_v55, %v4849_v33 }
 0xa1d   : > { %v4455_v0 = vmax.f32 %v4347_v46, 0.0  ;;  %v4457_v54 = vmax.f32 %v4436_v30, 0.0  ;;  %v4350_v49 = vpop.f32.mrb[108].mxu0  ;;  %v4439_v25 = vpop.f32.mrb[108].mxu1  ;;  %v4828_v30 = vmul.f32 %v8045_v34, %v6567_v18  ;;  %v4925_v18 = vmax.f32 %v8093_v38, 0.0 }
 0xa1e   : > { %v6117_v16 = vpack.c.bf16 %v4454_v57, %v4450_v4  ;;  %v6125_v5 = vpack.c.bf16 %v4456_v22, %v4452_v60  ;;  %v4352_v63 = vpop.f32.mrb[109].mxu0  ;;  %v4441_v48 = vpop.f32.mrb[109].mxu1  ;;  %v4351_v31 = vadd.f32 %v4350_v49, %v8682_v15  ;;  %v4440_v46 = vadd.f32 %v4439_v25, %v8682_v15 }
 0xa1f   : > { %v6115_v6 = vpack.c.bf16 %v4455_v0, %v4451_v3  ;;  %v6123_v17 = vpack.c.bf16 %v4457_v54, %v4453_v1  ;;  %v4898_v57 = vmul.f32 %v8052_v19, %v6615_v41  ;;  %v4353_v9 = vadd.f32 %v4352_v63, %v8682_v15  ;;  %v8683_v3 = vld [vmem:[#allocation24_spill] sm:$0xff] }
 0xa20   : > { %v4442_v4 = vadd.f32 %v4441_v48, %v8682_v15  ;;  %v4921_v1 = vmax.f32 %v8084_v35, 0.0  ;;  %v4846_v49 = vadd.f32 %v4830_v44, %v6597_v13  ;;  %v4832_v48 = vmul.f32 %v8045_v34, %v6538_v61 }
 0xa21   : > { %v4356_v0 = vpop.f32.mrb[110].mxu0  ;;  %v4445_v54 = vpop.f32.mrb[110].mxu1  ;;  %6116 = vmatprep.subr.bf16.mxu0 %v6115_v6  ;;  %6124 = vmatprep.subr.bf16.mxu1 %v6123_v17  ;;  %v4844_v35 = vadd.f32 %v4828_v30, %v6582_v47  ;;  %v4900_v22 = vmul.f32 %v8060_v50, %v6615_v41  ;;  %v4458_v63 = vmax.f32 %v4351_v31, 0.0  ;;  %v4460_v44 = vmax.f32 %v4440_v46, 0.0 }
 0xa22   : > { %v4357_v25 = vadd.f32 %v4356_v0, %v8683_v3  ;;  %v4446_v55 = vadd.f32 %v4445_v54, %v8683_v3  ;;  %v4358_v19 = vpop.f32.mrb[111].mxu0  ;;  %v4447_v33 = vpop.f32.mrb[111].mxu1  ;;  %6118 = vmatpush1.bf16.msra.mxu0 %v6117_v16  ;;  %6126 = vmatpush1.bf16.msra.mxu1 %v6125_v5  ;;  %v4459_v16 = vmax.f32 %v4353_v9, 0.0  ;;  %v4461_v5 = vmax.f32 %v4442_v4, 0.0 }
 0xa23   : > { %v4359_v52 = vadd.f32 %v4358_v19, %v8683_v3  ;;  %v4448_v60 = vadd.f32 %v4447_v33, %v8683_v3  ;;  %v4848_v61 = vadd.f32 %v4832_v48, %v6597_v13  ;;  %v4896_v34 = vmul.f32 %v8060_v50, %v6580_v42  ;;  %v8190_v33 = vld [vmem:[%s8412_s3 + $0x48] sm:$0xff]  ;;  %v8212_v48 = vld [vmem:[%s8412_s3 + $0x58] sm:$0xff] }
 0xa24   : > { %v4462_v6 = vmax.f32 %v4357_v25, 0.0  ;;  %v4464_v17 = vmax.f32 %v4446_v55, 0.0  ;;  %v4911_v41 = vadd.f32 %v8111_v7, %v8104_v51  ;;  %v4913_v31 = vadd.f32 %v8124_v21, %v8119_v29 }
 0xa25   : > { %v4463_v0 = vmax.f32 %v4359_v52, 0.0  ;;  %v4465_v38 = vmax.f32 %v4448_v60, 0.0  ;;  %v4918_v46 = vmax.f32 %v8095_v39, 0.0  ;;  %v4920_v30 = vmax.f32 %v8099_v20, 0.0 }
 0xa26   : > { %v6121_v54 = vpack.c.bf16 %v4462_v6, %v4458_v63  ;;  %v6129_v15 = vpack.c.bf16 %v4464_v17, %v4460_v44  ;;  %v4914_v9 = vadd.f32 %v4898_v57, %v4846_v49  ;;  %v4916_v4 = vadd.f32 %v4900_v22, %v4848_v61 }
 0xa27   : > { %v6119_v19 = vpack.c.bf16 %v4463_v0, %v4459_v16  ;;  %v6127_v47 = vpack.c.bf16 %v4465_v38, %v4461_v5  ;;  %v8684_v13 = vmax.f32 %v8054_v8, 0.0  ;;  %v8685_v42 = vmax.f32 %v8056_v23, 0.0 }
 0xa28   : > { %v6139_v25 = vpack.c.bf16 %v4925_v18, %v4921_v1  ;;  %v4931_v55 = vmax.f32 %v8116_v37, 0.0  ;;  %v4933_v51 = vmax.f32 %v8136_v40, 0.0  ;;  %v4922_v39 = vmax.f32 %v8097_v14, 0.0  ;;  %v8179_v37 = vld [vmem:[%s8412_s3 + $0x40] sm:$0xff]  ;;  %v8201_v18 = vld [vmem:[%s8412_s3 + $0x50] sm:$0xff] }
 0xa29   : > { %6120 = vmatprep.subr.bf16.mxu0 %v6119_v19  ;;  %6128 = vmatprep.subr.bf16.mxu1 %v6127_v47  ;;  %v6131_v50 = vpack.c.bf16 %v8685_v42, %v8684_v13  ;;  %v4924_v20 = vmax.f32 %v8101_v28, 0.0  ;;  %v4910_v7 = vadd.f32 %v4894_v12, %v4842_v45  ;;  %v4912_v29 = vadd.f32 %v4896_v34, %v4844_v35 }
 0xa2a   : > { %6122 = vmatpush1.bf16.msra.mxu0 %v6121_v54  ;;  %6130 = vmatpush1.bf16.msra.mxu1 %v6129_v15  ;;  %v4927_v21 = vmax.f32 %v4911_v41, 0.0  ;;  %v4929_v8 = vmax.f32 %v4913_v31, 0.0  ;;  %v6133_v57 = vpack.c.bf16 %v4922_v39, %v4918_v46  ;;  %v4930_v49 = vmax.f32 %v4914_v9, 0.0 }
 0xa2b   : > { %6132 = vmatprep.subr.bf16.mxu0 %v6131_v50  ;;  %6140 = vmatprep.subr.bf16.mxu1 %v6139_v25  ;;  %v6141_v23 = vpack.c.bf16 %v4924_v20, %v4920_v30  ;;  %v4932_v1 = vmax.f32 %v4916_v4, 0.0  ;;  %v4926_v12 = vmax.f32 %v4910_v7, 0.0  ;;  %v4928_v40 = vmax.f32 %v4912_v29, 0.0 }
 0xa2c   : > { %v6135_v14 = vpack.c.bf16 %v4931_v55, %v4927_v21  ;;  %v6143_v28 = vpack.c.bf16 %v4933_v51, %v4929_v8 }
 0xa2d   : > { %5846 = vmatmul.mubr.msk.f32.vlgmr.msra.gmra.mrb[112].mxu0 %vm553_vm0, %v8179_v37  ;;  %5850 = vmatmul.mubr.msk.f32.vlgmr.msra.gmra.mrb[112].mxu1 %vm553_vm0, %v8179_v37  ;;  %v6137_v45 = vpack.c.bf16 %v4930_v49, %v4926_v12  ;;  %v6145_v15 = vpack.c.bf16 %v4932_v1, %v4928_v40 }
 0xa2e   : > { %6134 = vmatpush1.bf16.msra.mxu0 %v6133_v57  ;;  %6142 = vmatpush1.bf16.msra.mxu1 %v6141_v23 }
 0xa2f   : > { %6136 = vmatprep.subr.bf16.mxu0 %v6135_v14  ;;  %6144 = vmatprep.subr.bf16.mxu1 %v6143_v28 }
 0xa30   : > { %4536 = vmatprep.mubr.f32.mxu0 %v8566_v27  ;;  %4625 = vmatprep.mubr.f32.mxu1 %v8566_v27 }
 0xa31   : > { %5847 = vmatmul.mubr.msk.f32.gmra.mrb[114].mxu0 %vm553_vm0, %v8190_v33  ;;  %5851 = vmatmul.mubr.msk.f32.gmra.mrb[114].mxu1 %vm553_vm0, %v8190_v33 }
 0xa32   : > { %6138 = vmatpush1.bf16.msra.mxu0 %v6137_v45  ;;  %6146 = vmatpush1.bf16.msra.mxu1 %v6145_v15 }
 0xa33   : > { %4542 = vmatprep.mubr.f32.mxu0 %v8566_v27  ;;  %4631 = vmatprep.mubr.f32.mxu1 %v8566_v27 }
 0xa35   : > { %5848 = vmatmul.mubr.msk.f32.gmra.mrb[116].mxu0 %vm553_vm0, %v8201_v18  ;;  %5852 = vmatmul.mubr.msk.f32.gmra.mrb[116].mxu1 %vm553_vm0, %v8201_v18 }
 0xa36   : > { %4548 = vmatprep.mubr.f32.mxu0 %v8566_v27  ;;  %4637 = vmatprep.mubr.f32.mxu1 %v8566_v27 }
 0xa39   : > { %5849 = vmatmul.mubr.msk.f32.gmra.mrb[118].mxu0 %vm553_vm0, %v8212_v48  ;;  %5853 = vmatmul.mubr.msk.f32.gmra.mrb[118].mxu1 %vm553_vm0, %v8212_v48 }
 0xa3a   : > { %4998 = vmatprep.mubr.f32.mxu0 %v8566_v27  ;;  %5087 = vmatprep.mubr.f32.mxu1 %v8566_v27 }
 0xa3d   : > { %5859 = vmatmul.mubr.msk.f32.vlgmr.msra.gmra.mrb[120].mxu0 %vm553_vm0, %v7882_v53  ;;  %5863 = vmatmul.mubr.msk.f32.vlgmr.msra.gmra.mrb[120].mxu1 %vm553_vm0, %v7882_v53 }
 0xa3e   : > { %5004 = vmatprep.mubr.f32.mxu0 %v8566_v27  ;;  %5093 = vmatprep.mubr.f32.mxu1 %v8566_v27 }
 0xa41   : > { %5860 = vmatmul.mubr.msk.f32.gmra.mrb[122].mxu0 %vm553_vm0, %v7893_v2  ;;  %5864 = vmatmul.mubr.msk.f32.gmra.mrb[122].mxu1 %vm553_vm0, %v7893_v2 }
 0xa42   : > { %5010 = vmatprep.mubr.f32.mxu0 %v8566_v27  ;;  %5099 = vmatprep.mubr.f32.mxu1 %v8566_v27 }
 0xa45   : > { %5861 = vmatmul.mubr.msk.f32.gmra.mrb[124].mxu0 %vm553_vm0, %v7904_v32  ;;  %5865 = vmatmul.mubr.msk.f32.gmra.mrb[124].mxu1 %vm553_vm0, %v7904_v32 }
 0xa46   : > { %5016 = vmatprep.mubr.f32.mxu0 %v8566_v27  ;;  %5105 = vmatprep.mubr.f32.mxu1 %v8566_v27 }
 0xa49   : > { %5862 = vmatmul.mubr.msk.f32.gmra.mrb[126].mxu0 %vm553_vm0, %v7915_v43  ;;  %5866 = vmatmul.mubr.msk.f32.gmra.mrb[126].mxu1 %vm553_vm0, %v7915_v43 }
 0xa4a   : > { %5192 = vmatprep.mubr.f32.mxu0 %v8566_v27  ;;  %5281 = vmatprep.mubr.f32.mxu1 %v8566_v27 }
 0xb00   : > { %v4532_v53 = vpop.f32.mrb[112].mxu0  ;;  %v4621_v2 = vpop.f32.mrb[112].mxu1 }
 0xb01   : > { %v4533_v52 = vadd.f32 %v4532_v53, %v6967_v56  ;;  %v4622_v32 = vadd.f32 %v4621_v2, %v6967_v56  ;;  %v4534_v60 = vpop.f32.mrb[113].mxu0  ;;  %v4623_v35 = vpop.f32.mrb[113].mxu1 }
 0xb02   : > { %v4535_v22 = vadd.f32 %v4534_v60, %v6967_v56  ;;  %v4624_v63 = vadd.f32 %v4623_v35, %v6967_v56 }
 0xb03   : > { %v4644_v44 = vmax.f32 %v4533_v52, 0.0  ;;  %v4646_v6 = vmax.f32 %v4622_v32, 0.0 }
 0xb04   : > { %v4645_v17 = vmax.f32 %v4535_v22, 0.0  ;;  %v4647_v43 = vmax.f32 %v4624_v63, 0.0  ;;  %v4538_v16 = vpop.f32.mrb[114].mxu0  ;;  %v4627_v5 = vpop.f32.mrb[114].mxu1 }
 0xb05   : > { %v4539_v0 = vadd.f32 %v4538_v16, %v6969_v58  ;;  %v4628_v38 = vadd.f32 %v4627_v5, %v6969_v58  ;;  %v4540_v54 = vpop.f32.mrb[115].mxu0  ;;  %v4629_v61 = vpop.f32.mrb[115].mxu1  ;;  %v4660_v47 = vmul.f32 %v4644_v44, %v6979_v62  ;;  %v4662_v41 = vmul.f32 %v4646_v6, %v6979_v62 }
 0xb06   : > { %v4541_v34 = vadd.f32 %v4540_v54, %v6969_v58  ;;  %v4630_v19 = vadd.f32 %v4629_v61, %v6969_v58  ;;  %v4661_v30 = vmul.f32 %v4645_v17, %v6979_v62  ;;  %v4663_v9 = vmul.f32 %v4647_v43, %v6979_v62 }
 0xb07   : > { %v4648_v31 = vmax.f32 %v4539_v0, 0.0  ;;  %v4650_v46 = vmax.f32 %v4628_v38, 0.0 }
 0xb08   : > { %v4649_v4 = vmax.f32 %v4541_v34, 0.0  ;;  %v4651_v13 = vmax.f32 %v4630_v19, 0.0  ;;  %v4544_v42 = vpop.f32.mrb[116].mxu0  ;;  %v4633_v50 = vpop.f32.mrb[116].mxu1 }
 0xb09   : > { %v4664_v25 = vmul.f32 %v4648_v31, %v6987_v26  ;;  %v4666_v55 = vmul.f32 %v4650_v46, %v6987_v26  ;;  %v4545_v51 = vadd.f32 %v4544_v42, %v6971_v10  ;;  %v4634_v39 = vadd.f32 %v4633_v50, %v6971_v10  ;;  %v4546_v20 = vpop.f32.mrb[117].mxu0  ;;  %v4635_v7 = vpop.f32.mrb[117].mxu1  ;;  %v8686_v46 = vld [vmem:[#allocation17_spill] sm:$0xff] }
 0xb0a   : > { %v4665_v29 = vmul.f32 %v4649_v4, %v6987_v26  ;;  %v4667_v21 = vmul.f32 %v4651_v13, %v6987_v26  ;;  %v4547_v8 = vadd.f32 %v4546_v20, %v6971_v10  ;;  %v4636_v57 = vadd.f32 %v4635_v7, %v6971_v10 }
 0xb0b   : > { %v4676_v23 = vadd.f32 %v4664_v25, %v4660_v47  ;;  %v4694_v49 = vadd.f32 %v4666_v55, %v4662_v41  ;;  %v4652_v1 = vmax.f32 %v4545_v51, 0.0  ;;  %v4654_v14 = vmax.f32 %v4634_v39, 0.0 }
 0xb0c   : > { %v4685_v28 = vadd.f32 %v4665_v29, %v4661_v30  ;;  %v4703_v12 = vadd.f32 %v4667_v21, %v4663_v9  ;;  %v4653_v40 = vmax.f32 %v4547_v8, 0.0  ;;  %v4655_v45 = vmax.f32 %v4636_v57, 0.0  ;;  %v4550_v15 = vpop.f32.mrb[118].mxu0  ;;  %v4639_v53 = vpop.f32.mrb[118].mxu1 }
 0xb0d   : > { %v4668_v2 = vmul.f32 %v4652_v1, %v7001_v36  ;;  %v4670_v52 = vmul.f32 %v4654_v14, %v7001_v36  ;;  %v4551_v32 = vadd.f32 %v4550_v15, %v6973_v11  ;;  %v4640_v60 = vadd.f32 %v4639_v53, %v6973_v11  ;;  %v4552_v35 = vpop.f32.mrb[119].mxu0  ;;  %v4641_v22 = vpop.f32.mrb[119].mxu1 }
 0xb0e   : > { %v4669_v63 = vmul.f32 %v4653_v40, %v7001_v36  ;;  %v4671_v44 = vmul.f32 %v4655_v45, %v7001_v36  ;;  %v4553_v6 = vadd.f32 %v4552_v35, %v6973_v11  ;;  %v4642_v17 = vadd.f32 %v4641_v22, %v6973_v11 }
 0xb0f   : > { %v4677_v43 = vadd.f32 %v4676_v23, %v4668_v2  ;;  %v4695_v16 = vadd.f32 %v4694_v49, %v4670_v52  ;;  %v4656_v5 = vmax.f32 %v4551_v32, 0.0  ;;  %v4658_v0 = vmax.f32 %v4640_v60, 0.0 }
 0xb10   : > { %v4686_v38 = vadd.f32 %v4685_v28, %v4669_v63  ;;  %v4704_v54 = vadd.f32 %v4703_v12, %v4671_v44  ;;  %v4657_v61 = vmax.f32 %v4553_v6, 0.0  ;;  %v4659_v34 = vmax.f32 %v4642_v17, 0.0  ;;  %v5000_v19 = vpop.f32.mrb[120].mxu0  ;;  %v5089_v47 = vpop.f32.mrb[120].mxu1  ;;  %v8687_v28 = vld [vmem:[#allocation19_spill] sm:$0xff] }
 0xb11   : > { %v4672_v41 = vmul.f32 %v4656_v5, %v7011_v59  ;;  %v4674_v31 = vmul.f32 %v4658_v0, %v7011_v59  ;;  %v5001_v30 = vadd.f32 %v5000_v19, %v8686_v46  ;;  %v5090_v9 = vadd.f32 %v5089_v47, %v8686_v46  ;;  %v5002_v4 = vpop.f32.mrb[121].mxu0  ;;  %v5091_v13 = vpop.f32.mrb[121].mxu1 }
 0xb12   : > { %v4673_v42 = vmul.f32 %v4657_v61, %v7011_v59  ;;  %v4675_v50 = vmul.f32 %v4659_v34, %v7011_v59  ;;  %v5003_v25 = vadd.f32 %v5002_v4, %v8686_v46  ;;  %v5092_v55 = vadd.f32 %v5091_v13, %v8686_v46  ;;  %v8688_v4 = vld [vmem:[#allocation18_spill] sm:$0xff] }
 0xb13   : > { %v4678_v51 = vadd.f32 %v4677_v43, %v4672_v41  ;;  %v4696_v39 = vadd.f32 %v4695_v16, %v4674_v31  ;;  %v5112_v20 = vmax.f32 %v5001_v30, 0.0  ;;  %v5114_v7 = vmax.f32 %v5090_v9, 0.0 }
 0xb14   : > { %v4687_v29 = vadd.f32 %v4686_v38, %v4673_v42  ;;  %v4705_v21 = vadd.f32 %v4704_v54, %v4675_v50  ;;  %v5113_v8 = vmax.f32 %v5003_v25, 0.0  ;;  %v5115_v57 = vmax.f32 %v5092_v55, 0.0  ;;  %v5006_v23 = vpop.f32.mrb[122].mxu0  ;;  %v5095_v49 = vpop.f32.mrb[122].mxu1 }
 0xb15   : > { %v4679_v1 = vrot.slane %v4678_v51, 4  ;;  %v4697_v14 = vrot.slane %v4696_v39, 4  ;;  %v5007_v12 = vadd.f32 %v5006_v23, %v8687_v28  ;;  %v5096_v40 = vadd.f32 %v5095_v49, %v8687_v28  ;;  %v5008_v45 = vpop.f32.mrb[123].mxu0  ;;  %v5097_v15 = vpop.f32.mrb[123].mxu1 }
 0xb16   : > { %v4688_v53 = vrot.slane %v4687_v29, 4  ;;  %v4706_v2 = vrot.slane %v4705_v21, 4  ;;  %v5009_v52 = vadd.f32 %v5008_v45, %v8687_v28  ;;  %v5098_v32 = vadd.f32 %v5097_v15, %v8687_v28  ;;  %v8689_v45 = vld [vmem:[#allocation20_spill] sm:$0xff] }
 0xb17   : > { %v4680_v60 = vadd.f32 %v4679_v1, %v4678_v51  ;;  %v4698_v35 = vadd.f32 %v4697_v14, %v4696_v39  ;;  %v5116_v22 = vmax.f32 %v5007_v12, 0.0  ;;  %v5118_v63 = vmax.f32 %v5096_v40, 0.0 }
 0xb18   : > { %v4689_v44 = vadd.f32 %v4688_v53, %v4687_v29  ;;  %v4707_v6 = vadd.f32 %v4706_v2, %v4705_v21  ;;  %v5117_v17 = vmax.f32 %v5009_v52, 0.0  ;;  %v5119_v43 = vmax.f32 %v5098_v32, 0.0  ;;  %v5012_v16 = vpop.f32.mrb[124].mxu0  ;;  %v5101_v5 = vpop.f32.mrb[124].mxu1 }
 0xb19   : > { %v4681_v0 = vrot.slane %v4680_v60, 2  ;;  %v4699_v38 = vrot.slane %v4698_v35, 2  ;;  %v6149_v54 = vpack.c.bf16 %v5116_v22, %v5112_v20  ;;  %v6157_v61 = vpack.c.bf16 %v5118_v63, %v5114_v7  ;;  %v5014_v34 = vpop.f32.mrb[125].mxu0  ;;  %v5103_v19 = vpop.f32.mrb[125].mxu1 }
 0xb1a   : > { %v4690_v47 = vrot.slane %v4689_v44, 2  ;;  %v4708_v41 = vrot.slane %v4707_v6, 2  ;;  %v6147_v31 = vpack.c.bf16 %v5117_v17, %v5113_v8  ;;  %v6155_v46 = vpack.c.bf16 %v5119_v43, %v5115_v57 }
 0xb1b   : > { %v4682_v30 = vadd.f32 %v4681_v0, %v4680_v60  ;;  %v4700_v9 = vadd.f32 %v4699_v38, %v4698_v35  ;;  %v5013_v13 = vadd.f32 %v5012_v16, %v8688_v4  ;;  %v5102_v42 = vadd.f32 %v5101_v5, %v8688_v4  ;;  %v8690_v35 = vld [vmem:[#allocation25_spill] sm:$0xff] }
 0xb1c   : > { %v4691_v50 = vadd.f32 %v4690_v47, %v4689_v44  ;;  %v4709_v25 = vadd.f32 %v4708_v41, %v4707_v6  ;;  %v5015_v55 = vadd.f32 %v5014_v34, %v8688_v4  ;;  %v5104_v51 = vadd.f32 %v5103_v19, %v8688_v4  ;;  %v5018_v39 = vpop.f32.mrb[126].mxu0  ;;  %v5107_v20 = vpop.f32.mrb[126].mxu1  ;;  %6148 = vmatprep.subr.bf16.mxu0 %v6147_v31  ;;  %v8691_v31 = vld [vmem:[#allocation28_spill] sm:$0xff] }
 0xb1d   : > { %v4683_v7 = vrot.slane %v4682_v30, 1  ;;  %v4701_v29 = vrot.slane %v4700_v9, 1  ;;  %v5120_v21 = vmax.f32 %v5013_v13, 0.0  ;;  %v5122_v8 = vmax.f32 %v5102_v42, 0.0  ;;  %6156 = vmatprep.subr.bf16.mxu1 %v6155_v46  ;;  %v5020_v57 = vpop.f32.mrb[127].mxu0  ;;  %v5109_v23 = vpop.f32.mrb[127].mxu1  ;;  %6150 = vmatpush1.bf16.msra.mxu0 %v6149_v54 }
 0xb1e   : > { %v4692_v49 = vrot.slane %v4691_v50, 1  ;;  %v4710_v1 = vrot.slane %v4709_v25, 1  ;;  %v5121_v14 = vmax.f32 %v5015_v55, 0.0  ;;  %v5123_v28 = vmax.f32 %v5104_v51, 0.0  ;;  %6158 = vmatpush1.bf16.msra.mxu1 %v6157_v61  ;;  %v8692_v46 = vld [vmem:[#allocation29_spill] sm:$0xff]  ;;  %v8693_v55 = vld [vmem:[#allocation30_spill] sm:$0xff] }
 0xb1f   : > { %v4684_v12 = vadd.f32 %v4683_v7, %v4682_v30  ;;  %v4702_v40 = vadd.f32 %v4701_v29, %v4700_v9  ;;  %v5019_v15 = vadd.f32 %v5018_v39, %v8689_v45  ;;  %v5108_v53 = vadd.f32 %v5107_v20, %v8689_v45  ;;  %v8694_v39 = vld [vmem:[#allocation31_spill] sm:$0xff] }
 0xb20   : > { %v4693_v2 = vadd.f32 %v4692_v49, %v4691_v50  ;;  %v4711_v52 = vadd.f32 %v4710_v1, %v4709_v25  ;;  %v5021_v32 = vadd.f32 %v5020_v57, %v8689_v45  ;;  %v5110_v60 = vadd.f32 %v5109_v23, %v8689_v45 }
 0xb21   : > { %v4712_v22 = vadd.f32 %v4684_v12, %v8690_v35  ;;  %v4714_v63 = vadd.f32 %v4702_v40, %v8690_v35  ;;  %v5124_v44 = vmax.f32 %v5019_v15, 0.0  ;;  %v5126_v6 = vmax.f32 %v5108_v53, 0.0  ;;  %v8695_v15 = vld [vmem:[#allocation26_spill] sm:$0xff] }
 0xb22   : > { %v4713_v17 = vadd.f32 %v4693_v2, %v8690_v35  ;;  %v4715_v43 = vadd.f32 %v4711_v52, %v8690_v35  ;;  %v5125_v16 = vmax.f32 %v5021_v32, 0.0  ;;  %v5127_v5 = vmax.f32 %v5110_v60, 0.0 }
 0xb23   : > { %v5854_v0 = vmul.f32 -1.442695, %v4712_v22  ;;  %v5856_v38 = vmul.f32 -1.442695, %v4714_v63  ;;  %v6153_v54 = vpack.c.bf16 %v5124_v44, %v5120_v21  ;;  %v6161_v61 = vpack.c.bf16 %v5126_v6, %v5122_v8 }
 0xb24   : > { %v5855_v34 = vmul.f32 -1.442695, %v4713_v17  ;;  %v5857_v19 = vmul.f32 -1.442695, %v4715_v43  ;;  %v6151_v47 = vpack.c.bf16 %v5125_v16, %v5121_v14  ;;  %v6159_v41 = vpack.c.bf16 %v5127_v5, %v5123_v28  ;;  %v8697_v17 = vld [vmem:[#allocation21_spill] sm:$0xff] }
 0xb25   : > { %6263 = vpow2.f32 %v5854_v0 }
 0xb26   : > { %6265 = vpow2.f32 %v5856_v38  ;;  %6152 = vmatprep.subr.bf16.mxu0 %v6151_v47  ;;  %6160 = vmatprep.subr.bf16.mxu1 %v6159_v41 }
 0xb27   : > { %6267 = vpow2.f32 %v5855_v34  ;;  %6154 = vmatpush1.bf16.msra.mxu0 %v6153_v54  ;;  %6162 = vmatpush1.bf16.msra.mxu1 %v6161_v61 }
 0xb28   : > { %6269 = vpow2.f32 %v5857_v19 }
 0xb2a   : > { %5867 = vmatmul.mubr.msk.f32.vlgmr.msra.gmra.mrb[128].mxu0 %vm553_vm0, %v8691_v31  ;;  %5871 = vmatmul.mubr.msk.f32.vlgmr.msra.gmra.mrb[128].mxu1 %vm553_vm0, %v8691_v31 }
 0xb2b   : > { %5198 = vmatprep.mubr.f32.mxu0 %v8566_v27  ;;  %5287 = vmatprep.mubr.f32.mxu1 %v8566_v27 }
 0xb2e   : > { %5868 = vmatmul.mubr.msk.f32.gmra.mrb[130].mxu0 %vm553_vm0, %v8692_v46  ;;  %5872 = vmatmul.mubr.msk.f32.gmra.mrb[130].mxu1 %vm553_vm0, %v8692_v46 }
 0xb2f   : > { %v6264_v30 = vpop.eup %6263  ;;  %5204 = vmatprep.mubr.f32.mxu0 %v8566_v27  ;;  %5293 = vmatprep.mubr.f32.mxu1 %v8566_v27 }
 0xb30   : > { %v6266_v9 = vpop.eup %6265  ;;  %v4728_v4 = vadd.f32 1.0, %v6264_v30 }
 0xb31   : > { %v6268_v13 = vpop.eup %6267  ;;  %v4730_v42 = vadd.f32 1.0, %v6266_v9 }
 0xb32   : > { %v6270_v50 = vpop.eup %6269  ;;  %6271 = vrcp.f32 %v4728_v4  ;;  %v4729_v25 = vadd.f32 1.0, %v6268_v13  ;;  %5869 = vmatmul.mubr.msk.f32.gmra.mrb[132].mxu0 %vm553_vm0, %v8693_v55  ;;  %5873 = vmatmul.mubr.msk.f32.gmra.mrb[132].mxu1 %vm553_vm0, %v8693_v55 }
 0xb33   : > { %6273 = vrcp.f32 %v4730_v42  ;;  %v4731_v51 = vadd.f32 1.0, %v6270_v50  ;;  %5210 = vmatprep.mubr.f32.mxu0 %v8566_v27  ;;  %5299 = vmatprep.mubr.f32.mxu1 %v8566_v27 }
 0xb34   : > { %6275 = vrcp.f32 %v4729_v25 }
 0xb35   : > { %6277 = vrcp.f32 %v4731_v51 }
 0xb36   : > { %5870 = vmatmul.mubr.msk.f32.gmra.mrb[134].mxu0 %vm553_vm0, %v8694_v39  ;;  %5874 = vmatmul.mubr.msk.f32.gmra.mrb[134].mxu1 %vm553_vm0, %v8694_v39 }
 0xb37   : > { %5386 = vmatprep.mubr.f32.mxu0 %v8566_v27  ;;  %5475 = vmatprep.mubr.f32.mxu1 %v8566_v27 }
 0xb3c   : > { %v6272_v20 = vpop.eup %6271 }
 0xb3d   : > { %v6274_v7 = vpop.eup %6273  ;;  %v4740_v29 = vmul.f32 0.995, %v6272_v20 }
 0xb3e   : > { %v6276_v21 = vpop.eup %6275  ;;  %v4742_v8 = vmul.f32 0.995, %v6274_v7 }
 0xb3f   : > { %v6278_v57 = vpop.eup %6277  ;;  %v4744_v23 = vadd.f32 0.005, %v4740_v29  ;;  %v4741_v49 = vmul.f32 0.995, %v6276_v21 }
 0xb40   : > { %v4746_v1 = vadd.f32 0.005, %v4742_v8  ;;  %v4743_v14 = vmul.f32 0.995, %v6278_v57  ;;  %v8698_v57 = vld [vmem:[#allocation23_spill] sm:$0xff] }
 0xb41   : > { %v4745_v28 = vadd.f32 0.005, %v4741_v49 }
 0xb42   : > { %v4747_v12 = vadd.f32 0.005, %v4743_v14 }
 0xb43   : > { %v4752_v40 = vcombine.low %v4744_v23, %v4745_v28 }
 0xb44   : > { %v4753_v45 = vcombine.low %v4746_v1, %v4747_v12 }
 0xb45   : > { %v4760_v53 = vrot.slane %v4752_v40, %v8695_v15 }
 0xb46   : > { %v4767_v2 = vrot.slane %v4753_v45, %v8695_v15 }
 0xb48   : > { %v4768_v52 = vcombine.low %v4760_v53, %v4767_v2 }
 0xb4a   : > { %v4775_v32 = vrot.slane %v4768_v52, %v8695_v15 }
 0xb4c   : > { %5858 = vst.msk [vmem:[%s7071_s20 + $0x4] ss:$8 sm:$0xf] %vm7074_vm1, %v4775_v32 }
 0xbfd   : > { %v5194_v22 = vpop.f32.mrb[128].mxu0  ;;  %v5283_v63 = vpop.f32.mrb[128].mxu1 }
 0xbfe   : > { %v5196_v44 = vpop.f32.mrb[129].mxu0  ;;  %v5285_v6 = vpop.f32.mrb[129].mxu1  ;;  %v5195_v43 = vadd.f32 %v5194_v22, %v8697_v17  ;;  %v5284_v16 = vadd.f32 %v5283_v63, %v8697_v17 }
 0xbff   : > { %v5197_v5 = vadd.f32 %v5196_v44, %v8697_v17  ;;  %v5286_v0 = vadd.f32 %v5285_v6, %v8697_v17 }
 0xc00   : > { %v5306_v46 = vmax.f32 %v5195_v43, 0.0  ;;  %v5308_v30 = vmax.f32 %v5284_v16, 0.0 }
 0xc01   : > { %v5200_v38 = vpop.f32.mrb[130].mxu0  ;;  %v5289_v54 = vpop.f32.mrb[130].mxu1  ;;  %v5307_v13 = vmax.f32 %v5197_v5, 0.0  ;;  %v5309_v42 = vmax.f32 %v5286_v0, 0.0 }
 0xc02   : > { %v5201_v61 = vadd.f32 %v5200_v38, %v8681_v24  ;;  %v5290_v34 = vadd.f32 %v5289_v54, %v8681_v24  ;;  %v5202_v19 = vpop.f32.mrb[131].mxu0  ;;  %v5291_v47 = vpop.f32.mrb[131].mxu1 }
 0xc03   : > { %v5203_v41 = vadd.f32 %v5202_v19, %v8681_v24  ;;  %v5292_v31 = vadd.f32 %v5291_v47, %v8681_v24 }
 0xc04   : > { %v5310_v9 = vmax.f32 %v5201_v61, 0.0  ;;  %v5312_v4 = vmax.f32 %v5290_v34, 0.0 }
 0xc05   : > { %v5311_v50 = vmax.f32 %v5203_v41, 0.0  ;;  %v5313_v25 = vmax.f32 %v5292_v31, 0.0  ;;  %v5206_v55 = vpop.f32.mrb[132].mxu0  ;;  %v5295_v51 = vpop.f32.mrb[132].mxu1 }
 0xc06   : > { %v6165_v39 = vpack.c.bf16 %v5310_v9, %v5306_v46  ;;  %v6173_v20 = vpack.c.bf16 %v5312_v4, %v5308_v30  ;;  %v5208_v7 = vpop.f32.mrb[133].mxu0  ;;  %v5297_v29 = vpop.f32.mrb[133].mxu1  ;;  %v5207_v23 = vadd.f32 %v5206_v55, %v8698_v57  ;;  %v5296_v24 = vadd.f32 %v5295_v51, %v8698_v57 }
 0xc07   : > { %v6163_v21 = vpack.c.bf16 %v5311_v50, %v5307_v13  ;;  %v6171_v8 = vpack.c.bf16 %v5313_v25, %v5309_v42  ;;  %v5209_v49 = vadd.f32 %v5208_v7, %v8698_v57  ;;  %v5298_v1 = vadd.f32 %v5297_v29, %v8698_v57 }
 0xc08   : > { %v5314_v32 = vmax.f32 %v5207_v23, 0.0  ;;  %v5316_v22 = vmax.f32 %v5296_v24, 0.0 }
 0xc09   : > { %v5212_v14 = vpop.f32.mrb[134].mxu0  ;;  %v5301_v28 = vpop.f32.mrb[134].mxu1  ;;  %6164 = vmatprep.subr.bf16.mxu0 %v6163_v21  ;;  %6172 = vmatprep.subr.bf16.mxu1 %v6171_v8  ;;  %v5315_v6 = vmax.f32 %v5209_v49, 0.0  ;;  %v5317_v17 = vmax.f32 %v5298_v1, 0.0 }
 0xc0a   : > { %v5213_v12 = vadd.f32 %v5212_v14, %v8683_v3  ;;  %v5302_v40 = vadd.f32 %v5301_v28, %v8683_v3  ;;  %v5214_v45 = vpop.f32.mrb[135].mxu0  ;;  %v5303_v53 = vpop.f32.mrb[135].mxu1  ;;  %6166 = vmatpush1.bf16.msra.mxu0 %v6165_v39  ;;  %6174 = vmatpush1.bf16.msra.mxu1 %v6173_v20 }
 0xc0b   : > { %v5215_v2 = vadd.f32 %v5214_v45, %v8683_v3  ;;  %v5304_v52 = vadd.f32 %v5303_v53, %v8683_v3 }
 0xc0c   : > { %v5318_v63 = vmax.f32 %v5213_v12, 0.0  ;;  %v5320_v44 = vmax.f32 %v5302_v40, 0.0 }
 0xc0d   : > { %v5319_v43 = vmax.f32 %v5215_v2, 0.0  ;;  %v5321_v16 = vmax.f32 %v5304_v52, 0.0 }
 0xc0e   : > { %v6169_v5 = vpack.c.bf16 %v5318_v63, %v5314_v32  ;;  %v6177_v0 = vpack.c.bf16 %v5320_v44, %v5316_v22 }
 0xc0f   : > { %v6167_v38 = vpack.c.bf16 %v5319_v43, %v5315_v6  ;;  %v6175_v54 = vpack.c.bf16 %v5321_v16, %v5317_v17 }
 0xc11   : > { %6168 = vmatprep.subr.bf16.mxu0 %v6167_v38  ;;  %6176 = vmatprep.subr.bf16.mxu1 %v6175_v54 }
 0xc12   : > { %6170 = vmatpush1.bf16.msra.mxu0 %v6169_v5  ;;  %6178 = vmatpush1.bf16.msra.mxu1 %v6177_v0 }
 0xc15   : > { %5875 = vmatmul.mubr.msk.f32.vlgmr.msra.gmra.mrb[136].mxu0 %vm553_vm0, %v8179_v37  ;;  %5879 = vmatmul.mubr.msk.f32.vlgmr.msra.gmra.mrb[136].mxu1 %vm553_vm0, %v8179_v37 }
 0xc16   : > { %5392 = vmatprep.mubr.f32.mxu0 %v8566_v27  ;;  %5481 = vmatprep.mubr.f32.mxu1 %v8566_v27 }
 0xc19   : > { %5876 = vmatmul.mubr.msk.f32.gmra.mrb[138].mxu0 %vm553_vm0, %v8190_v33  ;;  %5880 = vmatmul.mubr.msk.f32.gmra.mrb[138].mxu1 %vm553_vm0, %v8190_v33 }
 0xc1a   : > { %5398 = vmatprep.mubr.f32.mxu0 %v8566_v27  ;;  %5487 = vmatprep.mubr.f32.mxu1 %v8566_v27 }
 0xc1d   : > { %5877 = vmatmul.mubr.msk.f32.gmra.mrb[140].mxu0 %vm553_vm0, %v8201_v18  ;;  %5881 = vmatmul.mubr.msk.f32.gmra.mrb[140].mxu1 %vm553_vm0, %v8201_v18 }
 0xc1e   : > { %5404 = vmatprep.mubr.f32.mxu0 %v8566_v27  ;;  %5493 = vmatprep.mubr.f32.mxu1 %v8566_v27 }
 0xc21   : > { %5878 = vmatmul.mubr.msk.f32.gmra.mrb[142].mxu0 %vm553_vm0, %v8212_v48  ;;  %5882 = vmatmul.mubr.msk.f32.gmra.mrb[142].mxu1 %vm553_vm0, %v8212_v48 }
 0xce8   : > { %v5388_v3 = vpop.f32.mrb[136].mxu0  ;;  %v5477_v37 = vpop.f32.mrb[136].mxu1 }
 0xce9   : > { %v5389_v33 = vadd.f32 %v5388_v3, %v6967_v56  ;;  %v5478_v61 = vadd.f32 %v5477_v37, %v6967_v56  ;;  %v5390_v34 = vpop.f32.mrb[137].mxu0  ;;  %v5479_v19 = vpop.f32.mrb[137].mxu1 }
 0xcea   : > { %v5391_v18 = vadd.f32 %v5390_v34, %v6967_v56  ;;  %v5480_v47 = vadd.f32 %v5479_v19, %v6967_v56 }
 0xceb   : > { %v5500_v41 = vmax.f32 %v5389_v33, 0.0  ;;  %v5502_v27 = vmax.f32 %v5478_v61, 0.0 }
 0xcec   : > { %v5501_v31 = vmax.f32 %v5391_v18, 0.0  ;;  %v5503_v46 = vmax.f32 %v5480_v47, 0.0  ;;  %v5394_v30 = vpop.f32.mrb[138].mxu0  ;;  %v5483_v9 = vpop.f32.mrb[138].mxu1 }
 0xced   : > { %v5395_v48 = vadd.f32 %v5394_v30, %v6969_v58  ;;  %v5484_v4 = vadd.f32 %v5483_v9, %v6969_v58  ;;  %v5396_v13 = vpop.f32.mrb[139].mxu0  ;;  %v5485_v42 = vpop.f32.mrb[139].mxu1  ;;  %v5516_v55 = vmul.f32 %v5500_v41, %v6979_v62  ;;  %v5518_v56 = vmul.f32 %v5502_v27, %v6979_v62 }
 0xcee   : > { %v5397_v50 = vadd.f32 %v5396_v13, %v6969_v58  ;;  %v5486_v25 = vadd.f32 %v5485_v42, %v6969_v58  ;;  %v5517_v20 = vmul.f32 %v5501_v31, %v6979_v62  ;;  %v5519_v7 = vmul.f32 %v5503_v46, %v6979_v62 }
 0xcef   : > { %v5504_v51 = vmax.f32 %v5395_v48, 0.0  ;;  %v5506_v39 = vmax.f32 %v5484_v4, 0.0 }
 0xcf0   : > { %v5505_v29 = vmax.f32 %v5397_v50, 0.0  ;;  %v5507_v21 = vmax.f32 %v5486_v25, 0.0  ;;  %v5400_v8 = vpop.f32.mrb[140].mxu0  ;;  %v5489_v57 = vpop.f32.mrb[140].mxu1 }
 0xcf1   : > { %v5520_v23 = vmul.f32 %v5504_v51, %v6987_v26  ;;  %v5522_v24 = vmul.f32 %v5506_v39, %v6987_v26  ;;  %v5401_v58 = vadd.f32 %v5400_v8, %v6971_v10  ;;  %v5490_v49 = vadd.f32 %v5489_v57, %v6971_v10  ;;  %v5402_v1 = vpop.f32.mrb[141].mxu0  ;;  %v5491_v14 = vpop.f32.mrb[141].mxu1 }
 0xcf2   : > { %v5521_v28 = vmul.f32 %v5505_v29, %v6987_v26  ;;  %v5523_v12 = vmul.f32 %v5507_v21, %v6987_v26  ;;  %v5403_v62 = vadd.f32 %v5402_v1, %v6971_v10  ;;  %v5492_v40 = vadd.f32 %v5491_v14, %v6971_v10 }
 0xcf3   : > { %v5532_v45 = vadd.f32 %v5520_v23, %v5516_v55  ;;  %v5550_v53 = vadd.f32 %v5522_v24, %v5518_v56  ;;  %v5508_v2 = vmax.f32 %v5401_v58, 0.0  ;;  %v5510_v52 = vmax.f32 %v5490_v49, 0.0 }
 0xcf4   : > { %v5541_v32 = vadd.f32 %v5521_v28, %v5517_v20  ;;  %v5559_v22 = vadd.f32 %v5523_v12, %v5519_v7  ;;  %v5509_v63 = vmax.f32 %v5403_v62, 0.0  ;;  %v5511_v44 = vmax.f32 %v5492_v40, 0.0  ;;  %v5406_v6 = vpop.f32.mrb[142].mxu0  ;;  %v5495_v17 = vpop.f32.mrb[142].mxu1 }
 0xcf5   : > { %v5524_v43 = vmul.f32 %v5508_v2, %v7001_v36  ;;  %v5526_v16 = vmul.f32 %v5510_v52, %v7001_v36  ;;  %v5407_v26 = vadd.f32 %v5406_v6, %v6973_v11  ;;  %v5496_v5 = vadd.f32 %v5495_v17, %v6973_v11  ;;  %v5408_v0 = vpop.f32.mrb[143].mxu0  ;;  %v5497_v10 = vpop.f32.mrb[143].mxu1 }
 0xcf6   : > { %v5525_v38 = vmul.f32 %v5509_v63, %v7001_v36  ;;  %v5527_v54 = vmul.f32 %v5511_v44, %v7001_v36  ;;  %v5409_v3 = vadd.f32 %v5408_v0, %v6973_v11  ;;  %v5498_v37 = vadd.f32 %v5497_v10, %v6973_v11 }
 0xcf7   : > { %v5533_v33 = vadd.f32 %v5532_v45, %v5524_v43  ;;  %v5551_v61 = vadd.f32 %v5550_v53, %v5526_v16  ;;  %v5512_v34 = vmax.f32 %v5407_v26, 0.0  ;;  %v5514_v19 = vmax.f32 %v5496_v5, 0.0 }
 0xcf8   : > { %v5542_v18 = vadd.f32 %v5541_v32, %v5525_v38  ;;  %v5560_v47 = vadd.f32 %v5559_v22, %v5527_v54  ;;  %v5513_v41 = vmax.f32 %v5409_v3, 0.0  ;;  %v5515_v27 = vmax.f32 %v5498_v37, 0.0 }
 0xcf9   : > { %v5528_v31 = vmul.f32 %v5512_v34, %v7011_v59  ;;  %v5530_v46 = vmul.f32 %v5514_v19, %v7011_v59 }
 0xcfa   : > { %v5529_v30 = vmul.f32 %v5513_v41, %v7011_v59  ;;  %v5531_v36 = vmul.f32 %v5515_v27, %v7011_v59 }
 0xcfb   : > { %v5534_v9 = vadd.f32 %v5533_v33, %v5528_v31  ;;  %v5552_v48 = vadd.f32 %v5551_v61, %v5530_v46 }
 0xcfc   : > { %v5543_v4 = vadd.f32 %v5542_v18, %v5529_v30  ;;  %v5561_v11 = vadd.f32 %v5560_v47, %v5531_v36 }
 0xcfd   : > { %v5535_v13 = vrot.slane %v5534_v9, 4  ;;  %v5553_v42 = vrot.slane %v5552_v48, 4 }
 0xcfe   : > { %v5544_v50 = vrot.slane %v5543_v4, 4  ;;  %v5562_v25 = vrot.slane %v5561_v11, 4 }
 0xcff   : > { %v5536_v55 = vadd.f32 %v5535_v13, %v5534_v9  ;;  %v5554_v56 = vadd.f32 %v5553_v42, %v5552_v48 }
 0xd00   : > { %v5545_v51 = vadd.f32 %v5544_v50, %v5543_v4  ;;  %v5563_v39 = vadd.f32 %v5562_v25, %v5561_v11 }
 0xd01   : > { %v5537_v20 = vrot.slane %v5536_v55, 2  ;;  %v5555_v7 = vrot.slane %v5554_v56, 2 }
 0xd02   : > { %v5546_v29 = vrot.slane %v5545_v51, 2  ;;  %v5564_v21 = vrot.slane %v5563_v39, 2 }
 0xd03   : > { %v5538_v8 = vadd.f32 %v5537_v20, %v5536_v55  ;;  %v5556_v57 = vadd.f32 %v5555_v7, %v5554_v56 }
 0xd04   : > { %v5547_v23 = vadd.f32 %v5546_v29, %v5545_v51  ;;  %v5565_v59 = vadd.f32 %v5564_v21, %v5563_v39 }
 0xd05   : > { %v5539_v24 = vrot.slane %v5538_v8, 1  ;;  %v5557_v58 = vrot.slane %v5556_v57, 1 }
 0xd06   : > { %v5548_v49 = vrot.slane %v5547_v23, 1  ;;  %v5566_v1 = vrot.slane %v5565_v59, 1 }
 0xd07   : > { %v5540_v14 = vadd.f32 %v5539_v24, %v5538_v8  ;;  %v5558_v28 = vadd.f32 %v5557_v58, %v5556_v57 }
 0xd08   : > { %v5549_v12 = vadd.f32 %v5548_v49, %v5547_v23  ;;  %v5567_v62 = vadd.f32 %v5566_v1, %v5565_v59 }
 0xd09   : > { %v5568_v40 = vadd.f32 %v5540_v14, %v8690_v35  ;;  %v5570_v45 = vadd.f32 %v5558_v28, %v8690_v35 }
 0xd0a   : > { %v5569_v53 = vadd.f32 %v5549_v12, %v8690_v35  ;;  %v5571_v2 = vadd.f32 %v5567_v62, %v8690_v35 }
 0xd0b   : > { %v5883_v52 = vmul.f32 -1.442695, %v5568_v40  ;;  %v5885_v32 = vmul.f32 -1.442695, %v5570_v45 }
 0xd0c   : > { %v5884_v22 = vmul.f32 -1.442695, %v5569_v53  ;;  %v5886_v63 = vmul.f32 -1.442695, %v5571_v2 }
 0xd0d   : > { %6279 = vpow2.f32 %v5883_v52 }
 0xd0e   : > { %6281 = vpow2.f32 %v5885_v32 }
 0xd0f   : > { %6283 = vpow2.f32 %v5884_v22 }
 0xd10   : > { %6285 = vpow2.f32 %v5886_v63 }
 0xd17   : > { %v6280_v44 = vpop.eup %6279 }
 0xd18   : > { %v6282_v6 = vpop.eup %6281  ;;  %v5584_v17 = vadd.f32 1.0, %v6280_v44 }
 0xd19   : > { %v6284_v43 = vpop.eup %6283  ;;  %v5586_v16 = vadd.f32 1.0, %v6282_v6 }
 0xd1a   : > { %v6286_v26 = vpop.eup %6285  ;;  %6287 = vrcp.f32 %v5584_v17  ;;  %v5585_v5 = vadd.f32 1.0, %v6284_v43 }
 0xd1b   : > { %6289 = vrcp.f32 %v5586_v16  ;;  %v5587_v0 = vadd.f32 1.0, %v6286_v26 }
 0xd1c   : > { %6291 = vrcp.f32 %v5585_v5 }
 0xd1d   : > { %6293 = vrcp.f32 %v5587_v0 }
 0xd24   : > { %v6288_v35 = vpop.eup %6287 }
 0xd25   : > { %v6290_v10 = vpop.eup %6289  ;;  %v5596_v38 = vmul.f32 0.995, %v6288_v35 }
 0xd26   : > { %v6292_v54 = vpop.eup %6291  ;;  %v5598_v3 = vmul.f32 0.995, %v6290_v10 }
 0xd27   : > { %v6294_v37 = vpop.eup %6293  ;;  %v5600_v33 = vadd.f32 0.005, %v5596_v38  ;;  %v5597_v61 = vmul.f32 0.995, %v6292_v54 }
 0xd28   : > { %v5602_v34 = vadd.f32 0.005, %v5598_v3  ;;  %v5599_v19 = vmul.f32 0.995, %v6294_v37 }
 0xd29   : > { %v5601_v18 = vadd.f32 0.005, %v5597_v61 }
 0xd2a   : > { %v5603_v47 = vadd.f32 0.005, %v5599_v19 }
 0xd2b   : > { %v5608_v41 = vcombine.low %v5600_v33, %v5601_v18 }
 0xd2c   : > { %v5609_v27 = vcombine.low %v5602_v34, %v5603_v47 }
 0xd2d   : > { %v5616_v31 = vrot.slane %v5608_v41, %v8695_v15 }
 0xd2e   : > { %v5623_v46 = vrot.slane %v5609_v27, %v8695_v15 }
 0xd30   : > { %v5624_v30 = vcombine.low %v5616_v31, %v5623_v46 }
 0xd32   : > { %v5631_v36 = vrot.slane %v5624_v30, %v8695_v15 }
 0xd34   : > { %5887 = vst.msk [vmem:[%s7071_s20 + $0x5] ss:$8 sm:$0xf] %vm7074_vm1, %v5631_v36 }
 0xd35 PF: > { %s18_s26 = sadd.s32 1, %s6325_s26  }
 0xd36   : > { %p15_p5 = scmp.ge.s32.totalorder %s18_s26, 4  }
 0xd38   :  { %17 = sbr.rel (!%p15_p5) target bundleno = 2 (0x2), region = 87 }

</bundles_post_ra>
